<compile_context>
chip_gen: v5e
topology: v5e:2x2
jax: 0.10.0
libtpu: 0.0.40
codegen_flags: <defaults>
</compile_context>

<pallas_src>
import jax
import jax.numpy as jnp
from jax.experimental import pallas as pl
from jax.experimental.pallas import tpu as pltpu

IN_FEATURES = 1500  # fixed by nn.Linear(1500, 1, bias=False)


def _fc_kernel(x_ref, w2_ref, o_ref):
    # x_ref: (TB, 1500) native dtype, w2_ref: (1500, 2) f32, o_ref: (1, 1, TB) f32
    x = x_ref[...].astype(jnp.float32)
    m = jnp.max(x, axis=-1, keepdims=True)            # XLU row max
    e = jnp.exp(x - m)                                 # EUP exp (f32)
    # MXU: both softmax reductions in one matmul.
    #   col 0 = sum(e * w), col 1 = sum(e)
    r = jnp.dot(
        e, w2_ref[...],
        preferred_element_type=jnp.float32,
        precision=jax.lax.Precision.HIGHEST,           # free: MXU has huge slack
    )                                                  # (TB, 2)
    rt = r.T                                           # (2, TB)  cheap XLU transpose
    # One exact divide per row; store lane-dense (1, 1, TB).
    o_ref[...] = (rt[0:1, :] / rt[1:2, :])[None]


def make_w2(w):
    """Combined reduction weights (1500, 2): col0 = w, col1 = ones. Build once."""
    return jnp.stack(
        [w.astype(jnp.float32), jnp.ones((IN_FEATURES,), jnp.float32)], axis=1
    )


def fc_forward(x, w2):
    """x: any shape squeezing to (B, 1500) (or (1500,)); w2: (1500, 2) from make_w2."""
    xs = jnp.squeeze(x)
    squeezed_to_1d = xs.ndim == 1
    if squeezed_to_1d:
        xs = xs[None, :]  # (1, 1500)
    assert xs.shape[-1] == IN_FEATURES
    B = xs.shape[0]

    # Dtype-aware tile policy:
    #  * row multiple 8 for 32-bit dtypes, 16 for 16-bit (packed sublanes)
    #  * cap 512 for f32 (real VMEM ~<= 14 MiB), 1024 only for 16-bit inputs
    #  * target >= 4 grid steps for large B (>= 2 per TC on v7x)
    itembytes = jnp.dtype(xs.dtype).itemsize
    row_mult = 8 if itembytes >= 4 else 16
    tb_max = 512 if itembytes >= 4 else 1024
    tb_target = ((((B + 3) // 4) + row_mult - 1) // row_mult) * row_mult
    TB = max(row_mult, min(tb_max, tb_target))
    Bp = ((B + TB - 1) // TB) * TB
    if Bp != B:
        # Zero-padded rows are numerically safe (softmax of a zero row is uniform)
        # and are sliced off below.
        xs = jnp.pad(xs, ((0, Bp - B), (0, 0)))
    G = Bp // TB

    out = pl.pallas_call(
        _fc_kernel,
        out_shape=jax.ShapeDtypeStruct((G, 1, TB), jnp.float32),
        grid_spec=pltpu.PrefetchScalarGridSpec(
            num_scalar_prefetch=0,
            grid=(G,),
            in_specs=[
                pl.BlockSpec((TB, IN_FEATURES), lambda i: (i, 0)),
                pl.BlockSpec((IN_FEATURES, 2), lambda i: (0, 0)),
            ],
            # Lane-dense output tile: (1, 1, TB) per grid step.
            out_specs=pl.BlockSpec((1, 1, TB), lambda i: (i, 0, 0)),
        ),
        compiler_params=pltpu.CompilerParams(
            dimension_semantics=("parallel",),
            vmem_limit_bytes=32 << 20,  # raise v5e's 16 MiB default; safe on v6e/v7x
        ),
    )(xs, w2)

    out = out.reshape(Bp)[:B]  # torch F.linear with 1-D weight drops last dim -> (B,)
    if squeezed_to_1d:
        out = out[0]  # scalar, matching torch.squeeze of a single-row input
    return out


if __name__ == "__main__":
    key = jax.random.PRNGKey(0)
    # deterministic example input: batch=2, a singleton dim squeeze removes, 1500 features
    x = jax.random.normal(key, (2, 1, IN_FEATURES), dtype=jnp.float32)
    # deterministic weight matching the module: torch.linspace(0.001, 1.5, 1500)
    w = jnp.linspace(0.001, 1.5, IN_FEATURES, dtype=jnp.float32)
    w2 = make_w2(w)  # built once, reused across calls

    y = fc_forward(x, w2)
    jax.block_until_ready(y)

    # sanity check against a pure-JAX reference of the same math
    xs = jnp.squeeze(x)
    ref = jax.nn.softmax(xs, axis=-1) @ w
    assert y.shape == ref.shape == (2,)
    assert jnp.allclose(y, ref, atol=1e-5, rtol=1e-5)
    print("KERNEL_OK")
</pallas_src>

<mosaic_0001>
module attributes {stable_mosaic.version = 11 : i64} {
  func.func @_fc_kernel(%arg0: i32, %arg1: memref<8x1500xf32, #tpu.memory_space<vmem>>, %arg2: memref<1500x2xf32, #tpu.memory_space<vmem>>, %arg3: memref<1x1x8xf32, #tpu.memory_space<vmem>>) attributes {dimension_semantics = [#tpu.dimension_semantics<parallel>], iteration_bounds = array<i64: 1>, scalar_prefetch = 0 : i64, scratch_operands = 0 : i64, tpu.core_type = #tpu.core_type<tc>, window_params = [{transform_indices = @transform_0, window_bounds = array<i64: 8, 1500>}, {pipeline_mode = #tpu.pipeline_mode<synchronous>, transform_indices = @transform_1, window_bounds = array<i64: 1500, 2>}, {transform_indices = @transform_2, window_bounds = array<i64: 1, 1, 8>}]} {
    %c0 = arith.constant 0 : index
    %c0_0 = arith.constant 0 : index
    %0 = vector.load %arg1[%c0, %c0_0] : memref<8x1500xf32, #tpu.memory_space<vmem>>, vector<8x1500xf32>
    %cst = arith.constant dense<0xFF800000> : vector<8xf32>
    %1 = vector.multi_reduction <maximumf>, %0, %cst [1] : vector<8x1500xf32> to vector<8xf32>
    %2 = vector.shape_cast %1 : vector<8xf32> to vector<8x1xf32>
    %3 = vector.broadcast %2 : vector<8x1xf32> to vector<8x1500xf32>
    %4 = arith.subf %0, %3 : vector<8x1500xf32>
    %5 = math.exp %4 : vector<8x1500xf32>
    %c0_1 = arith.constant 0 : index
    %c0_2 = arith.constant 0 : index
    %6 = vector.load %arg2[%c0_1, %c0_2] : memref<1500x2xf32, #tpu.memory_space<vmem>>, vector<1500x2xf32>
    %cst_3 = arith.constant dense<0.000000e+00> : vector<8x2xf32>
    %7 = tpu.matmul %5, %6, %cst_3 {dimension_numbers = #tpu.dot_dimension_numbers<[1], [0], [0], [1], [0, 0, 1, 1], [], []>, precision = #tpu.contract_precision<fp32>} : vector<8x1500xf32>, vector<1500x2xf32>, vector<8x2xf32> -> vector<8x2xf32>
    %8 = tpu.transpose %7, [1, 0] : vector<8x2xf32> -> vector<2x8xf32>
    %9 = vector.extract_strided_slice %8 {offsets = [0, 0], sizes = [1, 8], strides = [1, 1]} : vector<2x8xf32> to vector<1x8xf32>
    %10 = vector.extract_strided_slice %8 {offsets = [1, 0], sizes = [1, 8], strides = [1, 1]} : vector<2x8xf32> to vector<1x8xf32>
    %11 = arith.divf %9, %10 : vector<1x8xf32>
    %12 = vector.shape_cast %11 : vector<1x8xf32> to vector<1x1x8xf32>
    %c0_4 = arith.constant 0 : index
    %c0_5 = arith.constant 0 : index
    %c0_6 = arith.constant 0 : index
    %13 = vector.load %arg3[%c0_4, %c0_5, %c0_6] : memref<1x1x8xf32, #tpu.memory_space<vmem>>, vector<1x1x8xf32>
    tpu.vector_store %arg3[%c0_4, %c0_5, %c0_6], %12 {strides = array<i32>} : memref<1x1x8xf32, #tpu.memory_space<vmem>>, vector<1x1x8xf32>,
    return
  }
  func.func @transform_0(%arg0: i32) -> (i32, i32) {
    %c0_i32 = arith.constant 0 : i32
    %c0_i32_0 = arith.constant 0 : i32
    return %arg0, %c0_i32 : i32, i32
  }
  func.func @transform_1(%arg0: i32) -> (i32, i32) {
    %c0_i32 = arith.constant 0 : i32
    %c0_i32_0 = arith.constant 0 : i32
    %c0_i32_1 = arith.constant 0 : i32
    return %c0_i32, %c0_i32_0 : i32, i32
  }
  func.func @transform_2(%arg0: i32) -> (i32, i32, i32) {
    %c0_i32 = arith.constant 0 : i32
    %c0_i32_0 = arith.constant 0 : i32
    %c0_i32_1 = arith.constant 0 : i32
    return %arg0, %c0_i32, %c0_i32_0 : i32, i32, i32
  }
}

</mosaic_0001>

<bundles_post_ra>
// kernel: tpu_custom_call.1
= control target key start
LH: loop header
LB: loop body
LE: loop exit
PB: predicated region body
PF: predicated region fallthrough
CT: control target
= control target key end

     0   :  { %vm31_vm0 = vcmask 752640   ;;  %s8055_s0 = inlined_call_operand.vmem [shape: f32[8,1500], index: 0, kind: input, shape index: {}]   ;;  %s8056_s1 = inlined_call_operand.vmem [shape: f32[1500,2], index: 1, kind: input, shape index: {}]   ;;  %s8057_s2 = inlined_call_operand.hbm [shape: f32[1,1,8], index: 2, kind: output, shape index: {}]  }
   0x1   :  { %v4461_v0 = vld [vmem:[%s8055_s0] sm:$0xff]  ;;  %v4466_v1 = vld [vmem:[%s8055_s0 + $0x8] sm:$0xff]  ;;  %v14_v2 = vld [vmem:[%s8055_s0 + $0x10] sm:$0xff] }
   0x2   :  { %v15_v3 = vld [vmem:[%s8055_s0 + $0x18] sm:$0xff]  ;;  %v16_v4 = vld [vmem:[%s8055_s0 + $0x20] sm:$0xff]  ;;  %v17_v5 = vld [vmem:[%s8055_s0 + $0x28] sm:$0xff] }
   0x3   :  { %v18_v6 = vld [vmem:[%s8055_s0 + $0x30] sm:$0xff]  ;;  %v19_v7 = vld [vmem:[%s8055_s0 + $0x38] sm:$0xff]  ;;  %v20_v8 = vld [vmem:[%s8055_s0 + $0x40] sm:$0xff]  ;;  %v24_v9 = vmax.f32 %v4461_v0, %v16_v4  ;;  %v25_v10 = vmax.f32 %v4466_v1, %v17_v5 }
   0x4   :  { %v21_v11 = vld [vmem:[%s8055_s0 + $0x48] sm:$0xff]  ;;  %v22_v12 = vld [vmem:[%s8055_s0 + $0x50] sm:$0xff]  ;;  %v23_v13 = vld [vmem:[%s8055_s0 + $0x58] sm:$0xff]  ;;  %v26_v14 = vmax.f32 %v14_v2, %v18_v6  ;;  %v27_v15 = vmax.f32 %v15_v3, %v19_v7 }
   0x5   :  { %v28_v16 = vmax.f32 %v24_v9, %v20_v8  ;;  %v29_v17 = vmax.f32 %v25_v10, %v21_v11  ;;  %v32_v18 = vsel %vm31_vm0, %v23_v13, -inf  ;;  %v90_v19 = vld [vmem:[%s8056_s1 + $0x78] sm:$0xff]  ;;  %v89_v20 = vld [vmem:[%s8056_s1 + $0x70] sm:$0xff]  ;;  %v88_v21 = vld [vmem:[%s8056_s1 + $0x68] sm:$0xff] }
   0x6   :  { %v30_v22 = vmax.f32 %v26_v14, %v22_v12  ;;  %v33_v23 = vmax.f32 %v27_v15, %v32_v18  ;;  %v4510_v24 = vand.u32 4294901760, %v90_v19  ;;  %v4512_v25 = vand.u32 4294901760, %v89_v20  ;;  %v87_v26 = vld [vmem:[%s8056_s1 + $0x60] sm:$0xff]  ;;  %v86_v27 = vld [vmem:[%s8056_s1 + $0x58] sm:$0xff]  ;;  %v85_v28 = vld [vmem:[%s8056_s1 + $0x50] sm:$0xff] }
   0x7   :  { %v34_v29 = vmax.f32 %v28_v16, %v29_v17  ;;  %v4523_v30 = vand.u32 4294901760, %v88_v21  ;;  %v4525_v31 = vand.u32 4294901760, %v87_v26  ;;  %v4527_v32 = vand.u32 4294901760, %v86_v27  ;;  %v84_v33 = vld [vmem:[%s8056_s1 + $0x48] sm:$0xff]  ;;  %v83_v42 = vld [vmem:[%s8056_s1 + $0x40] sm:$0xff] }
   0x8   :  { %v35_v34 = vmax.f32 %v30_v22, %v33_v23  ;;  %v4533_v35 = vsub.f32 %v90_v19, %v4510_v24  ;;  %v4536_v36 = vsub.f32 %v89_v20, %v4512_v25  ;;  %467 = vmatpush.msra.mxu3 %v4510_v24  ;;  %271 = vmatpush.msra.mxu0 %v4510_v24  ;;  %v4540_v37 = vand.u32 4294901760, %v85_v28 }
   0x9   :  { %v4543_v38 = vsub.f32 %v88_v21, %v4523_v30  ;;  %v4546_v39 = vsub.f32 %v87_v26, %v4525_v31  ;;  %v4549_v40 = vsub.f32 %v86_v27, %v4527_v32  ;;  %v4551_v41 = vand.u32 4294901760, %v84_v33 }
   0xa   :  { %7 = vsyncpa [#allocation3], 0  ;;  %v36_v43 = vmax.f32 %v34_v29, %v35_v34  ;;  %v313_v44 = vand.u32 4294901760, %v4533_v35  ;;  %v8071_v45 = vand.u32 4294901760, %v4536_v36  ;;  %414 = vmatpush.msra.mxu2 %v4533_v35  ;;  %469 = vmatpush.msra.mxu3 %v4512_v25  ;;  %v4561_v46 = vsub.f32 %v85_v28, %v4540_v37  ;;  %v82_v56 = vld [vmem:[%s8056_s1 + $0x38] sm:$0xff]  ;;  %v81_v57 = vld [vmem:[%s8056_s1 + $0x30] sm:$0xff] }
   0xb   :  { %v8070_v47 = vand.u32 4294901760, %v4543_v38  ;;  %v8067_v48 = vand.u32 4294901760, %v4546_v39  ;;  %v8066_v49 = vand.u32 4294901760, %v4549_v40  ;;  %273 = vmatpush.msra.mxu0 %v4512_v25  ;;  %v4575_v52 = vsub.f32 %v84_v33, %v4551_v41  ;;  %v80_v62 = vld [vmem:[%s8056_s1 + $0x28] sm:$0xff]  ;;  %v79_v63 = vld [vmem:[%s8056_s1 + $0x20] sm:$0xff]  ;;  %v78_v7 = vld [vmem:[%s8056_s1 + $0x18] sm:$0xff] }
   0xc   :  { %37 = vmax.xlane.f32.xlu0 %v36_v43  ;;  %v314_v50 = vsub.f32 %v4533_v35, %v313_v44  ;;  %v320_v51 = vsub.f32 %v4536_v36, %v8071_v45  ;;  %417 = vmatpush.msra.mxu2 %v4536_v36  ;;  %v4577_v53 = vand.u32 4294901760, %v83_v42  ;;  %v8065_v55 = vand.u32 4294901760, %v4561_v46  ;;  %v77_v15 = vld [vmem:[%s8056_s1 + $0x10] sm:$0xff]  ;;  %v76_v21 = vld [vmem:[%s8056_s1 + $0x8] sm:$0xff]  ;;  %v106_v43 = vld [vmem:[%s8056_s1 + $0xf8] sm:$0xff]  ;;  %s4369_s11 = sshll.u32 %s8057_s2, 4  ;;  %s4370_s11 = int_to_ptr.hbm [resolvable:$true] %s4369_s11 }
   0xd   :  { %v326_v54 = vsub.f32 %v4543_v38, %v8070_v47  ;;  %471 = vmatpush.msra.mxu3 %v4523_v30  ;;  %275 = vmatpush.msra.mxu0 %v4523_v30  ;;  %v332_v60 = vsub.f32 %v4546_v39, %v8067_v48  ;;  %v338_v2 = vsub.f32 %v4549_v40, %v8066_v49  ;;  %v8063_v4 = vand.u32 4294901760, %v4575_v52 }
   0xe   :  { %v315_v58 = vand.u32 4294901760, %v314_v50  ;;  %v321_v59 = vand.u32 4294901760, %v320_v51  ;;  %420 = vmatpush.msra.mxu2 %v4543_v38  ;;  %v4596_v61 = vsub.f32 %v83_v42, %v4577_v53  ;;  %v4611_v5 = vand.u32 4294901760, %v82_v56  ;;  %v75_v42 = vld [vmem:[%s8056_s1] sm:$0xff]  ;;  %v105_v50 = vld [vmem:[%s8056_s1 + $0xf0] sm:$0xff] }
   0xf   :  { %473 = vmatpush.msra.mxu3 %v4525_v31  ;;  %277 = vmatpush.msra.mxu0 %v4525_v31  ;;  %v327_v3 = vand.u32 4294901760, %v326_v54  ;;  %v4613_v6 = vand.u32 4294901760, %v81_v57  ;;  %v4621_v9 = vand.u32 4294901760, %v80_v62  ;;  %v4623_v10 = vand.u32 4294901760, %v79_v63 }
  0x10   :  { %316 = vmatpush.msra.mxu1 %v315_v58  ;;  %423 = vmatpush.msra.mxu2 %v4546_v39  ;;  %v8062_v8 = vand.u32 4294901760, %v4596_v61  ;;  %v333_v11 = vand.u32 4294901760, %v332_v60  ;;  %v344_v12 = vsub.f32 %v4561_v46, %v8065_v55  ;;  %v4630_v13 = vsub.f32 %v82_v56, %v4611_v5  ;;  %v104_v56 = vld [vmem:[%s8056_s1 + $0xe8] sm:$0xff]  ;;  %v103_v60 = vld [vmem:[%s8056_s1 + $0xe0] sm:$0xff] }
  0x11   :  { %475 = vmatpush.msra.mxu3 %v4527_v32  ;;  %279 = vmatpush.msra.mxu0 %v4527_v32  ;;  %v4633_v14 = vsub.f32 %v81_v57, %v4613_v6  ;;  %v4641_v16 = vsub.f32 %v80_v62, %v4621_v9  ;;  %v4643_v17 = vand.u32 4294901760, %v78_v7  ;;  %v339_v18 = vand.u32 4294901760, %v338_v2 }
  0x12   :  { %322 = vmatpush.msra.mxu1 %v321_v59  ;;  %426 = vmatpush.msra.mxu2 %v4549_v40  ;;  %v350_v19 = vsub.f32 %v4575_v52, %v8063_v4  ;;  %v8061_v20 = vand.u32 4294901760, %v4630_v13  ;;  %v356_v22 = vsub.f32 %v4596_v61, %v8062_v8  ;;  %v4659_v23 = vsub.f32 %v79_v63, %v4623_v10 }
  0x13   :  { %477 = vmatpush.msra.mxu3 %v4540_v37  ;;  %281 = vmatpush.msra.mxu0 %v4540_v37  ;;  %v4661_v26 = vand.u32 4294901760, %v77_v15  ;;  %v345_v27 = vand.u32 4294901760, %v344_v12  ;;  %v8059_v28 = vand.u32 4294901760, %v4633_v14  ;;  %v8058_v29 = vand.u32 4294901760, %v4641_v16 }
  0x14   :  { %328 = vmatpush.msra.mxu1 %v327_v3  ;;  %429 = vmatpush.msra.mxu2 %v4561_v46  ;;  %v4669_v33 = vsub.f32 %v78_v7, %v4643_v17  ;;  %v4671_v34 = vand.u32 4294901760, %v76_v21  ;;  %v351_v51 = vand.u32 4294901760, %v350_v19  ;;  %v362_v54 = vsub.f32 %v4630_v13, %v8061_v20 }
  0x15   :  { %479 = vmatpush.msra.mxu3 %v4551_v41  ;;  %283 = vmatpush.msra.mxu0 %v4551_v41  ;;  %v357_v57 = vand.u32 4294901760, %v356_v22  ;;  %v8060_v58 = vand.u32 4294901760, %v4659_v23  ;;  %v4693_v59 = vsub.f32 %v77_v15, %v4661_v26  ;;  %v368_v62 = vsub.f32 %v4633_v14, %v8059_v28 }
  0x16   :  { %334 = vmatpush.msra.mxu1 %v333_v11  ;;  %432 = vmatpush.msra.mxu2 %v4575_v52  ;;  %v4702_v63 = vand.u32 4294901760, %v75_v42  ;;  %v4704_v2 = vand.u32 4294901760, %v106_v43  ;;  %v4706_v3 = vand.u32 4294901760, %v105_v50  ;;  %v374_v7 = vsub.f32 %v4641_v16, %v8058_v29 }
  0x17   :  { %481 = vmatpush.msra.mxu3 %v4577_v53  ;;  %285 = vmatpush.msra.mxu0 %v4577_v53  ;;  %v8064_v11 = vand.u32 4294901760, %v4669_v33  ;;  %v4715_v12 = vsub.f32 %v76_v21, %v4671_v34  ;;  %v4717_v15 = vand.u32 4294901760, %v104_v56  ;;  %v363_v19 = vand.u32 4294901760, %v362_v54 }
  0x18   :  { %340 = vmatpush.msra.mxu1 %v339_v18  ;;  %435 = vmatpush.msra.mxu2 %v4596_v61  ;;  %v102_v18 = vld [vmem:[%s8056_s1 + $0xd8] sm:$0xff]  ;;  %v4724_v22 = vsub.f32 %v106_v43, %v4704_v2  ;;  %v4729_v29 = vand.u32 4294901760, %v103_v60  ;;  %v380_v21 = vsub.f32 %v4659_v23, %v8060_v58  ;;  %v8068_v28 = vand.u32 4294901760, %v4693_v59  ;;  %v101_v43 = vld [vmem:[%s8056_s1 + $0xd0] sm:$0xff] }
  0x19   :  { %483 = vmatpush.msra.mxu3 %v4611_v5  ;;  %287 = vmatpush.msra.mxu0 %v4611_v5  ;;  %v4745_v54 = vsub.f32 %v75_v42, %v4702_v63  ;;  %v4748_v20 = vand.u32 4294901760, %v102_v18  ;;  %v375_v42 = vand.u32 4294901760, %v374_v7  ;;  %v8073_v8 = vand.u32 4294901760, %v4715_v12 }
  0x1a   :  { %346 = vmatpush.msra.mxu1 %v345_v27  ;;  %438 = vmatpush.msra.mxu2 %v4630_v13  ;;  %v4727_v27 = vsub.f32 %v105_v50, %v4706_v3  ;;  %v369_v50 = vand.u32 4294901760, %v368_v62  ;;  %v8069_v58 = vand.u32 4294901760, %v4724_v22  ;;  %v100_v62 = vld [vmem:[%s8056_s1 + $0xc8] sm:$0xff]  ;;  %v4762_v4 = vsub.f32 %v103_v60, %v4729_v29 }
  0x1b   :  { %485 = vmatpush.msra.mxu3 %v4613_v6  ;;  %289 = vmatpush.msra.mxu0 %v4613_v6  ;;  %v392_v55 = vsub.f32 %v4693_v59, %v8068_v28  ;;  %v381_v49 = vand.u32 4294901760, %v380_v21  ;;  %v8075_v60 = vand.u32 4294901760, %v4745_v54  ;;  %v4778_v48 = vsub.f32 %v102_v18, %v4748_v20 }
  0x1c   :  { %352 = vmatpush.msra.mxu1 %v351_v51  ;;  %441 = vmatpush.msra.mxu2 %v4633_v14  ;;  %v4738_v51 = vsub.f32 %v104_v56, %v4717_v15  ;;  %v386_v56 = vsub.f32 %v4669_v33, %v8064_v11  ;;  %v4764_v11 = vand.u32 4294901760, %v101_v43  ;;  %v655_v7 = vsub.f32 %v4724_v22, %v8069_v58 }
  0x1d   :  { %487 = vmatpush.msra.mxu3 %v4621_v9  ;;  %291 = vmatpush.msra.mxu0 %v4621_v9  ;;  %v4780_v28 = vand.u32 4294901760, %v100_v62  ;;  %v398_v21 = vsub.f32 %v4715_v12, %v8073_v8  ;;  %v672_v18 = vand.u32 4294901760, %v4762_v4  ;;  %v8196_v35 = vand.u32 4294901760, %v4543_v38 }
  0x1e   :  { %358 = vmatpush.msra.mxu1 %v357_v57  ;;  %444 = vmatpush.msra.mxu2 %v4641_v16  ;;  %v8072_v57 = vand.u32 4294901760, %v4727_v27  ;;  %v4793_v47 = vsub.f32 %v101_v43, %v4764_v11  ;;  %v656_v45 = vand.u32 4294901760, %v655_v7  ;;  %v678_v43 = vand.u32 4294901760, %v4778_v48 }
  0x1f   :  { %489 = vmatpush.msra.mxu3 %v4623_v10  ;;  %293 = vmatpush.msra.mxu0 %v4623_v10  ;;  %v4806_v8 = vsub.f32 %v100_v62, %v4780_v28  ;;  %v8198_v38 = vand.u32 4294901760, %v4549_v40  ;;  %v8200_v40 = vand.u32 4294901760, %v4575_v52  ;;  %v8204_v52 = vand.u32 4294901760, %v4641_v16 }
  0x20   :  { %364 = vmatpush.msra.mxu1 %v363_v19  ;;  %447 = vmatpush.msra.mxu2 %v4659_v23  ;;  %v8074_v19 = vand.u32 4294901760, %v4738_v51  ;;  %v661_v58 = vsub.f32 %v4727_v27, %v8072_v57  ;;  %v404_v57 = vsub.f32 %v4745_v54, %v8075_v60  ;;  %vm266_vm1 = vcmask 1043456  }
  0x21   :  { %491 = vmatpush.msra.mxu3 %v4643_v17  ;;  %295 = vmatpush.msra.mxu0 %v4643_v17  ;;  %vm4360_vm6 = vcmask 57344  }
  0x22   :  { %370 = vmatpush.msra.mxu1 %v369_v50  ;;  %450 = vmatpush.msra.mxu2 %v4669_v33  ;;  %v387_v50 = vand.u32 4294901760, %v386_v56  ;;  %v667_v56 = vsub.f32 %v4738_v51, %v8074_v19  ;;  %v662_v7 = vand.u32 4294901760, %v661_v58  ;;  %v399_v19 = vand.u32 4294901760, %v398_v21 }
  0x23   :  { %493 = vmatpush.msra.mxu3 %v4661_v26  ;;  %297 = vmatpush.msra.mxu0 %v4661_v26  ;;  %v405_v60 = vand.u32 4294901760, %v404_v57  ;;  %v679_v58 = vsub.f32 %v4778_v48, %v678_v43  ;;  %v8195_v21 = vand.u32 4294901760, %v4536_v36  ;;  %v8197_v36 = vand.u32 4294901760, %v4546_v39 }
  0x24   :  { %376 = vmatpush.msra.mxu1 %v375_v42  ;;  %453 = vmatpush.msra.mxu2 %v4693_v59  ;;  %v393_v42 = vand.u32 4294901760, %v392_v55  ;;  %v684_v55 = vand.u32 4294901760, %v4793_v47  ;;  %v668_v62 = vand.u32 4294901760, %v667_v56  ;;  %v8199_v39 = vand.u32 4294901760, %v4561_v46 }
  0x25   :  { %495 = vmatpush.msra.mxu3 %v4671_v34  ;;  %299 = vmatpush.msra.mxu0 %v4671_v34  ;;  %v8202_v46 = vand.u32 4294901760, %v4630_v13 }
  0x26   :  { %382 = vmatpush.msra.mxu1 %v381_v49  ;;  %456 = vmatpush.msra.mxu2 %v4715_v12  ;;  %v673_v49 = vsub.f32 %v4762_v4, %v672_v18  ;;  %v685_v57 = vsub.f32 %v4793_v47, %v684_v55 }
  0x27   :  { %497 = vmatpush.msra.mxu3 %v4702_v63  ;;  %301 = vmatpush.msra.mxu0 %v4702_v63 }
  0x28   :  { %388 = vmatpush.msra.mxu1 %v387_v50  ;;  %459 = vmatpush.msra.mxu2 %v4745_v54  ;;  %v690_v50 = vand.u32 4294901760, %v4806_v8  ;;  %v686_v56 = vand.u32 4294901760, %v685_v57 }
  0x29   :  { %657 = vmatpush.msrb.mxu3 %v656_v45  ;;  %508 = vmatpush.msrb.mxu0 %v313_v44  ;;  %v674_v45 = vand.u32 4294901760, %v673_v49  ;;  %v680_v44 = vand.u32 4294901760, %v679_v58  ;;  %v94_v49 = vld [vmem:[%s8056_s1 + $0x98] sm:$0xff] }
  0x2a   :  { %612 = vmatpush.msrb.mxu2 %v4704_v2  ;;  %394 = vmatpush.msra.mxu1 %v393_v42 }
  0x2b   :  { %663 = vmatpush.msrb.mxu3 %v662_v7  ;;  %512 = vmatpush.msrb.mxu0 %v8195_v21 }
  0x2c   :  { %614 = vmatpush.msrb.mxu2 %v4706_v3  ;;  %400 = vmatpush.msra.mxu1 %v399_v19  ;;  %v691_v19 = vsub.f32 %v4806_v8, %v690_v50 }
  0x2d   :  { %669 = vmatpush.msrb.mxu3 %v668_v62  ;;  %516 = vmatpush.msrb.mxu0 %v8196_v35  ;;  %v93_v62 = vld [vmem:[%s8056_s1 + $0x90] sm:$0xff]  ;;  %v92_v35 = vld [vmem:[%s8056_s1 + $0x88] sm:$0xff] }
  0x2e   :  { %616 = vmatpush.msrb.mxu2 %v4717_v15  ;;  %406 = vmatpush.msra.mxu1 %v405_v60  ;;  %v99_v60 = vld [vmem:[%s8056_s1 + $0xc0] sm:$0xff] }
  0x2f   :  { %675 = vmatpush.msrb.mxu3 %v674_v45  ;;  %520 = vmatpush.msrb.mxu0 %v8197_v36  ;;  %v4940_v45 = vand.u32 4294901760, %v94_v49 }
  0x30   :  { %575 = vmatpush.msrb.mxu1 %v4510_v24  ;;  %618 = vmatpush.msrb.mxu2 %v4729_v29  ;;  %v692_v24 = vand.u32 4294901760, %v691_v19  ;;  %v4949_v19 = vand.u32 4294901760, %v93_v62 }
  0x31   :  { %681 = vmatpush.msrb.mxu3 %v680_v44  ;;  %524 = vmatpush.msrb.mxu0 %v8198_v38  ;;  %v4954_v38 = vsub.f32 %v94_v49, %v4940_v45 }
  0x32   :  { %577 = vmatpush.msrb.mxu1 %v4512_v25  ;;  %620 = vmatpush.msrb.mxu2 %v4748_v20  ;;  %v4851_v25 = vand.u32 4294901760, %v99_v60 }
  0x33   :  { %687 = vmatpush.msrb.mxu3 %v686_v56  ;;  %528 = vmatpush.msrb.mxu0 %v8199_v39  ;;  %v4962_v39 = vsub.f32 %v93_v62, %v4949_v19 }
  0x34   :  { %579 = vmatpush.msrb.mxu1 %v4523_v30  ;;  %622 = vmatpush.msrb.mxu2 %v4764_v11  ;;  %v8201_v30 = vand.u32 4294901760, %v4596_v61  ;;  %v8209_v61 = vand.u32 4294901760, %v4745_v54 }
  0x35   :  { %693 = vmatpush.msrb.mxu3 %v692_v24  ;;  %532 = vmatpush.msrb.mxu0 %v8200_v40  ;;  %v4959_v24 = vand.u32 4294901760, %v92_v35 }
  0x36   :  { %581 = vmatpush.msrb.mxu1 %v4525_v31  ;;  %624 = vmatpush.msrb.mxu2 %v4780_v28  ;;  %v8203_v31 = vand.u32 4294901760, %v4633_v14 }
  0x37   :  { %536 = vmatpush.msrb.mxu0 %v8201_v30  ;;  %v726_v30 = vand.u32 4294901760, %v4954_v38 }
  0x38   :  { %583 = vmatpush.msrb.mxu1 %v4527_v32  ;;  %626 = vmatpush.msrb.mxu2 %v4851_v25  ;;  %v8205_v32 = vand.u32 4294901760, %v4659_v23 }
  0x39   :  { %540 = vmatpush.msrb.mxu0 %v8202_v46 }
  0x3a   :  { %585 = vmatpush.msrb.mxu1 %v4540_v37  ;;  %v8206_v37 = vand.u32 4294901760, %v4669_v33 }
  0x3b   :  { %544 = vmatpush.msrb.mxu0 %v8203_v31  ;;  %v732_v31 = vand.u32 4294901760, %v4962_v39 }
  0x3c   :  { %587 = vmatpush.msrb.mxu1 %v4551_v41  ;;  %v8207_v41 = vand.u32 4294901760, %v4693_v59  ;;  %v95_v59 = vld [vmem:[%s8056_s1 + $0xa0] sm:$0xff] }
  0x3d   :  { %548 = vmatpush.msrb.mxu0 %v8204_v52  ;;  %v4925_v42 = vand.u32 4294901760, %v95_v59 }
  0x3e   :  { %589 = vmatpush.msrb.mxu1 %v4577_v53  ;;  %v8208_v53 = vand.u32 4294901760, %v4715_v12 }
  0x3f   :  { %552 = vmatpush.msrb.mxu0 %v8205_v32  ;;  %v4943_v57 = vsub.f32 %v95_v59, %v4925_v42  ;;  %v727_v32 = vsub.f32 %v4954_v38, %v726_v30 }
  0x40   :  { %591 = vmatpush.msrb.mxu1 %v4611_v5  ;;  %v98_v5 = vld [vmem:[%s8056_s1 + $0xb8] sm:$0xff] }
  0x41   :  { %556 = vmatpush.msrb.mxu0 %v8206_v37  ;;  %v720_v56 = vand.u32 4294901760, %v4943_v57  ;;  %v91_v37 = vld [vmem:[%s8056_s1 + $0x80] sm:$0xff] }
  0x42   :  { %593 = vmatpush.msrb.mxu1 %v4613_v6  ;;  %v4889_v6 = vand.u32 4294901760, %v98_v5 }
  0x43   :  { %560 = vmatpush.msrb.mxu0 %v8207_v41  ;;  %v721_v40 = vsub.f32 %v4943_v57, %v720_v56  ;;  %v733_v41 = vsub.f32 %v4962_v39, %v732_v31 }
  0x44   :  { %595 = vmatpush.msrb.mxu1 %v4621_v9  ;;  %v4892_v9 = vsub.f32 %v99_v60, %v4851_v25  ;;  %628 = vmatpush.msrb.mxu2 %v4889_v6  ;;  %v4902_v16 = vsub.f32 %v98_v5, %v4889_v6  ;;  %v728_v5 = vand.u32 4294901760, %v727_v32 }
  0x45   :  { %564 = vmatpush.msrb.mxu0 %v8208_v53  ;;  %v722_v52 = vand.u32 4294901760, %v721_v40  ;;  %v4980_v53 = vand.u32 4294901760, %v91_v37 }
  0x46   :  { %597 = vmatpush.msrb.mxu1 %v4623_v10  ;;  %v97_v10 = vld [vmem:[%s8056_s1 + $0xb0] sm:$0xff]  ;;  %v696_v13 = vand.u32 4294901760, %v4892_v9 }
  0x47   :  { %568 = vmatpush.msrb.mxu0 %v8209_v61  ;;  %v4899_v14 = vand.u32 4294901760, %v97_v10  ;;  %v4983_v61 = vsub.f32 %v92_v35, %v4959_v24 }
  0x48   :  { %599 = vmatpush.msrb.mxu1 %v4643_v17  ;;  %v96_v17 = vld [vmem:[%s8056_s1 + $0xa8] sm:$0xff]  ;;  %v697_v23 = vsub.f32 %v4892_v9, %v696_v13 }
  0x49   :  { %630 = vmatpush.msrb.mxu2 %v4899_v14  ;;  %v4912_v33 = vand.u32 4294901760, %v96_v17 }
  0x4a   :  { %601 = vmatpush.msrb.mxu1 %v4661_v26  ;;  %v702_v26 = vand.u32 4294901760, %v4902_v16 }
  0x4b   :  { %632 = vmatpush.msrb.mxu2 %v4912_v33  ;;  %v4928_v7 = vsub.f32 %v96_v17, %v4912_v33  ;;  %v738_v17 = vand.u32 4294901760, %v4983_v61 }
  0x4c   :  { %603 = vmatpush.msrb.mxu1 %v4671_v34  ;;  %v4915_v34 = vsub.f32 %v97_v10, %v4899_v14  ;;  %v703_v12 = vsub.f32 %v4902_v16, %v702_v26  ;;  %v734_v10 = vand.u32 4294901760, %v733_v41 }
  0x4d   :  { %634 = vmatpush.msrb.mxu2 %v4925_v42  ;;  %v714_v44 = vand.u32 4294901760, %v4928_v7  ;;  %v739_v59 = vsub.f32 %v4983_v61, %v738_v17 }
  0x4e   :  { %605 = vmatpush.msrb.mxu1 %v4702_v63  ;;  %v698_v63 = vand.u32 4294901760, %v697_v23  ;;  %v708_v54 = vand.u32 4294901760, %v4915_v34  ;;  %v704_v58 = vand.u32 4294901760, %v703_v12  ;;  %v4988_v23 = vsub.f32 %v91_v37, %v4980_v53 }
  0x4f   :  { %636 = vmatpush.msrb.mxu2 %v4940_v45  ;;  %v715_v60 = vsub.f32 %v4928_v7, %v714_v44  ;;  %v740_v12 = vand.u32 4294901760, %v739_v59  ;;  %v8212_v59 = vand.u32 4294901760, %v4727_v27 }
  0x50   :  { %699 = vmatpush.msrb.mxu3 %v698_v63  ;;  %v709_v21 = vsub.f32 %v4915_v34, %v708_v54  ;;  %v744_v63 = vand.u32 4294901760, %v4988_v23 }
  0x51   :  { %638 = vmatpush.msrb.mxu2 %v4949_v19  ;;  %v716_v46 = vand.u32 4294901760, %v715_v60 }
  0x52   :  { %705 = vmatpush.msrb.mxu3 %v704_v58  ;;  %v710_v36 = vand.u32 4294901760, %v709_v21  ;;  %v745_v49 = vsub.f32 %v4988_v23, %v744_v63 }
  0x53   :  { %640 = vmatpush.msrb.mxu2 %v4959_v24 }
  0x54   :  { %711 = vmatpush.msrb.mxu3 %v710_v36  ;;  %v746_v62 = vand.u32 4294901760, %v745_v49 }
  0x55   :  { %642 = vmatpush.msrb.mxu2 %v4980_v53 }
  0x56   :  { %717 = vmatpush.msrb.mxu3 %v716_v46 }
  0x58   :  { %723 = vmatpush.msrb.mxu3 %v722_v52 }
  0x5a   :  { %729 = vmatpush.msrb.mxu3 %v728_v5 }
  0x5c   :  { %735 = vmatpush.msrb.mxu3 %v734_v10 }
  0x5e   :  { %741 = vmatpush.msrb.mxu3 %v740_v12 }
  0x60   :  { %747 = vmatpush.msrb.mxu3 %v746_v62  ;;  %v8213_v62 = vand.u32 4294901760, %v4738_v51 }
  0x7f   :  { %v4997_v58 = vpop.xlane.xlu0 %37 }
  0x80   :  { %8210 = vst [vmem:[#allocation5_spill] sm:$0xff] %v4997_v58  ;;  %v39_v21 = vsub.f32 %v4461_v0, %v4997_v58  ;;  %v40_v35 = vsub.f32 %v4466_v1, %v4997_v58  ;;  %v8211_v1 = vand.u32 4294901760, %v4724_v22 }
  0x82   :  { %v51_v36 = vmul.f32 1.442695, %v39_v21  ;;  %v53_v60 = vmul.f32 1.442695, %v40_v35 }
  0x84   :  { %4380 = vpow2.f32 %v51_v36 }
  0x85   :  { %4382 = vpow2.f32 %v53_v60 }
  0x8a   :  { %v4381_v40 = vpop.eup %4380 }
  0x8b   :  { %v4383_v46 = vpop.eup %4382  ;;  %v302_v52 = vand.u32 4294901760, %v4381_v40 }
  0x8c   :  { %v5003_v32 = vand.u32 4294901760, %v4383_v46 }
  0x8d   :  { %408 = vmatmul.f32.vlgmr.msra.gmra.mxu1 %v302_v52  ;;  %v303_v37 = vsub.f32 %v4381_v40, %v302_v52 }
  0x8e   :  { %808 = vmatpush.msra.mxu1 %v4704_v2  ;;  %v5007_v41 = vsub.f32 %v4383_v46, %v5003_v32 }
  0x8f   :  { %462 = vmatmul.f32.vlgmr.msra.gmra.mxu2 %v303_v37  ;;  %v304_v0 = vand.u32 4294901760, %v303_v37 }
  0x90   :  { %810 = vmatpush.msra.mxu1 %v4706_v3  ;;  %849 = vmatpush.msra.mxu2 %v8211_v1  ;;  %v645_v5 = vand.u32 4294901760, %v5007_v41 }
  0x91   :  { %501 = vmatmul.f32.vlgmr.msra.gmra.mxu3 %v304_v0  ;;  %v305_v10 = vsub.f32 %v303_v37, %v304_v0  ;;  %v111_v37 = vld [vmem:[%s8056_s1 + $0x120] sm:$0xff] }
  0x92   :  { %812 = vmatpush.msra.mxu1 %v4717_v15  ;;  %853 = vmatpush.msra.mxu2 %v8212_v59  ;;  %v646_v12 = vsub.f32 %v5007_v41, %v645_v5  ;;  %v5212_v59 = vand.u32 4294901760, %v111_v37 }
  0x93   :  { %916 = vmatpush.msra.mxu3 %v4704_v2  ;;  %v306_v49 = vand.u32 4294901760, %v305_v10  ;;  %v122_v2 = vld [vmem:[%s8056_s1 + $0x178] sm:$0xff] }
  0x94   :  { %814 = vmatpush.msra.mxu1 %v4729_v29  ;;  %857 = vmatpush.msra.mxu2 %v8213_v62  ;;  %v647_v21 = vand.u32 4294901760, %v646_v12 }
  0x95   :  { %918 = vmatpush.msra.mxu3 %v4706_v3  ;;  %307 = vmatmul.f32.vlgmr.msra.gmra.mxu0 %v306_v49  ;;  %v121_v3 = vld [vmem:[%s8056_s1 + $0x170] sm:$0xff] }
  0x96   :  { %607 = vmatmul.f32.vlgmr.msrb.gmra.mxu1 %v302_v52  ;;  %755 = vmatpush.msra.mxu0 %v4724_v22  ;;  %v5056_v22 = vand.u32 4294901760, %v121_v3 }
  0x97   :  { %816 = vmatpush.msra.mxu1 %v4748_v20  ;;  %861 = vmatpush.msra.mxu2 %v672_v18 }
  0x98   :  { %920 = vmatpush.msra.mxu3 %v4717_v15  ;;  %648 = vmatmul.f32.vlgmr.msrb.gmra.mxu2 %v647_v21  ;;  %v120_v15 = vld [vmem:[%s8056_s1 + $0x168] sm:$0xff] }
  0x99   :  { %758 = vmatpush.msra.mxu0 %v4727_v27  ;;  %818 = vmatpush.msra.mxu1 %v4764_v11 }
  0x9a   :  { %865 = vmatpush.msra.mxu2 %v678_v43  ;;  %922 = vmatpush.msra.mxu3 %v4729_v29  ;;  %v5047_v29 = vand.u32 4294901760, %v122_v2  ;;  %v117_v43 = vld [vmem:[%s8056_s1 + $0x150] sm:$0xff] }
  0x9b   :  { %749 = vmatmul.f32.vlgmr.msrb.gmra.mxu3 %v5003_v32  ;;  %761 = vmatpush.msra.mxu0 %v4738_v51 }
  0x9c   :  { %820 = vmatpush.msra.mxu1 %v4780_v28  ;;  %869 = vmatpush.msra.mxu2 %v684_v55 }
  0x9d   :  { %924 = vmatpush.msra.mxu3 %v4748_v20  ;;  %764 = vmatpush.msra.mxu0 %v4762_v4  ;;  %v119_v4 = vld [vmem:[%s8056_s1 + $0x160] sm:$0xff]  ;;  %v5067_v20 = vsub.f32 %v122_v2, %v5047_v29  ;;  %v108_v2 = vld [vmem:[%s8056_s1 + $0x108] sm:$0xff] }
  0x9e   :  { %822 = vmatpush.msra.mxu1 %v4851_v25  ;;  %873 = vmatpush.msra.mxu2 %v690_v50  ;;  %v5082_v27 = vand.u32 4294901760, %v119_v4 }
  0x9f   :  { %926 = vmatpush.msra.mxu3 %v4764_v11  ;;  %570 = vmatmul.f32.vlgmr.msrb.gmra.mxu0 %v302_v52  ;;  %v5069_v11 = vand.u32 4294901760, %v120_v15 }
  0xa0   :  { %767 = vmatpush.msra.mxu0 %v4778_v48  ;;  %824 = vmatpush.msra.mxu1 %v4889_v6  ;;  %v118_v48 = vld [vmem:[%s8056_s1 + $0x158] sm:$0xff]  ;;  %v5108_v50 = vsub.f32 %v119_v4, %v5082_v27  ;;  %v5240_v4 = vsub.f32 %v111_v37, %v5212_v59 }
  0xa1   :  { %877 = vmatpush.msra.mxu2 %v696_v13  ;;  %928 = vmatpush.msra.mxu3 %v4780_v28  ;;  %v5080_v28 = vsub.f32 %v121_v3, %v5056_v22  ;;  %v5091_v51 = vsub.f32 %v120_v15, %v5069_v11  ;;  %v5093_v18 = vand.u32 4294901760, %v118_v48 }
  0xa2   :  { %770 = vmatpush.msra.mxu0 %v4793_v47  ;;  %826 = vmatpush.msra.mxu1 %v4899_v14  ;;  %v8093_v47 = vand.u32 4294901760, %v5067_v20 }
  0xa3   :  { %881 = vmatpush.msra.mxu2 %v702_v26  ;;  %930 = vmatpush.msra.mxu3 %v4851_v25  ;;  %v8092_v55 = vand.u32 4294901760, %v5080_v28  ;;  %v5112_v25 = vand.u32 4294901760, %v117_v43  ;;  %v8091_v13 = vand.u32 4294901760, %v5091_v51 }
  0xa4   :  { %773 = vmatpush.msra.mxu0 %v4806_v8  ;;  %828 = vmatpush.msra.mxu1 %v4912_v33  ;;  %v116_v8 = vld [vmem:[%s8056_s1 + $0x148] sm:$0xff] }
  0xa5   :  { %885 = vmatpush.msra.mxu2 %v708_v54  ;;  %932 = vmatpush.msra.mxu3 %v4889_v6  ;;  %v115_v6 = vld [vmem:[%s8056_s1 + $0x140] sm:$0xff]  ;;  %v1002_v26 = vsub.f32 %v5080_v28, %v8092_v55 }
  0xa6   :  { %776 = vmatpush.msra.mxu0 %v4892_v9  ;;  %830 = vmatpush.msra.mxu1 %v4925_v42  ;;  %v996_v9 = vsub.f32 %v5067_v20, %v8093_v47  ;;  %v5138_v54 = vand.u32 4294901760, %v115_v6 }
  0xa7   :  { %889 = vmatpush.msra.mxu2 %v714_v44  ;;  %934 = vmatpush.msra.mxu3 %v4899_v14  ;;  %v5125_v14 = vsub.f32 %v118_v48, %v5093_v18  ;;  %v114_v44 = vld [vmem:[%s8056_s1 + $0x138] sm:$0xff] }
  0xa8   :  { %779 = vmatpush.msra.mxu0 %v4902_v16  ;;  %832 = vmatpush.msra.mxu1 %v4940_v45  ;;  %v5127_v16 = vand.u32 4294901760, %v116_v8  ;;  %v5172_v60 = vsub.f32 %v115_v6, %v5138_v54 }
  0xa9   :  { %893 = vmatpush.msra.mxu2 %v720_v56  ;;  %936 = vmatpush.msra.mxu3 %v4912_v33  ;;  %v8090_v33 = vand.u32 4294901760, %v5108_v50  ;;  %v1008_v56 = vsub.f32 %v5091_v51, %v8091_v13  ;;  %v129_v13 = vld [vmem:[%s8056_s1 + $0x1b0] sm:$0xff] }
  0xaa   :  { %782 = vmatpush.msra.mxu0 %v4915_v34  ;;  %834 = vmatpush.msra.mxu1 %v4949_v19  ;;  %v5146_v34 = vsub.f32 %v117_v43, %v5112_v25  ;;  %v5156_v35 = vsub.f32 %v116_v8, %v5127_v16  ;;  %v8085_v1 = vand.u32 4294901760, %v5172_v60  ;;  %v107_v43 = vld [vmem:[%s8056_s1 + $0x100] sm:$0xff]  ;;  %v4406_v8 = vld [vmem:[%s8055_s0 + $0x10] sm:$0xff] }
  0xab   :  { %897 = vmatpush.msra.mxu2 %v726_v30  ;;  %938 = vmatpush.msra.mxu3 %v4925_v42  ;;  %v997_v42 = vand.u32 4294901760, %v996_v9  ;;  %v8088_v30 = vand.u32 4294901760, %v5125_v14  ;;  %v1014_v36 = vsub.f32 %v5108_v50, %v8090_v33  ;;  %v1009_v40 = vand.u32 4294901760, %v1008_v56 }
  0xac   :  { %785 = vmatpush.msra.mxu0 %v4928_v7  ;;  %836 = vmatpush.msra.mxu1 %v4959_v24  ;;  %v113_v7 = vld [vmem:[%s8056_s1 + $0x130] sm:$0xff]  ;;  %v8086_v52 = vand.u32 4294901760, %v5156_v35  ;;  %v1038_v21 = vsub.f32 %v5172_v60, %v8085_v1  ;;  %v41_v6 = vsub.f32 %v4406_v8, %v4997_v58  ;;  %v8080_v56 = vand.u32 4294901760, %v5240_v4  ;;  %v130_v1 = vld [vmem:[%s8056_s1 + $0x1b8] sm:$0xff] }
  0xad   :  { %901 = vmatpush.msra.mxu2 %v732_v31  ;;  %940 = vmatpush.msra.mxu3 %v4940_v45  ;;  %v5163_v31 = vand.u32 4294901760, %v114_v44  ;;  %v1003_v45 = vand.u32 4294901760, %v1002_v26  ;;  %v1020_v46 = vsub.f32 %v5125_v14, %v8088_v30  ;;  %v5430_v55 = vand.u32 4294901760, %v130_v1 }
  0xae   :  { %788 = vmatpush.msra.mxu0 %v4943_v57  ;;  %838 = vmatpush.msra.mxu1 %v4980_v53  ;;  %v112_v57 = vld [vmem:[%s8056_s1 + $0x128] sm:$0xff]  ;;  %v1032_v49 = vsub.f32 %v5156_v35, %v8086_v52  ;;  %v4407_v52 = vld [vmem:[%s8055_s0 + $0x18] sm:$0xff] }
  0xaf   :  { %905 = vmatpush.msra.mxu2 %v738_v17  ;;  %942 = vmatpush.msra.mxu3 %v4949_v19  ;;  %v8087_v17 = vand.u32 4294901760, %v5146_v34  ;;  %v5181_v19 = vand.u32 4294901760, %v113_v7  ;;  %v5197_v0 = vand.u32 4294901760, %v112_v57  ;;  %v1021_v12 = vand.u32 4294901760, %v1020_v46 }
  0xb0   :  { %842 = vmatmul.f32.vlgmr.msra.gmra.mxu1 %v645_v5  ;;  %791 = vmatpush.msra.mxu0 %v4954_v38  ;;  %v5195_v38 = vsub.f32 %v114_v44, %v5163_v31  ;;  %v110_v5 = vld [vmem:[%s8056_s1 + $0x118] sm:$0xff]  ;;  %v1033_v48 = vand.u32 4294901760, %v1032_v49  ;;  %v5261_v44 = vand.u32 4294901760, %v108_v2 }
  0xb1   :  { %998 = vmatpush.msrb.mxu1 %v997_v42  ;;  %909 = vmatpush.msra.mxu2 %v744_v63  ;;  %v1015_v63 = vand.u32 4294901760, %v1014_v36  ;;  %v5210_v10 = vsub.f32 %v113_v7, %v5181_v19  ;;  %v5225_v62 = vsub.f32 %v112_v57, %v5197_v0  ;;  %v1039_v42 = vand.u32 4294901760, %v1038_v21  ;;  %v138_v49 = vld [vmem:[%s8056_s1 + $0x1f8] sm:$0xff] }
  0xb2   :  { %944 = vmatpush.msra.mxu3 %v4959_v24  ;;  %911 = vmatmul.f32.vlgmr.msra.gmra.mxu2 %v5003_v32  ;;  %v1026_v24 = vsub.f32 %v5146_v34, %v8087_v17  ;;  %v55_v36 = vmul.f32 1.442695, %v41_v6  ;;  %v5283_v37 = vsub.f32 %v108_v2, %v5261_v44  ;;  %v5315_v6 = vand.u32 4294901760, %v138_v49 }
  0xb3   :  { %1004 = vmatpush.msrb.mxu1 %v1003_v45  ;;  %1096 = vmatpush.msrb.mxu2 %v5067_v20  ;;  %v8082_v15 = vand.u32 4294901760, %v5210_v10  ;;  %v8081_v9 = vand.u32 4294901760, %v5225_v62  ;;  %v5273_v45 = vand.u32 4294901760, %v107_v43  ;;  %v42_v17 = vsub.f32 %v4407_v52, %v4997_v58 }
  0xb4   :  { %794 = vmatpush.msra.mxu0 %v4962_v39  ;;  %946 = vmatpush.msra.mxu3 %v4980_v53  ;;  %v109_v39 = vld [vmem:[%s8056_s1 + $0x110] sm:$0xff]  ;;  %v8084_v53 = vand.u32 4294901760, %v5195_v38  ;;  %v1027_v3 = vand.u32 4294901760, %v1026_v24  ;;  %4384 = vpow2.f32 %v55_v36  ;;  %v8077_v2 = vand.u32 4294901760, %v5283_v37  ;;  %v136_v36 = vld [vmem:[%s8056_s1 + $0x1e8] sm:$0xff] }
  0xb5   :  { %948 = vmatmul.f32.vlgmr.msra.gmra.mxu3 %v5003_v32  ;;  %1010 = vmatpush.msrb.mxu1 %v1009_v40  ;;  %v5227_v32 = vand.u32 4294901760, %v110_v5  ;;  %v1056_v40 = vsub.f32 %v5225_v62, %v8081_v9  ;;  %v57_v30 = vmul.f32 1.442695, %v42_v17 }
  0xb6   :  { %1099 = vmatpush.msrb.mxu2 %v5080_v28  ;;  %1149 = vmatpush.msrb.mxu3 %v5047_v29 }
  0xb7   :  { %797 = vmatpush.msra.mxu0 %v4983_v61  ;;  %1016 = vmatpush.msrb.mxu1 %v1015_v63  ;;  %v5242_v61 = vand.u32 4294901760, %v109_v39  ;;  %v5259_v26 = vsub.f32 %v110_v5, %v5227_v32  ;;  %v1062_v5 = vsub.f32 %v5240_v4, %v8080_v56  ;;  %4386 = vpow2.f32 %v57_v30  ;;  %v125_v30 = vld [vmem:[%s8056_s1 + $0x190] sm:$0xff] }
  0xb8   :  { %1102 = vmatpush.msrb.mxu2 %v5091_v51  ;;  %1151 = vmatpush.msrb.mxu3 %v5056_v22 }
  0xb9   :  { %800 = vmatpush.msra.mxu0 %v4988_v23  ;;  %1022 = vmatpush.msrb.mxu1 %v1021_v12  ;;  %v1044_v23 = vsub.f32 %v5195_v38, %v8084_v53  ;;  %v5271_v7 = vsub.f32 %v109_v39, %v5242_v61  ;;  %v8079_v46 = vand.u32 4294901760, %v5259_v26  ;;  %v5293_v12 = vsub.f32 %v107_v43, %v5273_v45 }
  0xba   :  { %803 = vmatmul.f32.vlgmr.msra.gmra.mxu0 %v5007_v41  ;;  %1105 = vmatpush.msrb.mxu2 %v5108_v50  ;;  %v1050_v41 = vsub.f32 %v5210_v10, %v8082_v15  ;;  %v1057_v39 = vand.u32 4294901760, %v1056_v40  ;;  %v131_v15 = vld [vmem:[%s8056_s1 + $0x1c0] sm:$0xff] }
  0xbb   :  { %953 = vmatpush.msrb.mxu0 %v5047_v29  ;;  %1153 = vmatpush.msrb.mxu3 %v5069_v11  ;;  %v1045_v57 = vand.u32 4294901760, %v1044_v23  ;;  %v8078_v24 = vand.u32 4294901760, %v5271_v7  ;;  %8214 = vst [vmem:[#allocation6_spill] sm:$0xff] %v5293_v12  ;;  %v1068_v21 = vsub.f32 %v5259_v26, %v8079_v46  ;;  %v8076_v8 = vand.u32 4294901760, %v5293_v12 }
  0xbc   :  { %1028 = vmatpush.msrb.mxu1 %v1027_v3  ;;  %1108 = vmatpush.msrb.mxu2 %v5125_v14  ;;  %v1051_v63 = vand.u32 4294901760, %v1050_v41  ;;  %v137_v3 = vld [vmem:[%s8056_s1 + $0x1f0] sm:$0xff] }
  0xbd   :  { %955 = vmatpush.msrb.mxu0 %v5056_v22  ;;  %1155 = vmatpush.msrb.mxu3 %v5082_v27  ;;  %v1074_v43 = vsub.f32 %v5271_v7, %v8078_v24  ;;  %v1069_v23 = vand.u32 4294901760, %v1068_v21  ;;  %v5323_v41 = vand.u32 4294901760, %v137_v3  ;;  %v5342_v21 = vand.u32 4294901760, %v136_v36  ;;  %v133_v24 = vld [vmem:[%s8056_s1 + $0x1d0] sm:$0xff] }
  0xbe   :  { %1034 = vmatpush.msrb.mxu1 %v1033_v48  ;;  %1111 = vmatpush.msrb.mxu2 %v5146_v34  ;;  %v1063_v48 = vand.u32 4294901760, %v1062_v5  ;;  %v5335_v5 = vsub.f32 %v138_v49, %v5315_v6  ;;  %v5372_v9 = vand.u32 4294901760, %v133_v24 }
  0xbf   :  { %957 = vmatpush.msrb.mxu0 %v5069_v11  ;;  %1157 = vmatpush.msrb.mxu3 %v5093_v18  ;;  %v1075_v40 = vand.u32 4294901760, %v1074_v43 }
  0xc0   :  { %1040 = vmatpush.msrb.mxu1 %v1039_v42  ;;  %1114 = vmatpush.msrb.mxu2 %v5156_v35  ;;  %v1080_v42 = vsub.f32 %v5283_v37, %v8077_v2  ;;  %v5403_v53 = vsub.f32 %v133_v24, %v5372_v9 }
  0xc1   :  { %959 = vmatpush.msrb.mxu0 %v5082_v27  ;;  %1159 = vmatpush.msrb.mxu3 %v5112_v25 }
  0xc2   :  { %1046 = vmatpush.msrb.mxu1 %v1045_v57  ;;  %1117 = vmatpush.msrb.mxu2 %v5172_v60  ;;  %v4385_v57 = vpop.eup %4384  ;;  %v1081_v43 = vand.u32 4294901760, %v1080_v42  ;;  %v8083_v42 = vand.u32 4294901760, %v5335_v5  ;;  %v8098_v33 = vand.u32 4294901760, %v5403_v53 }
  0xc3   :  { %961 = vmatpush.msrb.mxu0 %v5093_v18  ;;  %1161 = vmatpush.msrb.mxu3 %v5127_v16  ;;  %v5348_v49 = vand.u32 4294901760, %v4385_v57 }
  0xc4   :  { %1052 = vmatpush.msrb.mxu1 %v1051_v63  ;;  %1120 = vmatpush.msrb.mxu2 %v5195_v38  ;;  %v1086_v63 = vsub.f32 %v5293_v12, %v8076_v8  ;;  %v5351_v8 = vsub.f32 %v137_v3, %v5323_v41  ;;  %v5367_v3 = vsub.f32 %v136_v36, %v5342_v21 }
  0xc5   :  { %963 = vmatpush.msrb.mxu0 %v5112_v25  ;;  %1163 = vmatpush.msrb.mxu3 %v5138_v54  ;;  %v985_v56 = vsub.f32 %v4385_v57, %v5348_v49  ;;  %v1337_v57 = vsub.f32 %v5335_v5, %v8083_v42 }
  0xc6   :  { %1058 = vmatpush.msrb.mxu1 %v1057_v39  ;;  %1123 = vmatpush.msrb.mxu2 %v5210_v10  ;;  %v135_v39 = vld [vmem:[%s8056_s1 + $0x1e0] sm:$0xff] }
  0xc7   :  { %965 = vmatpush.msrb.mxu0 %v5127_v16  ;;  %1165 = vmatpush.msrb.mxu3 %v5163_v31  ;;  %v5355_v2 = vand.u32 4294901760, %v135_v39  ;;  %v986_v42 = vand.u32 4294901760, %v985_v56  ;;  %v1338_v24 = vand.u32 4294901760, %v1337_v57 }
  0xc8   :  { %1064 = vmatpush.msrb.mxu1 %v1063_v48  ;;  %1126 = vmatpush.msrb.mxu2 %v5225_v62  ;;  %v134_v48 = vld [vmem:[%s8056_s1 + $0x1d8] sm:$0xff] }
  0xc9   :  { %967 = vmatpush.msrb.mxu0 %v5138_v54  ;;  %1167 = vmatpush.msrb.mxu3 %v5181_v19  ;;  %v5362_v46 = vand.u32 4294901760, %v134_v48  ;;  %v5380_v36 = vsub.f32 %v135_v39, %v5355_v2  ;;  %v8094_v39 = vand.u32 4294901760, %v5367_v3  ;;  %v987_v47 = vsub.f32 %v985_v56, %v986_v42 }
  0xca   :  { %1070 = vmatpush.msrb.mxu1 %v1069_v23  ;;  %1129 = vmatpush.msrb.mxu2 %v5240_v4  ;;  %v1087_v23 = vand.u32 4294901760, %v1086_v63  ;;  %v132_v63 = vld [vmem:[%s8056_s1 + $0x1c8] sm:$0xff] }
  0xcb   :  { %969 = vmatpush.msrb.mxu0 %v5163_v31  ;;  %1169 = vmatpush.msrb.mxu3 %v5197_v0 }
  0xcc   :  { %1076 = vmatpush.msrb.mxu1 %v1075_v40  ;;  %1132 = vmatpush.msrb.mxu2 %v5259_v26  ;;  %v8089_v40 = vand.u32 4294901760, %v5351_v8 }
  0xcd   :  { %971 = vmatpush.msrb.mxu0 %v5181_v19  ;;  %1171 = vmatpush.msrb.mxu3 %v5212_v59 }
  0xce   :  { %1082 = vmatpush.msrb.mxu1 %v1081_v43  ;;  %1135 = vmatpush.msrb.mxu2 %v5271_v7  ;;  %v5387_v43 = vsub.f32 %v134_v48, %v5362_v46  ;;  %v1343_v48 = vsub.f32 %v5351_v8, %v8089_v40  ;;  %v5415_v40 = vand.u32 4294901760, %v131_v15 }
  0xcf   :  { %973 = vmatpush.msrb.mxu0 %v5197_v0  ;;  %1173 = vmatpush.msrb.mxu3 %v5227_v32 }
  0xd0   :  { %1088 = vmatpush.msrb.mxu1 %v1087_v23  ;;  %1138 = vmatpush.msrb.mxu2 %v5283_v37  ;;  %v5395_v23 = vand.u32 4294901760, %v132_v63  ;;  %v1344_v57 = vand.u32 4294901760, %v1343_v48  ;;  %v5443_v58 = vsub.f32 %v131_v15, %v5415_v40 }
  0xd1   :  { %975 = vmatpush.msrb.mxu0 %v5212_v59  ;;  %1175 = vmatpush.msrb.mxu3 %v5242_v61 }
  0xd2   :  { %1090 = vmatmul.f32.vlgmr.msrb.gmra.mxu1 %v5348_v49  ;;  %1141 = vmatpush.msrb.mxu2 %v5293_v12  ;;  %v5428_v52 = vsub.f32 %v132_v63, %v5395_v23  ;;  %v8215_v63 = vand.u32 4294901760, %v5380_v36  ;;  %v5445_v12 = vand.u32 4294901760, %v129_v13 }
  0xd3   :  { %1257 = vmatpush.msra.mxu1 %v5047_v29  ;;  %977 = vmatpush.msrb.mxu0 %v5227_v32  ;;  %v1349_v29 = vsub.f32 %v5367_v3, %v8094_v39 }
  0xd4   :  { %1177 = vmatpush.msrb.mxu3 %v5261_v44  ;;  %1144 = vmatmul.f32.vlgmr.msrb.gmra.mxu2 %v985_v56  ;;  %v1355_v39 = vsub.f32 %v5380_v36, %v8215_v63  ;;  %v8216_v56 = vand.u32 4294901760, %v5387_v43  ;;  %v5473_v15 = vsub.f32 %v129_v13, %v5445_v12  ;;  %v5503_v13 = vand.u32 4294901760, %v125_v30 }
  0xd5   :  { %1259 = vmatpush.msra.mxu1 %v5056_v22  ;;  %1294 = vmatpush.msra.mxu2 %v5315_v6  ;;  %v128_v22 = vld [vmem:[%s8056_s1 + $0x1a8] sm:$0xff]  ;;  %v1350_v17 = vand.u32 4294901760, %v1349_v29 }
  0xd6   :  { %979 = vmatpush.msrb.mxu0 %v5242_v61  ;;  %1179 = vmatpush.msrb.mxu3 %v5273_v45  ;;  %v1361_v48 = vsub.f32 %v5387_v43, %v8216_v56  ;;  %v5460_v63 = vand.u32 4294901760, %v128_v22  ;;  %v1367_v56 = vsub.f32 %v5403_v53, %v8098_v33  ;;  %v8218_v33 = vand.u32 4294901760, %v5067_v20 }
  0xd7   :  { %1183 = vmatmul.f32.vlgmr.msrb.gmra.mxu3 %v986_v42  ;;  %1261 = vmatpush.msra.mxu1 %v5069_v11  ;;  %v127_v11 = vld [vmem:[%s8056_s1 + $0x1a0] sm:$0xff]  ;;  %v5458_v42 = vsub.f32 %v130_v1, %v5430_v55  ;;  %v1356_v1 = vand.u32 4294901760, %v1355_v39  ;;  %v8220_v20 = vand.u32 4294901760, %v5080_v28  ;;  %v8222_v28 = vand.u32 4294901760, %v5091_v51 }
  0xd8   :  { %1296 = vmatpush.msra.mxu2 %v5323_v41  ;;  %1339 = vmatpush.msra.mxu3 %v1338_v24  ;;  %v988_v24 = vand.u32 4294901760, %v987_v47  ;;  %v5475_v47 = vand.u32 4294901760, %v127_v11  ;;  %v5488_v29 = vsub.f32 %v128_v22, %v5460_v63 }
  0xd9   :  { %981 = vmatpush.msrb.mxu0 %v5261_v44  ;;  %1263 = vmatpush.msra.mxu1 %v5082_v27  ;;  %8217 = vst [vmem:[#allocation7_spill] sm:$0xff] %v5458_v42  ;;  %v126_v27 = vld [vmem:[%s8056_s1 + $0x198] sm:$0xff] }
  0xda   :  { %1298 = vmatpush.msra.mxu2 %v5342_v21  ;;  %1345 = vmatpush.msra.mxu3 %v1344_v57  ;;  %v1362_v57 = vand.u32 4294901760, %v1361_v48  ;;  %v1368_v48 = vand.u32 4294901760, %v1367_v56  ;;  %v5501_v22 = vsub.f32 %v127_v11, %v5475_v47  ;;  %v4387_v56 = vpop.eup %4386 }
  0xdb   :  { %983 = vmatpush.msrb.mxu0 %v5273_v45  ;;  %1265 = vmatpush.msra.mxu1 %v5093_v18  ;;  %v8219_v18 = vand.u32 4294901760, %v5428_v52 }
  0xdc   :  { %989 = vmatmul.f32.vlgmr.msrb.gmra.mxu0 %v988_v24  ;;  %1300 = vmatpush.msra.mxu2 %v5355_v2  ;;  %v5490_v24 = vand.u32 4294901760, %v126_v27 }
  0xdd   :  { %1190 = vmatpush.msra.mxu0 %v8218_v33  ;;  %1351 = vmatpush.msra.mxu3 %v1350_v17  ;;  %v1373_v39 = vsub.f32 %v5428_v52, %v8219_v18  ;;  %v8221_v33 = vand.u32 4294901760, %v5443_v58 }
  0xde   :  { %1267 = vmatpush.msra.mxu1 %v5112_v25  ;;  %1302 = vmatpush.msra.mxu2 %v5362_v46  ;;  %v124_v25 = vld [vmem:[%s8056_s1 + $0x188] sm:$0xff]  ;;  %v5517_v18 = vsub.f32 %v126_v27, %v5490_v24 }
  0xdf   :  { %1194 = vmatpush.msra.mxu0 %v8220_v20  ;;  %1357 = vmatpush.msra.mxu3 %v1356_v1  ;;  %v1379_v17 = vsub.f32 %v5443_v58, %v8221_v33  ;;  %v1374_v1 = vand.u32 4294901760, %v1373_v39  ;;  %v8223_v20 = vand.u32 4294901760, %v5458_v42  ;;  %v5524_v51 = vand.u32 4294901760, %v124_v25 }
  0xe0   :  { %1269 = vmatpush.msra.mxu1 %v5127_v16  ;;  %1304 = vmatpush.msra.mxu2 %v5372_v9  ;;  %v123_v16 = vld [vmem:[%s8056_s1 + $0x180] sm:$0xff]  ;;  %v5533_v33 = vsub.f32 %v125_v30, %v5503_v13  ;;  %v1408_v30 = vand.u32 4294901760, %v5517_v18 }
  0xe1   :  { %1198 = vmatpush.msra.mxu0 %v8222_v28  ;;  %1363 = vmatpush.msra.mxu3 %v1362_v57  ;;  %v1385_v11 = vsub.f32 %v5458_v42, %v8223_v20  ;;  %v8224_v57 = vand.u32 4294901760, %v5108_v50  ;;  %v1380_v39 = vand.u32 4294901760, %v1379_v17  ;;  %v8225_v28 = vand.u32 4294901760, %v5473_v15 }
  0xe2   :  { %1271 = vmatpush.msra.mxu1 %v5138_v54  ;;  %1306 = vmatpush.msra.mxu2 %v5395_v23  ;;  %v1402_v20 = vand.u32 4294901760, %v5501_v22  ;;  %v5537_v54 = vand.u32 4294901760, %v123_v16  ;;  %v5539_v42 = vand.u32 4294901760, %v4387_v56  ;;  %v8226_v50 = vand.u32 4294901760, %v5125_v14 }
  0xe3   :  { %1202 = vmatpush.msra.mxu0 %v8224_v57  ;;  %1369 = vmatpush.msra.mxu3 %v1368_v48  ;;  %v1391_v27 = vsub.f32 %v5473_v15, %v8225_v28  ;;  %v1386_v48 = vand.u32 4294901760, %v1385_v11  ;;  %v8227_v17 = vand.u32 4294901760, %v5488_v29  ;;  %v8228_v28 = vand.u32 4294901760, %v5146_v34 }
  0xe4   :  { %1273 = vmatpush.msra.mxu1 %v5163_v31  ;;  %1308 = vmatpush.msra.mxu2 %v5415_v40  ;;  %v5550_v31 = vsub.f32 %v124_v25, %v5524_v51  ;;  %v1414_v11 = vand.u32 4294901760, %v5533_v33  ;;  %v5564_v25 = vsub.f32 %v123_v16, %v5537_v54  ;;  %v8229_v34 = vand.u32 4294901760, %v5156_v35 }
  0xe5   :  { %1206 = vmatpush.msra.mxu0 %v8226_v50  ;;  %1375 = vmatpush.msra.mxu3 %v1374_v1  ;;  %v1397_v57 = vsub.f32 %v5488_v29, %v8227_v17  ;;  %v1392_v14 = vand.u32 4294901760, %v1391_v27  ;;  %v1403_v1 = vsub.f32 %v5501_v22, %v1402_v20  ;;  %v1409_v27 = vsub.f32 %v5517_v18, %v1408_v30 }
  0xe6   :  { %1275 = vmatpush.msra.mxu1 %v5181_v19  ;;  %1310 = vmatpush.msra.mxu2 %v5430_v55  ;;  %v5561_v19 = vsub.f32 %v4387_v56, %v5539_v42  ;;  %v8230_v56 = vand.u32 4294901760, %v5172_v60  ;;  %v1415_v35 = vsub.f32 %v5533_v33, %v1414_v11 }
  0xe7   :  { %1210 = vmatpush.msra.mxu0 %v8228_v28  ;;  %1381 = vmatpush.msra.mxu3 %v1380_v39  ;;  %v1398_v39 = vand.u32 4294901760, %v1397_v57  ;;  %v1404_v16 = vand.u32 4294901760, %v1403_v1  ;;  %v1410_v60 = vand.u32 4294901760, %v1409_v27  ;;  %v8233_v28 = vand.u32 4294901760, %v5225_v62 }
  0xe8   :  { %1277 = vmatpush.msra.mxu1 %v5197_v0  ;;  %1312 = vmatpush.msra.mxu2 %v5445_v12  ;;  %v1420_v0 = vand.u32 4294901760, %v5550_v31  ;;  %v1327_v50 = vand.u32 4294901760, %v5561_v19  ;;  %v1416_v57 = vand.u32 4294901760, %v1415_v35  ;;  %v8235_v62 = vand.u32 4294901760, %v5259_v26 }
  0xe9   :  { %1214 = vmatpush.msra.mxu0 %v8229_v34  ;;  %1387 = vmatpush.msra.mxu3 %v1386_v48  ;;  %v8231_v48 = vand.u32 4294901760, %v5195_v38  ;;  %v8238_v34 = vand.u32 4294901760, %v5351_v8  ;;  %v8239_v26 = vand.u32 4294901760, %v5283_v37  ;;  %v8244_v37 = vand.u32 4294901760, %v5387_v43 }
  0xea   :  { %1279 = vmatpush.msra.mxu1 %v5212_v59  ;;  %1314 = vmatpush.msra.mxu2 %v5460_v63  ;;  %v1426_v59 = vand.u32 4294901760, %v5564_v25  ;;  %v1421_v17 = vsub.f32 %v5550_v31, %v1420_v0  ;;  %v1328_v38 = vsub.f32 %v5561_v19, %v1327_v50 }
  0xeb   :  { %1218 = vmatpush.msra.mxu0 %v8230_v56  ;;  %1393 = vmatpush.msra.mxu3 %v1392_v14  ;;  %v8243_v56 = vand.u32 4294901760, %v5380_v36 }
  0xec   :  { %1281 = vmatpush.msra.mxu1 %v5227_v32  ;;  %1316 = vmatpush.msra.mxu2 %v5475_v47  ;;  %v8232_v32 = vand.u32 4294901760, %v5210_v10  ;;  %v1422_v10 = vand.u32 4294901760, %v1421_v17  ;;  %v1329_v14 = vand.u32 4294901760, %v1328_v38 }
  0xed   :  { %1222 = vmatpush.msra.mxu0 %v8231_v48  ;;  %1399 = vmatpush.msra.mxu3 %v1398_v39  ;;  %v8240_v39 = vand.u32 4294901760, %v5367_v3  ;;  %v150_v48 = vld [vmem:[%s8056_s1 + $0x258] sm:$0xff] }
  0xee   :  { %1283 = vmatpush.msra.mxu1 %v5242_v61  ;;  %1318 = vmatpush.msra.mxu2 %v5490_v24  ;;  %v1427_v61 = vsub.f32 %v5564_v25, %v1426_v59 }
  0xef   :  { %1226 = vmatpush.msra.mxu0 %v8232_v32  ;;  %1405 = vmatpush.msra.mxu3 %v1404_v16  ;;  %v149_v32 = vld [vmem:[%s8056_s1 + $0x250] sm:$0xff] }
  0xf0   :  { %1285 = vmatpush.msra.mxu1 %v5261_v44  ;;  %1320 = vmatpush.msra.mxu2 %v5503_v13  ;;  %v8234_v44 = vand.u32 4294901760, %v5240_v4  ;;  %v1428_v1 = vand.u32 4294901760, %v1427_v61  ;;  %v8237_v4 = vand.u32 4294901760, %v5271_v7  ;;  %v8241_v7 = vld [vmem:[#allocation6_spill] sm:$0xff]  ;;  %v5718_v61 = vand.u32 4294901760, %v149_v32 }
  0xf1   :  { %1230 = vmatpush.msra.mxu0 %v8233_v28  ;;  %1411 = vmatpush.msra.mxu3 %v1410_v60  ;;  %v8242_v27 = vand.u32 4294901760, %v8241_v7  ;;  %v8250_v60 = vand.u32 4294901760, %v5473_v15  ;;  %v147_v28 = vld [vmem:[%s8056_s1 + $0x240] sm:$0xff] }
  0xf2   :  { %1287 = vmatpush.msra.mxu1 %v5273_v45  ;;  %1322 = vmatpush.msra.mxu2 %v5524_v51  ;;  %v8236_v45 = vand.u32 4294901760, %v5335_v5 }
  0xf3   :  { %1234 = vmatpush.msra.mxu0 %v8234_v44  ;;  %1417 = vmatpush.msra.mxu3 %v1416_v57  ;;  %v8251_v57 = vand.u32 4294901760, %v5488_v29 }
  0xf4   :  { %1289 = vmatmul.f32.vlgmr.msra.gmra.mxu1 %v5348_v49  ;;  %1324 = vmatpush.msra.mxu2 %v5537_v54 }
  0xf5   :  { %1490 = vmatpush.msrb.mxu1 %v5315_v6  ;;  %1238 = vmatpush.msra.mxu0 %v8235_v62 }
  0xf6   :  { %1423 = vmatpush.msra.mxu3 %v1422_v10  ;;  %1330 = vmatmul.f32.vlgmr.msra.gmra.mxu2 %v1329_v14  ;;  %v5743_v14 = vand.u32 4294901760, %v147_v28 }
  0xf7   :  { %1492 = vmatpush.msrb.mxu1 %v5323_v41  ;;  %1531 = vmatpush.msrb.mxu2 %v8236_v45 }
  0xf8   :  { %1242 = vmatpush.msra.mxu0 %v8237_v4  ;;  %1429 = vmatpush.msra.mxu3 %v1428_v1  ;;  %v146_v1 = vld [vmem:[%s8056_s1 + $0x238] sm:$0xff] }
  0xf9   :  { %1431 = vmatmul.f32.vlgmr.msra.gmra.mxu3 %v5539_v42  ;;  %1494 = vmatpush.msrb.mxu1 %v5342_v21 }
  0xfa   :  { %1535 = vmatpush.msrb.mxu2 %v8238_v34  ;;  %1598 = vmatpush.msrb.mxu3 %v5315_v6  ;;  %v154_v6 = vld [vmem:[%s8056_s1 + $0x278] sm:$0xff]  ;;  %v5777_v34 = vsub.f32 %v147_v28, %v5743_v14 }
  0xfb   :  { %1246 = vmatpush.msra.mxu0 %v8239_v26  ;;  %1496 = vmatpush.msrb.mxu1 %v5355_v2  ;;  %v144_v26 = vld [vmem:[%s8056_s1 + $0x228] sm:$0xff] }
  0xfc   :  { %1539 = vmatpush.msrb.mxu2 %v8240_v39  ;;  %1600 = vmatpush.msrb.mxu3 %v5323_v41  ;;  %v8245_v41 = vand.u32 4294901760, %v5403_v53 }
  0xfd   :  { %1250 = vmatpush.msra.mxu0 %v8242_v27  ;;  %1498 = vmatpush.msrb.mxu1 %v5362_v46  ;;  %v5802_v27 = vand.u32 4294901760, %v144_v26 }
  0xfe   :  { %1252 = vmatmul.f32.vlgmr.msra.gmra.mxu0 %v5348_v49  ;;  %1543 = vmatpush.msrb.mxu2 %v8243_v56  ;;  %v8110_v56 = vand.u32 4294901760, %v5777_v34 }
  0xff   :  { %1437 = vmatpush.msrb.mxu0 %v5335_v5  ;;  %1602 = vmatpush.msrb.mxu3 %v5342_v21  ;;  %v153_v5 = vld [vmem:[%s8056_s1 + $0x270] sm:$0xff]  ;;  %v5651_v21 = vand.u32 4294901760, %v154_v6 }
 0x100   :  { %1500 = vmatpush.msrb.mxu1 %v5372_v9  ;;  %1547 = vmatpush.msrb.mxu2 %v8244_v37  ;;  %v5661_v49 = vand.u32 4294901760, %v153_v5  ;;  %v142_v37 = vld [vmem:[%s8056_s1 + $0x218] sm:$0xff] }
 0x101   :  { %1440 = vmatpush.msrb.mxu0 %v5351_v8  ;;  %1604 = vmatpush.msrb.mxu3 %v5355_v2  ;;  %v8246_v8 = vand.u32 4294901760, %v5428_v52  ;;  %v152_v2 = vld [vmem:[%s8056_s1 + $0x268] sm:$0xff]  ;;  %v5672_v16 = vsub.f32 %v154_v6, %v5651_v21 }
 0x102   :  { %1502 = vmatpush.msrb.mxu1 %v5395_v23  ;;  %1551 = vmatpush.msrb.mxu2 %v8245_v41 }
 0x103   :  { %1443 = vmatpush.msrb.mxu0 %v5367_v3  ;;  %1606 = vmatpush.msrb.mxu3 %v5362_v46  ;;  %v8247_v46 = vand.u32 4294901760, %v5443_v58  ;;  %v151_v3 = vld [vmem:[%s8056_s1 + $0x260] sm:$0xff]  ;;  %v8118_v17 = vand.u32 4294901760, %v5672_v16 }
 0x104   :  { %1504 = vmatpush.msrb.mxu1 %v5415_v40  ;;  %1555 = vmatpush.msrb.mxu2 %v8246_v8 }
 0x105   :  { %1446 = vmatpush.msrb.mxu0 %v5380_v36  ;;  %1608 = vmatpush.msrb.mxu3 %v5372_v9  ;;  %v5674_v36 = vand.u32 4294901760, %v152_v2  ;;  %v8248_v9 = vld [vmem:[#allocation7_spill] sm:$0xff] }
 0x106   :  { %1506 = vmatpush.msrb.mxu1 %v5430_v55  ;;  %1559 = vmatpush.msrb.mxu2 %v8247_v46  ;;  %v8249_v35 = vand.u32 4294901760, %v8248_v9  ;;  %v1720_v46 = vsub.f32 %v5777_v34, %v8110_v56  ;;  %v162_v56 = vld [vmem:[%s8056_s1 + $0x2b8] sm:$0xff] }
 0x107   :  { %1449 = vmatpush.msrb.mxu0 %v5387_v43  ;;  %1610 = vmatpush.msrb.mxu3 %v5395_v23  ;;  %v5685_v43 = vsub.f32 %v153_v5, %v5661_v49  ;;  %v5687_v23 = vand.u32 4294901760, %v151_v3 }
 0x108   :  { %1508 = vmatpush.msrb.mxu1 %v5445_v12  ;;  %1563 = vmatpush.msrb.mxu2 %v8249_v35 }
 0x109   :  { %1452 = vmatpush.msrb.mxu0 %v5403_v53  ;;  %1612 = vmatpush.msrb.mxu3 %v5415_v40  ;;  %v5696_v53 = vsub.f32 %v152_v2, %v5674_v36  ;;  %v5698_v40 = vand.u32 4294901760, %v150_v48  ;;  %v5713_v38 = vsub.f32 %v151_v3, %v5687_v23  ;;  %v5830_v2 = vsub.f32 %v144_v26, %v5802_v27  ;;  %v140_v3 = vld [vmem:[%s8056_s1 + $0x208] sm:$0xff] }
 0x10a   :  { %1510 = vmatpush.msrb.mxu1 %v5460_v63  ;;  %1567 = vmatpush.msrb.mxu2 %v8250_v60 }
 0x10b   :  { %1455 = vmatpush.msrb.mxu0 %v5428_v52  ;;  %1614 = vmatpush.msrb.mxu3 %v5430_v55  ;;  %v148_v55 = vld [vmem:[%s8056_s1 + $0x248] sm:$0xff]  ;;  %v8117_v52 = vand.u32 4294901760, %v5685_v43  ;;  %v5730_v10 = vsub.f32 %v150_v48, %v5698_v40  ;;  %v8115_v44 = vand.u32 4294901760, %v5713_v38 }
 0x10c   :  { %1512 = vmatpush.msrb.mxu1 %v5475_v47  ;;  %1571 = vmatpush.msrb.mxu2 %v8251_v57  ;;  %v4408_v57 = vld [vmem:[%s8055_s0 + $0x20] sm:$0xff] }
 0x10d   :  { %1458 = vmatpush.msrb.mxu0 %v5443_v58  ;;  %1616 = vmatpush.msrb.mxu3 %v5445_v12  ;;  %v1678_v58 = vsub.f32 %v5672_v16, %v8118_v17  ;;  %v8116_v12 = vand.u32 4294901760, %v5696_v53  ;;  %v8113_v62 = vand.u32 4294901760, %v5730_v10  ;;  %v1696_v4 = vsub.f32 %v5713_v38, %v8115_v44 }
 0x10e   :  { %1514 = vmatpush.msrb.mxu1 %v5490_v24  ;;  %1575 = vmatpush.msrb.mxu2 %v1402_v20  ;;  %v5732_v20 = vand.u32 4294901760, %v148_v55 }
 0x10f   :  { %1461 = vmatpush.msrb.mxu0 %v8248_v9  ;;  %1618 = vmatpush.msrb.mxu3 %v5460_v63  ;;  %v1684_v63 = vsub.f32 %v5685_v43, %v8117_v52  ;;  %v1702_v39 = vsub.f32 %v5730_v10, %v8113_v62  ;;  %v6035_v52 = vand.u32 4294901760, %v162_v56 }
 0x110   :  { %1516 = vmatpush.msrb.mxu1 %v5503_v13  ;;  %1579 = vmatpush.msrb.mxu2 %v1408_v30  ;;  %v1690_v30 = vsub.f32 %v5696_v53, %v8116_v12  ;;  %v5761_v45 = vsub.f32 %v148_v55, %v5732_v20  ;;  %v8252_v55 = vld [vmem:[#allocation5_spill] sm:$0xff]  ;;  %v161_v12 = vld [vmem:[%s8056_s1 + $0x2b0] sm:$0xff] }
 0x111   :  { %1464 = vmatpush.msrb.mxu0 %v5473_v15  ;;  %1620 = vmatpush.msrb.mxu3 %v5475_v47  ;;  %v5752_v15 = vsub.f32 %v149_v32, %v5718_v61  ;;  %v1679_v47 = vand.u32 4294901760, %v1678_v58  ;;  %v1703_v5 = vand.u32 4294901760, %v1702_v39  ;;  %v139_v32 = vld [vmem:[%s8056_s1 + $0x200] sm:$0xff]  ;;  %v43_v28 = vsub.f32 %v4408_v57, %v8252_v55 }
 0x112   :  { %1518 = vmatpush.msrb.mxu1 %v5524_v51  ;;  %1583 = vmatpush.msrb.mxu2 %v1414_v11  ;;  %v145_v11 = vld [vmem:[%s8056_s1 + $0x230] sm:$0xff]  ;;  %v8111_v7 = vand.u32 4294901760, %v5761_v45  ;;  %v8106_v58 = vand.u32 4294901760, %v5830_v2 }
 0x113   :  { %1467 = vmatpush.msrb.mxu0 %v5488_v29  ;;  %1622 = vmatpush.msrb.mxu3 %v5490_v24  ;;  %v5769_v29 = vand.u32 4294901760, %v146_v1  ;;  %v1685_v24 = vand.u32 4294901760, %v1684_v63 }
 0x114   :  { %1520 = vmatpush.msrb.mxu1 %v5537_v54  ;;  %1587 = vmatpush.msrb.mxu2 %v1420_v0  ;;  %v1691_v0 = vand.u32 4294901760, %v1690_v30  ;;  %v1714_v8 = vsub.f32 %v5761_v45, %v8111_v7  ;;  %v4409_v7 = vld [vmem:[%s8055_s0 + $0x28] sm:$0xff] }
 0x115   :  { %1470 = vmatpush.msrb.mxu0 %v5501_v22  ;;  %1624 = vmatpush.msrb.mxu3 %v5503_v13  ;;  %v8112_v13 = vand.u32 4294901760, %v5752_v15  ;;  %v5787_v22 = vand.u32 4294901760, %v145_v11 }
 0x116   :  { %1524 = vmatmul.f32.vlgmr.msrb.gmra.mxu1 %v1327_v50  ;;  %1591 = vmatpush.msrb.mxu2 %v1426_v59  ;;  %v143_v50 = vld [vmem:[%s8056_s1 + $0x220] sm:$0xff]  ;;  %v5800_v59 = vsub.f32 %v146_v1, %v5769_v29  ;;  %v1715_v60 = vand.u32 4294901760, %v1714_v8  ;;  %v5866_v1 = vand.u32 4294901760, %v140_v3  ;;  %v170_v8 = vld [vmem:[%s8056_s1 + $0x2f8] sm:$0xff] }
 0x117   :  { %1680 = vmatpush.msra.mxu1 %v1679_v47  ;;  %1473 = vmatpush.msrb.mxu0 %v5517_v18  ;;  %v1697_v18 = vand.u32 4294901760, %v1696_v4  ;;  %v5815_v6 = vsub.f32 %v145_v11, %v5787_v22  ;;  %v5817_v41 = vand.u32 4294901760, %v143_v50  ;;  %v1721_v47 = vand.u32 4294901760, %v1720_v46 }
 0x118   :  { %1626 = vmatpush.msrb.mxu3 %v5524_v51  ;;  %1593 = vmatmul.f32.vlgmr.msrb.gmra.mxu2 %v5539_v42  ;;  %v1708_v51 = vsub.f32 %v5752_v15, %v8112_v13  ;;  %v59_v4 = vmul.f32 1.442695, %v43_v28  ;;  %v5920_v28 = vand.u32 4294901760, %v170_v8  ;;  %v44_v13 = vsub.f32 %v4409_v7, %v8252_v55 }
 0x119   :  { %1686 = vmatpush.msra.mxu1 %v1685_v24  ;;  %1778 = vmatpush.msra.mxu2 %v5672_v16  ;;  %v8107_v35 = vand.u32 4294901760, %v5815_v6  ;;  %v5845_v48 = vsub.f32 %v143_v50, %v5817_v41  ;;  %v5878_v24 = vand.u32 4294901760, %v139_v32  ;;  %v5888_v50 = vsub.f32 %v140_v3, %v5866_v1 }
 0x11a   :  { %1476 = vmatpush.msrb.mxu0 %v5533_v33  ;;  %1628 = vmatpush.msrb.mxu3 %v5537_v54  ;;  %v141_v33 = vld [vmem:[%s8056_s1 + $0x210] sm:$0xff]  ;;  %v8109_v54 = vand.u32 4294901760, %v5800_v59  ;;  %v1709_v9 = vand.u32 4294901760, %v1708_v51  ;;  %4388 = vpow2.f32 %v59_v4  ;;  %v168_v4 = vld [vmem:[%s8056_s1 + $0x2e8] sm:$0xff]  ;;  %v61_v62 = vmul.f32 1.442695, %v44_v13 }
 0x11b   :  { %1630 = vmatmul.f32.vlgmr.msrb.gmra.mxu3 %v5539_v42  ;;  %1692 = vmatpush.msra.mxu1 %v1691_v0  ;;  %v5832_v42 = vand.u32 4294901760, %v142_v37  ;;  %v8105_v30 = vand.u32 4294901760, %v5845_v48  ;;  %v1738_v0 = vsub.f32 %v5830_v2, %v8106_v58  ;;  %v8102_v3 = vand.u32 4294901760, %v5888_v50 }
 0x11c   :  { %1781 = vmatpush.msra.mxu2 %v5685_v43  ;;  %1831 = vmatpush.msra.mxu3 %v5651_v21  ;;  %4390 = vpow2.f32 %v61_v62  ;;  %v157_v62 = vld [vmem:[%s8056_s1 + $0x290] sm:$0xff] }
 0x11d   :  { %1479 = vmatpush.msrb.mxu0 %v5550_v31  ;;  %1698 = vmatpush.msra.mxu1 %v1697_v18  ;;  %v5847_v31 = vand.u32 4294901760, %v141_v33  ;;  %v5864_v63 = vsub.f32 %v142_v37, %v5832_v42  ;;  %v1744_v37 = vsub.f32 %v5845_v48, %v8105_v30 }
 0x11e   :  { %1784 = vmatpush.msra.mxu2 %v5696_v53  ;;  %1833 = vmatpush.msra.mxu3 %v5661_v49 }
 0x11f   :  { %1482 = vmatpush.msrb.mxu0 %v5564_v25  ;;  %1704 = vmatpush.msra.mxu1 %v1703_v5  ;;  %v1726_v25 = vsub.f32 %v5800_v59, %v8109_v54  ;;  %v5876_v11 = vsub.f32 %v141_v33, %v5847_v31  ;;  %v8104_v39 = vand.u32 4294901760, %v5864_v63  ;;  %v5898_v5 = vsub.f32 %v139_v32, %v5878_v24 }
 0x120   :  { %1485 = vmatmul.f32.vlgmr.msrb.gmra.mxu0 %v5561_v19  ;;  %1787 = vmatpush.msra.mxu2 %v5713_v38  ;;  %v1732_v19 = vsub.f32 %v5815_v6, %v8107_v35  ;;  %v1739_v33 = vand.u32 4294901760, %v1738_v0  ;;  %v163_v35 = vld [vmem:[%s8056_s1 + $0x2c0] sm:$0xff] }
 0x121   :  { %1635 = vmatpush.msra.mxu0 %v5651_v21  ;;  %1835 = vmatpush.msra.mxu3 %v5674_v36  ;;  %v1727_v26 = vand.u32 4294901760, %v1726_v25  ;;  %v8103_v51 = vand.u32 4294901760, %v5876_v11  ;;  %8253 = vst [vmem:[#allocation6_spill] sm:$0xff] %v5898_v5  ;;  %v1750_v46 = vsub.f32 %v5864_v63, %v8104_v39  ;;  %v8101_v57 = vand.u32 4294901760, %v5898_v5 }
 0x122   :  { %1710 = vmatpush.msra.mxu1 %v1709_v9  ;;  %1790 = vmatpush.msra.mxu2 %v5730_v10  ;;  %v1733_v18 = vand.u32 4294901760, %v1732_v19  ;;  %v169_v9 = vld [vmem:[%s8056_s1 + $0x2f0] sm:$0xff] }
 0x123   :  { %1637 = vmatpush.msra.mxu0 %v5661_v49  ;;  %1837 = vmatpush.msra.mxu3 %v5687_v23  ;;  %v1756_v32 = vsub.f32 %v5876_v11, %v8103_v51  ;;  %v1751_v25 = vand.u32 4294901760, %v1750_v46  ;;  %v5928_v19 = vand.u32 4294901760, %v169_v9  ;;  %v5947_v46 = vand.u32 4294901760, %v168_v4  ;;  %v165_v51 = vld [vmem:[%s8056_s1 + $0x2d0] sm:$0xff] }
 0x124   :  { %1716 = vmatpush.msra.mxu1 %v1715_v60  ;;  %1793 = vmatpush.msra.mxu2 %v5752_v15  ;;  %v1745_v60 = vand.u32 4294901760, %v1744_v37  ;;  %v5940_v37 = vsub.f32 %v170_v8, %v5920_v28  ;;  %v5977_v58 = vand.u32 4294901760, %v165_v51 }
 0x125   :  { %1639 = vmatpush.msra.mxu0 %v5674_v36  ;;  %1839 = vmatpush.msra.mxu3 %v5698_v40  ;;  %v1757_v0 = vand.u32 4294901760, %v1756_v32 }
 0x126   :  { %1722 = vmatpush.msra.mxu1 %v1721_v47  ;;  %1796 = vmatpush.msra.mxu2 %v5761_v45  ;;  %v1762_v47 = vsub.f32 %v5888_v50, %v8102_v3  ;;  %v6008_v54 = vsub.f32 %v165_v51, %v5977_v58 }
 0x127   :  { %1641 = vmatpush.msra.mxu0 %v5687_v23  ;;  %1841 = vmatpush.msra.mxu3 %v5718_v61 }
 0x128   :  { %1728 = vmatpush.msra.mxu1 %v1727_v26  ;;  %1799 = vmatpush.msra.mxu2 %v5777_v34  ;;  %v4389_v26 = vpop.eup %4388  ;;  %v1763_v32 = vand.u32 4294901760, %v1762_v47  ;;  %v8108_v47 = vand.u32 4294901760, %v5940_v37  ;;  %v8122_v44 = vand.u32 4294901760, %v6008_v54 }
 0x129   :  { %1643 = vmatpush.msra.mxu0 %v5698_v40  ;;  %1843 = vmatpush.msra.mxu3 %v5732_v20  ;;  %v5953_v8 = vand.u32 4294901760, %v4389_v26 }
 0x12a   :  { %1734 = vmatpush.msra.mxu1 %v1733_v18  ;;  %1802 = vmatpush.msra.mxu2 %v5800_v59  ;;  %v1768_v18 = vsub.f32 %v5898_v5, %v8101_v57  ;;  %v5956_v57 = vsub.f32 %v169_v9, %v5928_v19  ;;  %v5972_v9 = vsub.f32 %v168_v4, %v5947_v46 }
 0x12b   :  { %1645 = vmatpush.msra.mxu0 %v5718_v61  ;;  %1845 = vmatpush.msra.mxu3 %v5743_v14  ;;  %v1667_v30 = vsub.f32 %v4389_v26, %v5953_v8  ;;  %v2019_v26 = vsub.f32 %v5940_v37, %v8108_v47 }
 0x12c   :  { %1740 = vmatpush.msra.mxu1 %v1739_v33  ;;  %1805 = vmatpush.msra.mxu2 %v5815_v6  ;;  %v167_v33 = vld [vmem:[%s8056_s1 + $0x2e0] sm:$0xff] }
 0x12d   :  { %1647 = vmatpush.msra.mxu0 %v5732_v20  ;;  %1847 = vmatpush.msra.mxu3 %v5769_v29  ;;  %v5960_v3 = vand.u32 4294901760, %v167_v33  ;;  %v1668_v47 = vand.u32 4294901760, %v1667_v30  ;;  %v2020_v51 = vand.u32 4294901760, %v2019_v26 }
 0x12e   :  { %1746 = vmatpush.msra.mxu1 %v1745_v60  ;;  %1808 = vmatpush.msra.mxu2 %v5830_v2  ;;  %v166_v60 = vld [vmem:[%s8056_s1 + $0x2d8] sm:$0xff] }
 0x12f   :  { %1649 = vmatpush.msra.mxu0 %v5743_v14  ;;  %1849 = vmatpush.msra.mxu3 %v5787_v22  ;;  %v5967_v39 = vand.u32 4294901760, %v166_v60  ;;  %v5985_v4 = vsub.f32 %v167_v33, %v5960_v3  ;;  %v8119_v33 = vand.u32 4294901760, %v5972_v9  ;;  %v1669_v17 = vsub.f32 %v1667_v30, %v1668_v47 }
 0x130   :  { %1752 = vmatpush.msra.mxu1 %v1751_v25  ;;  %1811 = vmatpush.msra.mxu2 %v5845_v48  ;;  %v1769_v25 = vand.u32 4294901760, %v1768_v18  ;;  %v164_v18 = vld [vmem:[%s8056_s1 + $0x2c8] sm:$0xff] }
 0x131   :  { %1651 = vmatpush.msra.mxu0 %v5769_v29  ;;  %1851 = vmatpush.msra.mxu3 %v5802_v27 }
 0x132   :  { %1758 = vmatpush.msra.mxu1 %v1757_v0  ;;  %1814 = vmatpush.msra.mxu2 %v5864_v63  ;;  %v8114_v0 = vand.u32 4294901760, %v5956_v57 }
 0x133   :  { %1653 = vmatpush.msra.mxu0 %v5787_v22  ;;  %1853 = vmatpush.msra.mxu3 %v5817_v41 }
 0x134   :  { %1764 = vmatpush.msra.mxu1 %v1763_v32  ;;  %1817 = vmatpush.msra.mxu2 %v5876_v11  ;;  %v5992_v32 = vsub.f32 %v166_v60, %v5967_v39  ;;  %v2025_v60 = vsub.f32 %v5956_v57, %v8114_v0  ;;  %v6020_v0 = vand.u32 4294901760, %v163_v35 }
 0x135   :  { %1655 = vmatpush.msra.mxu0 %v5802_v27  ;;  %1855 = vmatpush.msra.mxu3 %v5832_v42 }
 0x136   :  { %1770 = vmatpush.msra.mxu1 %v1769_v25  ;;  %1820 = vmatpush.msra.mxu2 %v5888_v50  ;;  %v6000_v25 = vand.u32 4294901760, %v164_v18  ;;  %v2026_v26 = vand.u32 4294901760, %v2025_v60  ;;  %v6048_v55 = vsub.f32 %v163_v35, %v6020_v0 }
 0x137   :  { %1657 = vmatpush.msra.mxu0 %v5817_v41  ;;  %1857 = vmatpush.msra.mxu3 %v5847_v31 }
 0x138   :  { %1772 = vmatmul.f32.vlgmr.msra.gmra.mxu1 %v5953_v8  ;;  %1823 = vmatpush.msra.mxu2 %v5898_v5  ;;  %v6033_v7 = vsub.f32 %v164_v18, %v6000_v25  ;;  %v8254_v18 = vand.u32 4294901760, %v5985_v4  ;;  %v6050_v5 = vand.u32 4294901760, %v161_v12 }
 0x139   :  { %1939 = vmatpush.msrb.mxu1 %v5651_v21  ;;  %1659 = vmatpush.msra.mxu0 %v5832_v42  ;;  %v2031_v21 = vsub.f32 %v5972_v9, %v8119_v33 }
 0x13a   :  { %1859 = vmatpush.msra.mxu3 %v5866_v1  ;;  %1826 = vmatmul.f32.vlgmr.msra.gmra.mxu2 %v1667_v30  ;;  %v2037_v33 = vsub.f32 %v5985_v4, %v8254_v18  ;;  %v8255_v30 = vand.u32 4294901760, %v5992_v32  ;;  %v6078_v35 = vsub.f32 %v161_v12, %v6050_v5  ;;  %v6108_v12 = vand.u32 4294901760, %v157_v62 }
 0x13b   :  { %1941 = vmatpush.msrb.mxu1 %v5661_v49  ;;  %1976 = vmatpush.msrb.mxu2 %v5920_v28  ;;  %v160_v49 = vld [vmem:[%s8056_s1 + $0x2a8] sm:$0xff]  ;;  %v2032_v13 = vand.u32 4294901760, %v2031_v21 }
 0x13c   :  { %1661 = vmatpush.msra.mxu0 %v5847_v31  ;;  %1861 = vmatpush.msra.mxu3 %v5878_v24  ;;  %v2043_v60 = vsub.f32 %v5992_v32, %v8255_v30  ;;  %v6065_v18 = vand.u32 4294901760, %v160_v49  ;;  %v2049_v30 = vsub.f32 %v6008_v54, %v8122_v44  ;;  %v8257_v44 = vand.u32 4294901760, %v5672_v16 }
 0x13d   :  { %1865 = vmatmul.f32.vlgmr.msra.gmra.mxu3 %v1668_v47  ;;  %1943 = vmatpush.msrb.mxu1 %v5674_v36  ;;  %v159_v36 = vld [vmem:[%s8056_s1 + $0x2a0] sm:$0xff]  ;;  %v6063_v47 = vsub.f32 %v162_v56, %v6035_v52  ;;  %v2038_v56 = vand.u32 4294901760, %v2037_v33  ;;  %v8259_v16 = vand.u32 4294901760, %v5685_v43  ;;  %v8261_v43 = vand.u32 4294901760, %v5696_v53 }
 0x13e   :  { %1978 = vmatpush.msrb.mxu2 %v5928_v19  ;;  %2021 = vmatpush.msrb.mxu3 %v2020_v51  ;;  %v1670_v51 = vand.u32 4294901760, %v1669_v17  ;;  %v6080_v17 = vand.u32 4294901760, %v159_v36  ;;  %v6093_v21 = vsub.f32 %v160_v49, %v6065_v18 }
 0x13f   :  { %1663 = vmatpush.msra.mxu0 %v5866_v1  ;;  %1945 = vmatpush.msrb.mxu1 %v5687_v23  ;;  %8256 = vst [vmem:[#allocation7_spill] sm:$0xff] %v6063_v47  ;;  %v158_v23 = vld [vmem:[%s8056_s1 + $0x298] sm:$0xff] }
 0x140   :  { %1980 = vmatpush.msrb.mxu2 %v5947_v46  ;;  %2027 = vmatpush.msrb.mxu3 %v2026_v26  ;;  %v2044_v26 = vand.u32 4294901760, %v2043_v60  ;;  %v2050_v60 = vand.u32 4294901760, %v2049_v30  ;;  %v6106_v49 = vsub.f32 %v159_v36, %v6080_v17  ;;  %v4391_v30 = vpop.eup %4390 }
 0x141   :  { %1665 = vmatpush.msra.mxu0 %v5878_v24  ;;  %1947 = vmatpush.msrb.mxu1 %v5698_v40  ;;  %v8258_v40 = vand.u32 4294901760, %v6033_v7 }
 0x142   :  { %1671 = vmatmul.f32.vlgmr.msra.gmra.mxu0 %v1670_v51  ;;  %1982 = vmatpush.msrb.mxu2 %v5960_v3  ;;  %v6095_v51 = vand.u32 4294901760, %v158_v23 }
 0x143   :  { %1872 = vmatpush.msrb.mxu0 %v8257_v44  ;;  %2033 = vmatpush.msrb.mxu3 %v2032_v13  ;;  %v2055_v33 = vsub.f32 %v6033_v7, %v8258_v40  ;;  %v8260_v44 = vand.u32 4294901760, %v6048_v55 }
 0x144   :  { %1949 = vmatpush.msrb.mxu1 %v5718_v61  ;;  %1984 = vmatpush.msrb.mxu2 %v5967_v39  ;;  %v156_v61 = vld [vmem:[%s8056_s1 + $0x288] sm:$0xff]  ;;  %v6122_v40 = vsub.f32 %v158_v23, %v6095_v51 }
 0x145   :  { %1876 = vmatpush.msrb.mxu0 %v8259_v16  ;;  %2039 = vmatpush.msrb.mxu3 %v2038_v56  ;;  %v2061_v13 = vsub.f32 %v6048_v55, %v8260_v44  ;;  %v2056_v56 = vand.u32 4294901760, %v2055_v33  ;;  %v8262_v16 = vand.u32 4294901760, %v6063_v47  ;;  %v6129_v53 = vand.u32 4294901760, %v156_v61 }
 0x146   :  { %1951 = vmatpush.msrb.mxu1 %v5732_v20  ;;  %1986 = vmatpush.msrb.mxu2 %v5977_v58  ;;  %v155_v20 = vld [vmem:[%s8056_s1 + $0x280] sm:$0xff]  ;;  %v6138_v44 = vsub.f32 %v157_v62, %v6108_v12  ;;  %v2090_v62 = vand.u32 4294901760, %v6122_v40 }
 0x147   :  { %1880 = vmatpush.msrb.mxu0 %v8261_v43  ;;  %2045 = vmatpush.msrb.mxu3 %v2044_v26  ;;  %v2067_v36 = vsub.f32 %v6063_v47, %v8262_v16  ;;  %v8263_v26 = vand.u32 4294901760, %v5713_v38  ;;  %v2062_v33 = vand.u32 4294901760, %v2061_v13  ;;  %v8264_v43 = vand.u32 4294901760, %v6078_v35 }
 0x148   :  { %1953 = vmatpush.msrb.mxu1 %v5743_v14  ;;  %1988 = vmatpush.msrb.mxu2 %v6000_v25  ;;  %v2084_v16 = vand.u32 4294901760, %v6106_v49  ;;  %v6142_v14 = vand.u32 4294901760, %v155_v20  ;;  %v6144_v47 = vand.u32 4294901760, %v4391_v30  ;;  %v8265_v38 = vand.u32 4294901760, %v5730_v10 }
 0x149   :  { %1884 = vmatpush.msrb.mxu0 %v8263_v26  ;;  %2051 = vmatpush.msrb.mxu3 %v2050_v60  ;;  %v2073_v23 = vsub.f32 %v6078_v35, %v8264_v43  ;;  %v2068_v60 = vand.u32 4294901760, %v2067_v36  ;;  %v8266_v13 = vand.u32 4294901760, %v6093_v21  ;;  %v8267_v43 = vand.u32 4294901760, %v5752_v15 }
 0x14a   :  { %1955 = vmatpush.msrb.mxu1 %v5769_v29  ;;  %1990 = vmatpush.msrb.mxu2 %v6020_v0  ;;  %v6155_v29 = vsub.f32 %v156_v61, %v6129_v53  ;;  %v2096_v36 = vand.u32 4294901760, %v6138_v44  ;;  %v6169_v61 = vsub.f32 %v155_v20, %v6142_v14  ;;  %v8268_v15 = vand.u32 4294901760, %v5761_v45 }
 0x14b   :  { %1888 = vmatpush.msrb.mxu0 %v8265_v38  ;;  %2057 = vmatpush.msrb.mxu3 %v2056_v56  ;;  %v2079_v26 = vsub.f32 %v6093_v21, %v8266_v13  ;;  %v2074_v10 = vand.u32 4294901760, %v2073_v23  ;;  %v2085_v56 = vsub.f32 %v6106_v49, %v2084_v16  ;;  %v2091_v23 = vsub.f32 %v6122_v40, %v2090_v62 }
 0x14c   :  { %1957 = vmatpush.msrb.mxu1 %v5787_v22  ;;  %1992 = vmatpush.msrb.mxu2 %v6035_v52  ;;  %v6166_v22 = vsub.f32 %v4391_v30, %v6144_v47  ;;  %v8269_v30 = vand.u32 4294901760, %v5777_v34  ;;  %v2097_v45 = vsub.f32 %v6138_v44, %v2096_v36 }
 0x14d   :  { %1892 = vmatpush.msrb.mxu0 %v8267_v43  ;;  %2063 = vmatpush.msrb.mxu3 %v2062_v33  ;;  %v2080_v33 = vand.u32 4294901760, %v2079_v26  ;;  %v2086_v20 = vand.u32 4294901760, %v2085_v56  ;;  %v2092_v34 = vand.u32 4294901760, %v2091_v23  ;;  %v8272_v43 = vand.u32 4294901760, %v5830_v2 }
 0x14e   :  { %1959 = vmatpush.msrb.mxu1 %v5802_v27  ;;  %1994 = vmatpush.msrb.mxu2 %v6050_v5  ;;  %v2102_v27 = vand.u32 4294901760, %v6155_v29  ;;  %v2009_v38 = vand.u32 4294901760, %v6166_v22  ;;  %v2098_v26 = vand.u32 4294901760, %v2097_v45  ;;  %v8274_v2 = vand.u32 4294901760, %v5864_v63 }
 0x14f   :  { %1896 = vmatpush.msrb.mxu0 %v8268_v15  ;;  %2069 = vmatpush.msrb.mxu3 %v2068_v60  ;;  %v8270_v60 = vand.u32 4294901760, %v5800_v59  ;;  %v8277_v15 = vand.u32 4294901760, %v5956_v57  ;;  %v8278_v63 = vand.u32 4294901760, %v5888_v50  ;;  %v8283_v50 = vand.u32 4294901760, %v5992_v32 }
 0x150   :  { %1961 = vmatpush.msrb.mxu1 %v5817_v41  ;;  %1996 = vmatpush.msrb.mxu2 %v6065_v18  ;;  %v2108_v41 = vand.u32 4294901760, %v6169_v61  ;;  %v2103_v13 = vsub.f32 %v6155_v29, %v2102_v27  ;;  %v2010_v59 = vsub.f32 %v6166_v22, %v2009_v38 }
 0x151   :  { %1900 = vmatpush.msrb.mxu0 %v8269_v30  ;;  %2075 = vmatpush.msrb.mxu3 %v2074_v10  ;;  %v8282_v30 = vand.u32 4294901760, %v5985_v4 }
 0x152   :  { %1963 = vmatpush.msrb.mxu1 %v5832_v42  ;;  %1998 = vmatpush.msrb.mxu2 %v6080_v17  ;;  %v8271_v42 = vand.u32 4294901760, %v5815_v6  ;;  %v2104_v6 = vand.u32 4294901760, %v2103_v13  ;;  %v2011_v10 = vand.u32 4294901760, %v2010_v59 }
 0x153   :  { %1904 = vmatpush.msrb.mxu0 %v8270_v60  ;;  %2081 = vmatpush.msrb.mxu3 %v2080_v33  ;;  %v8279_v33 = vand.u32 4294901760, %v5972_v9  ;;  %v182_v60 = vld [vmem:[%s8056_s1 + $0x358] sm:$0xff] }
 0x154   :  { %1965 = vmatpush.msrb.mxu1 %v5847_v31  ;;  %2000 = vmatpush.msrb.mxu2 %v6095_v51  ;;  %v2109_v31 = vsub.f32 %v6169_v61, %v2108_v41 }
 0x155   :  { %1908 = vmatpush.msrb.mxu0 %v8271_v42  ;;  %2087 = vmatpush.msrb.mxu3 %v2086_v20  ;;  %v181_v42 = vld [vmem:[%s8056_s1 + $0x350] sm:$0xff] }
 0x156   :  { %1967 = vmatpush.msrb.mxu1 %v5866_v1  ;;  %2002 = vmatpush.msrb.mxu2 %v6108_v12  ;;  %v8273_v1 = vand.u32 4294901760, %v5845_v48  ;;  %v2110_v56 = vand.u32 4294901760, %v2109_v31  ;;  %v8276_v48 = vand.u32 4294901760, %v5876_v11  ;;  %v8280_v11 = vld [vmem:[#allocation6_spill] sm:$0xff]  ;;  %v6323_v31 = vand.u32 4294901760, %v181_v42 }
 0x157   :  { %1912 = vmatpush.msrb.mxu0 %v8272_v43  ;;  %2093 = vmatpush.msrb.mxu3 %v2092_v34  ;;  %v8281_v23 = vand.u32 4294901760, %v8280_v11  ;;  %v8289_v34 = vand.u32 4294901760, %v6078_v35  ;;  %v179_v43 = vld [vmem:[%s8056_s1 + $0x340] sm:$0xff] }
 0x158   :  { %1969 = vmatpush.msrb.mxu1 %v5878_v24  ;;  %2004 = vmatpush.msrb.mxu2 %v6129_v53  ;;  %v8275_v24 = vand.u32 4294901760, %v5940_v37 }
 0x159   :  { %1916 = vmatpush.msrb.mxu0 %v8273_v1  ;;  %2099 = vmatpush.msrb.mxu3 %v2098_v26  ;;  %v8290_v26 = vand.u32 4294901760, %v6093_v21 }
 0x15a   :  { %1971 = vmatmul.f32.vlgmr.msrb.gmra.mxu1 %v5953_v8  ;;  %2006 = vmatpush.msrb.mxu2 %v6142_v14 }
 0x15b   :  { %2172 = vmatpush.msra.mxu1 %v5920_v28  ;;  %1920 = vmatpush.msrb.mxu0 %v8274_v2 }
 0x15c   :  { %2105 = vmatpush.msrb.mxu3 %v2104_v6  ;;  %2012 = vmatmul.f32.vlgmr.msrb.gmra.mxu2 %v2011_v10  ;;  %v6348_v10 = vand.u32 4294901760, %v179_v43 }
 0x15d   :  { %2174 = vmatpush.msra.mxu1 %v5928_v19  ;;  %2213 = vmatpush.msra.mxu2 %v8275_v24 }
 0x15e   :  { %1924 = vmatpush.msrb.mxu0 %v8276_v48  ;;  %2111 = vmatpush.msrb.mxu3 %v2110_v56  ;;  %v178_v56 = vld [vmem:[%s8056_s1 + $0x338] sm:$0xff] }
 0x15f   :  { %2113 = vmatmul.f32.vlgmr.msrb.gmra.mxu3 %v6144_v47  ;;  %2176 = vmatpush.msra.mxu1 %v5947_v46 }
 0x160   :  { %2217 = vmatpush.msra.mxu2 %v8277_v15  ;;  %2280 = vmatpush.msra.mxu3 %v5920_v28  ;;  %v186_v28 = vld [vmem:[%s8056_s1 + $0x378] sm:$0xff]  ;;  %v6382_v15 = vsub.f32 %v179_v43, %v6348_v10 }
 0x161   :  { %1928 = vmatpush.msrb.mxu0 %v8278_v63  ;;  %2178 = vmatpush.msra.mxu1 %v5960_v3  ;;  %v176_v63 = vld [vmem:[%s8056_s1 + $0x328] sm:$0xff] }
 0x162   :  { %2221 = vmatpush.msra.mxu2 %v8279_v33  ;;  %2282 = vmatpush.msra.mxu3 %v5928_v19  ;;  %v8284_v19 = vand.u32 4294901760, %v6008_v54 }
 0x163   :  { %1932 = vmatpush.msrb.mxu0 %v8281_v23  ;;  %2180 = vmatpush.msra.mxu1 %v5967_v39  ;;  %v6407_v23 = vand.u32 4294901760, %v176_v63 }
 0x164   :  { %1934 = vmatmul.f32.vlgmr.msrb.gmra.mxu0 %v5953_v8  ;;  %2225 = vmatpush.msra.mxu2 %v8282_v30  ;;  %v8134_v30 = vand.u32 4294901760, %v6382_v15 }
 0x165   :  { %2119 = vmatpush.msra.mxu0 %v5940_v37  ;;  %2284 = vmatpush.msra.mxu3 %v5947_v46  ;;  %v185_v37 = vld [vmem:[%s8056_s1 + $0x370] sm:$0xff]  ;;  %v6256_v46 = vand.u32 4294901760, %v186_v28 }
 0x166   :  { %2182 = vmatpush.msra.mxu1 %v5977_v58  ;;  %2229 = vmatpush.msra.mxu2 %v8283_v50  ;;  %v6266_v8 = vand.u32 4294901760, %v185_v37  ;;  %v174_v50 = vld [vmem:[%s8056_s1 + $0x318] sm:$0xff] }
 0x167   :  { %2122 = vmatpush.msra.mxu0 %v5956_v57  ;;  %2286 = vmatpush.msra.mxu3 %v5960_v3  ;;  %v8285_v57 = vand.u32 4294901760, %v6033_v7  ;;  %v184_v3 = vld [vmem:[%s8056_s1 + $0x368] sm:$0xff]  ;;  %v6277_v20 = vsub.f32 %v186_v28, %v6256_v46 }
 0x168   :  { %2184 = vmatpush.msra.mxu1 %v6000_v25  ;;  %2233 = vmatpush.msra.mxu2 %v8284_v19 }
 0x169   :  { %2125 = vmatpush.msra.mxu0 %v5972_v9  ;;  %2288 = vmatpush.msra.mxu3 %v5967_v39  ;;  %v8286_v39 = vand.u32 4294901760, %v6048_v55  ;;  %v183_v9 = vld [vmem:[%s8056_s1 + $0x360] sm:$0xff]  ;;  %v8142_v13 = vand.u32 4294901760, %v6277_v20 }
 0x16a   :  { %2186 = vmatpush.msra.mxu1 %v6020_v0  ;;  %2237 = vmatpush.msra.mxu2 %v8285_v57 }
 0x16b   :  { %2128 = vmatpush.msra.mxu0 %v5985_v4  ;;  %2290 = vmatpush.msra.mxu3 %v5977_v58  ;;  %v6279_v4 = vand.u32 4294901760, %v184_v3  ;;  %v8287_v58 = vld [vmem:[#allocation7_spill] sm:$0xff] }
 0x16c   :  { %2188 = vmatpush.msra.mxu1 %v6035_v52  ;;  %2241 = vmatpush.msra.mxu2 %v8286_v39  ;;  %v8288_v45 = vand.u32 4294901760, %v8287_v58  ;;  %v2402_v39 = vsub.f32 %v6382_v15, %v8134_v30  ;;  %v194_v30 = vld [vmem:[%s8056_s1 + $0x3b8] sm:$0xff] }
 0x16d   :  { %2131 = vmatpush.msra.mxu0 %v5992_v32  ;;  %2292 = vmatpush.msra.mxu3 %v6000_v25  ;;  %v6290_v32 = vsub.f32 %v185_v37, %v6266_v8  ;;  %v6292_v25 = vand.u32 4294901760, %v183_v9 }
 0x16e   :  { %2190 = vmatpush.msra.mxu1 %v6050_v5  ;;  %2245 = vmatpush.msra.mxu2 %v8288_v45 }
 0x16f   :  { %2134 = vmatpush.msra.mxu0 %v6008_v54  ;;  %2294 = vmatpush.msra.mxu3 %v6020_v0  ;;  %v6301_v54 = vsub.f32 %v184_v3, %v6279_v4  ;;  %v6303_v0 = vand.u32 4294901760, %v182_v60  ;;  %v6318_v59 = vsub.f32 %v183_v9, %v6292_v25  ;;  %v6435_v3 = vsub.f32 %v176_v63, %v6407_v23  ;;  %v172_v9 = vld [vmem:[%s8056_s1 + $0x308] sm:$0xff] }
 0x170   :  { %2192 = vmatpush.msra.mxu1 %v6065_v18  ;;  %2249 = vmatpush.msra.mxu2 %v8289_v34 }
 0x171   :  { %2137 = vmatpush.msra.mxu0 %v6033_v7  ;;  %2296 = vmatpush.msra.mxu3 %v6035_v52  ;;  %v180_v52 = vld [vmem:[%s8056_s1 + $0x348] sm:$0xff]  ;;  %v8141_v7 = vand.u32 4294901760, %v6290_v32  ;;  %v6335_v6 = vsub.f32 %v182_v60, %v6303_v0  ;;  %v8139_v1 = vand.u32 4294901760, %v6318_v59 }
 0x172   :  { %2194 = vmatpush.msra.mxu1 %v6080_v17  ;;  %2253 = vmatpush.msra.mxu2 %v8290_v26  ;;  %v4410_v26 = vld [vmem:[%s8055_s0 + $0x30] sm:$0xff] }
 0x173   :  { %2140 = vmatpush.msra.mxu0 %v6048_v55  ;;  %2298 = vmatpush.msra.mxu3 %v6050_v5  ;;  %v2360_v55 = vsub.f32 %v6277_v20, %v8142_v13  ;;  %v8140_v5 = vand.u32 4294901760, %v6301_v54  ;;  %v8137_v2 = vand.u32 4294901760, %v6335_v6  ;;  %v2378_v48 = vsub.f32 %v6318_v59, %v8139_v1 }
 0x174   :  { %2196 = vmatpush.msra.mxu1 %v6095_v51  ;;  %2257 = vmatpush.msra.mxu2 %v2084_v16  ;;  %v6337_v16 = vand.u32 4294901760, %v180_v52 }
 0x175   :  { %2143 = vmatpush.msra.mxu0 %v8287_v58  ;;  %2300 = vmatpush.msra.mxu3 %v6065_v18  ;;  %v2366_v18 = vsub.f32 %v6290_v32, %v8141_v7  ;;  %v2384_v33 = vsub.f32 %v6335_v6, %v8137_v2  ;;  %v6640_v7 = vand.u32 4294901760, %v194_v30 }
 0x176   :  { %2198 = vmatpush.msra.mxu1 %v6108_v12  ;;  %2261 = vmatpush.msra.mxu2 %v2090_v62  ;;  %v2372_v62 = vsub.f32 %v6301_v54, %v8140_v5  ;;  %v6366_v24 = vsub.f32 %v180_v52, %v6337_v16  ;;  %v8291_v52 = vld [vmem:[#allocation5_spill] sm:$0xff]  ;;  %v193_v5 = vld [vmem:[%s8056_s1 + $0x3b0] sm:$0xff] }
 0x177   :  { %2146 = vmatpush.msra.mxu0 %v6078_v35  ;;  %2302 = vmatpush.msra.mxu3 %v6080_v17  ;;  %v6357_v35 = vsub.f32 %v181_v42, %v6323_v31  ;;  %v2361_v17 = vand.u32 4294901760, %v2360_v55  ;;  %v2385_v37 = vand.u32 4294901760, %v2384_v33  ;;  %v171_v42 = vld [vmem:[%s8056_s1 + $0x300] sm:$0xff]  ;;  %v45_v43 = vsub.f32 %v4410_v26, %v8291_v52 }
 0x178   :  { %2200 = vmatpush.msra.mxu1 %v6129_v53  ;;  %2265 = vmatpush.msra.mxu2 %v2096_v36  ;;  %v177_v36 = vld [vmem:[%s8056_s1 + $0x330] sm:$0xff]  ;;  %v8135_v11 = vand.u32 4294901760, %v6366_v24  ;;  %v8130_v55 = vand.u32 4294901760, %v6435_v3 }
 0x179   :  { %2149 = vmatpush.msra.mxu0 %v6093_v21  ;;  %2304 = vmatpush.msra.mxu3 %v6095_v51  ;;  %v6374_v21 = vand.u32 4294901760, %v178_v56  ;;  %v2367_v51 = vand.u32 4294901760, %v2366_v18 }
 0x17a   :  { %2202 = vmatpush.msra.mxu1 %v6142_v14  ;;  %2269 = vmatpush.msra.mxu2 %v2102_v27  ;;  %v2373_v27 = vand.u32 4294901760, %v2372_v62  ;;  %v2396_v57 = vsub.f32 %v6366_v24, %v8135_v11  ;;  %v4411_v11 = vld [vmem:[%s8055_s0 + $0x38] sm:$0xff] }
 0x17b   :  { %2152 = vmatpush.msra.mxu0 %v6106_v49  ;;  %2306 = vmatpush.msra.mxu3 %v6108_v12  ;;  %v8136_v12 = vand.u32 4294901760, %v6357_v35  ;;  %v6392_v49 = vand.u32 4294901760, %v177_v36 }
 0x17c   :  { %2206 = vmatmul.f32.vlgmr.msra.gmra.mxu1 %v2009_v38  ;;  %2273 = vmatpush.msra.mxu2 %v2108_v41  ;;  %v175_v38 = vld [vmem:[%s8056_s1 + $0x320] sm:$0xff]  ;;  %v6405_v41 = vsub.f32 %v178_v56, %v6374_v21  ;;  %v2397_v34 = vand.u32 4294901760, %v2396_v57  ;;  %v6471_v56 = vand.u32 4294901760, %v172_v9  ;;  %v202_v57 = vld [vmem:[%s8056_s1 + $0x3f8] sm:$0xff] }
 0x17d   :  { %2362 = vmatpush.msrb.mxu1 %v2361_v17  ;;  %2155 = vmatpush.msra.mxu0 %v6122_v40  ;;  %v2379_v40 = vand.u32 4294901760, %v2378_v48  ;;  %v6420_v28 = vsub.f32 %v177_v36, %v6392_v49  ;;  %v6422_v19 = vand.u32 4294901760, %v175_v38  ;;  %v2403_v17 = vand.u32 4294901760, %v2402_v39 }
 0x17e   :  { %2308 = vmatpush.msra.mxu3 %v6129_v53  ;;  %2275 = vmatmul.f32.vlgmr.msra.gmra.mxu2 %v6144_v47  ;;  %v2390_v53 = vsub.f32 %v6357_v35, %v8136_v12  ;;  %v63_v48 = vmul.f32 1.442695, %v45_v43  ;;  %v6525_v43 = vand.u32 4294901760, %v202_v57  ;;  %v46_v12 = vsub.f32 %v4411_v11, %v8291_v52 }
 0x17f   :  { %2368 = vmatpush.msrb.mxu1 %v2367_v51  ;;  %2460 = vmatpush.msrb.mxu2 %v6277_v20  ;;  %v8131_v45 = vand.u32 4294901760, %v6420_v28  ;;  %v6450_v60 = vsub.f32 %v175_v38, %v6422_v19  ;;  %v6483_v51 = vand.u32 4294901760, %v171_v42  ;;  %v6493_v38 = vsub.f32 %v172_v9, %v6471_v56 }
 0x180   :  { %2158 = vmatpush.msra.mxu0 %v6138_v44  ;;  %2310 = vmatpush.msra.mxu3 %v6142_v14  ;;  %v173_v44 = vld [vmem:[%s8056_s1 + $0x310] sm:$0xff]  ;;  %v8133_v14 = vand.u32 4294901760, %v6405_v41  ;;  %v2391_v58 = vand.u32 4294901760, %v2390_v53  ;;  %4392 = vpow2.f32 %v63_v48  ;;  %v200_v48 = vld [vmem:[%s8056_s1 + $0x3e8] sm:$0xff]  ;;  %v65_v2 = vmul.f32 1.442695, %v46_v12 }
 0x181   :  { %2312 = vmatmul.f32.vlgmr.msra.gmra.mxu3 %v6144_v47  ;;  %2374 = vmatpush.msrb.mxu1 %v2373_v27  ;;  %v6437_v47 = vand.u32 4294901760, %v174_v50  ;;  %v8129_v62 = vand.u32 4294901760, %v6450_v60  ;;  %v2420_v27 = vsub.f32 %v6435_v3, %v8130_v55  ;;  %v8126_v9 = vand.u32 4294901760, %v6493_v38 }
 0x182   :  { %2463 = vmatpush.msrb.mxu2 %v6290_v32  ;;  %2513 = vmatpush.msrb.mxu3 %v6256_v46  ;;  %4394 = vpow2.f32 %v65_v2  ;;  %v189_v2 = vld [vmem:[%s8056_s1 + $0x390] sm:$0xff] }
 0x183   :  { %2161 = vmatpush.msra.mxu0 %v6155_v29  ;;  %2380 = vmatpush.msrb.mxu1 %v2379_v40  ;;  %v6452_v29 = vand.u32 4294901760, %v173_v44  ;;  %v6469_v18 = vsub.f32 %v174_v50, %v6437_v47  ;;  %v2426_v50 = vsub.f32 %v6450_v60, %v8129_v62 }
 0x184   :  { %2466 = vmatpush.msrb.mxu2 %v6301_v54  ;;  %2515 = vmatpush.msrb.mxu3 %v6266_v8 }
 0x185   :  { %2164 = vmatpush.msra.mxu0 %v6169_v61  ;;  %2386 = vmatpush.msrb.mxu1 %v2385_v37  ;;  %v2408_v61 = vsub.f32 %v6405_v41, %v8133_v14  ;;  %v6481_v36 = vsub.f32 %v173_v44, %v6452_v29  ;;  %v8128_v33 = vand.u32 4294901760, %v6469_v18  ;;  %v6503_v37 = vsub.f32 %v171_v42, %v6483_v51 }
 0x186   :  { %2167 = vmatmul.f32.vlgmr.msra.gmra.mxu0 %v6166_v22  ;;  %2469 = vmatpush.msrb.mxu2 %v6318_v59  ;;  %v2414_v22 = vsub.f32 %v6420_v28, %v8131_v45  ;;  %v2421_v44 = vand.u32 4294901760, %v2420_v27  ;;  %v195_v45 = vld [vmem:[%s8056_s1 + $0x3c0] sm:$0xff] }
 0x187   :  { %2317 = vmatpush.msrb.mxu0 %v6256_v46  ;;  %2517 = vmatpush.msrb.mxu3 %v6279_v4  ;;  %v2409_v63 = vand.u32 4294901760, %v2408_v61  ;;  %v8127_v53 = vand.u32 4294901760, %v6481_v36  ;;  %8292 = vst [vmem:[#allocation6_spill] sm:$0xff] %v6503_v37  ;;  %v2432_v39 = vsub.f32 %v6469_v18, %v8128_v33  ;;  %v8125_v26 = vand.u32 4294901760, %v6503_v37 }
 0x188   :  { %2392 = vmatpush.msrb.mxu1 %v2391_v58  ;;  %2472 = vmatpush.msrb.mxu2 %v6335_v6  ;;  %v2415_v40 = vand.u32 4294901760, %v2414_v22  ;;  %v201_v58 = vld [vmem:[%s8056_s1 + $0x3f0] sm:$0xff] }
 0x189   :  { %2319 = vmatpush.msrb.mxu0 %v6266_v8  ;;  %2519 = vmatpush.msrb.mxu3 %v6292_v25  ;;  %v2438_v42 = vsub.f32 %v6481_v36, %v8127_v53  ;;  %v2433_v61 = vand.u32 4294901760, %v2432_v39  ;;  %v6533_v22 = vand.u32 4294901760, %v201_v58  ;;  %v6552_v39 = vand.u32 4294901760, %v200_v48  ;;  %v197_v53 = vld [vmem:[%s8056_s1 + $0x3d0] sm:$0xff] }
 0x18a   :  { %2398 = vmatpush.msrb.mxu1 %v2397_v34  ;;  %2475 = vmatpush.msrb.mxu2 %v6357_v35  ;;  %v2427_v34 = vand.u32 4294901760, %v2426_v50  ;;  %v6545_v50 = vsub.f32 %v202_v57, %v6525_v43  ;;  %v6582_v55 = vand.u32 4294901760, %v197_v53 }
 0x18b   :  { %2321 = vmatpush.msrb.mxu0 %v6279_v4  ;;  %2521 = vmatpush.msrb.mxu3 %v6303_v0  ;;  %v2439_v27 = vand.u32 4294901760, %v2438_v42 }
 0x18c   :  { %2404 = vmatpush.msrb.mxu1 %v2403_v17  ;;  %2478 = vmatpush.msrb.mxu2 %v6366_v24  ;;  %v2444_v17 = vsub.f32 %v6493_v38, %v8126_v9  ;;  %v6613_v14 = vsub.f32 %v197_v53, %v6582_v55 }
 0x18d   :  { %2323 = vmatpush.msrb.mxu0 %v6292_v25  ;;  %2523 = vmatpush.msrb.mxu3 %v6323_v31 }
 0x18e   :  { %2410 = vmatpush.msrb.mxu1 %v2409_v63  ;;  %2481 = vmatpush.msrb.mxu2 %v6382_v15  ;;  %v4393_v63 = vpop.eup %4392  ;;  %v2445_v42 = vand.u32 4294901760, %v2444_v17  ;;  %v8132_v17 = vand.u32 4294901760, %v6545_v50  ;;  %v8146_v1 = vand.u32 4294901760, %v6613_v14 }
 0x18f   :  { %2325 = vmatpush.msrb.mxu0 %v6303_v0  ;;  %2525 = vmatpush.msrb.mxu3 %v6337_v16  ;;  %v6558_v57 = vand.u32 4294901760, %v4393_v63 }
 0x190   :  { %2416 = vmatpush.msrb.mxu1 %v2415_v40  ;;  %2484 = vmatpush.msrb.mxu2 %v6405_v41  ;;  %v2450_v40 = vsub.f32 %v6503_v37, %v8125_v26  ;;  %v6561_v26 = vsub.f32 %v201_v58, %v6533_v22  ;;  %v6577_v58 = vsub.f32 %v200_v48, %v6552_v39 }
 0x191   :  { %2327 = vmatpush.msrb.mxu0 %v6323_v31  ;;  %2527 = vmatpush.msrb.mxu3 %v6348_v10  ;;  %v2349_v62 = vsub.f32 %v4393_v63, %v6558_v57  ;;  %v2701_v63 = vsub.f32 %v6545_v50, %v8132_v17 }
 0x192   :  { %2422 = vmatpush.msrb.mxu1 %v2421_v44  ;;  %2487 = vmatpush.msrb.mxu2 %v6420_v28  ;;  %v199_v44 = vld [vmem:[%s8056_s1 + $0x3e0] sm:$0xff] }
 0x193   :  { %2329 = vmatpush.msrb.mxu0 %v6337_v16  ;;  %2529 = vmatpush.msrb.mxu3 %v6374_v21  ;;  %v6565_v9 = vand.u32 4294901760, %v199_v44  ;;  %v2350_v17 = vand.u32 4294901760, %v2349_v62  ;;  %v2702_v53 = vand.u32 4294901760, %v2701_v63 }
 0x194   :  { %2428 = vmatpush.msrb.mxu1 %v2427_v34  ;;  %2490 = vmatpush.msrb.mxu2 %v6435_v3  ;;  %v198_v34 = vld [vmem:[%s8056_s1 + $0x3d8] sm:$0xff] }
 0x195   :  { %2331 = vmatpush.msrb.mxu0 %v6348_v10  ;;  %2531 = vmatpush.msrb.mxu3 %v6392_v49  ;;  %v6572_v33 = vand.u32 4294901760, %v198_v34  ;;  %v6590_v48 = vsub.f32 %v199_v44, %v6565_v9  ;;  %v8143_v44 = vand.u32 4294901760, %v6577_v58  ;;  %v2351_v13 = vsub.f32 %v2349_v62, %v2350_v17 }
 0x196   :  { %2434 = vmatpush.msrb.mxu1 %v2433_v61  ;;  %2493 = vmatpush.msrb.mxu2 %v6450_v60  ;;  %v2451_v61 = vand.u32 4294901760, %v2450_v40  ;;  %v196_v40 = vld [vmem:[%s8056_s1 + $0x3c8] sm:$0xff] }
 0x197   :  { %2333 = vmatpush.msrb.mxu0 %v6374_v21  ;;  %2533 = vmatpush.msrb.mxu3 %v6407_v23 }
 0x198   :  { %2440 = vmatpush.msrb.mxu1 %v2439_v27  ;;  %2496 = vmatpush.msrb.mxu2 %v6469_v18  ;;  %v8138_v27 = vand.u32 4294901760, %v6561_v26 }
 0x199   :  { %2335 = vmatpush.msrb.mxu0 %v6392_v49  ;;  %2535 = vmatpush.msrb.mxu3 %v6422_v19 }
 0x19a   :  { %2446 = vmatpush.msrb.mxu1 %v2445_v42  ;;  %2499 = vmatpush.msrb.mxu2 %v6481_v36  ;;  %v6597_v42 = vsub.f32 %v198_v34, %v6572_v33  ;;  %v2707_v34 = vsub.f32 %v6561_v26, %v8138_v27  ;;  %v6625_v27 = vand.u32 4294901760, %v195_v45 }
 0x19b   :  { %2337 = vmatpush.msrb.mxu0 %v6407_v23  ;;  %2537 = vmatpush.msrb.mxu3 %v6437_v47 }
 0x19c   :  { %2452 = vmatpush.msrb.mxu1 %v2451_v61  ;;  %2502 = vmatpush.msrb.mxu2 %v6493_v38  ;;  %v6605_v61 = vand.u32 4294901760, %v196_v40  ;;  %v2708_v63 = vand.u32 4294901760, %v2707_v34  ;;  %v6653_v52 = vsub.f32 %v195_v45, %v6625_v27 }
 0x19d   :  { %2339 = vmatpush.msrb.mxu0 %v6422_v19  ;;  %2539 = vmatpush.msrb.mxu3 %v6452_v29 }
 0x19e   :  { %2454 = vmatmul.f32.vlgmr.msrb.gmra.mxu1 %v6558_v57  ;;  %2505 = vmatpush.msrb.mxu2 %v6503_v37  ;;  %v6638_v11 = vsub.f32 %v196_v40, %v6605_v61  ;;  %v8293_v40 = vand.u32 4294901760, %v6590_v48  ;;  %v6655_v37 = vand.u32 4294901760, %v193_v5 }
 0x19f   :  { %2621 = vmatpush.msra.mxu1 %v6256_v46  ;;  %2341 = vmatpush.msrb.mxu0 %v6437_v47  ;;  %v2713_v46 = vsub.f32 %v6577_v58, %v8143_v44 }
 0x1a0   :  { %2541 = vmatpush.msrb.mxu3 %v6471_v56  ;;  %2508 = vmatmul.f32.vlgmr.msrb.gmra.mxu2 %v2349_v62  ;;  %v2719_v44 = vsub.f32 %v6590_v48, %v8293_v40  ;;  %v8294_v62 = vand.u32 4294901760, %v6597_v42  ;;  %v6683_v45 = vsub.f32 %v193_v5, %v6655_v37  ;;  %v6713_v5 = vand.u32 4294901760, %v189_v2 }
 0x1a1   :  { %2623 = vmatpush.msra.mxu1 %v6266_v8  ;;  %2658 = vmatpush.msra.mxu2 %v6525_v43  ;;  %v192_v8 = vld [vmem:[%s8056_s1 + $0x3a8] sm:$0xff]  ;;  %v2714_v12 = vand.u32 4294901760, %v2713_v46 }
 0x1a2   :  { %2343 = vmatpush.msrb.mxu0 %v6452_v29  ;;  %2543 = vmatpush.msrb.mxu3 %v6483_v51  ;;  %v2725_v34 = vsub.f32 %v6597_v42, %v8294_v62  ;;  %v6670_v40 = vand.u32 4294901760, %v192_v8  ;;  %v2731_v62 = vsub.f32 %v6613_v14, %v8146_v1  ;;  %v8296_v1 = vand.u32 4294901760, %v6277_v20 }
 0x1a3   :  { %2547 = vmatmul.f32.vlgmr.msrb.gmra.mxu3 %v2350_v17  ;;  %2625 = vmatpush.msra.mxu1 %v6279_v4  ;;  %v191_v4 = vld [vmem:[%s8056_s1 + $0x3a0] sm:$0xff]  ;;  %v6668_v17 = vsub.f32 %v194_v30, %v6640_v7  ;;  %v2720_v30 = vand.u32 4294901760, %v2719_v44  ;;  %v8298_v20 = vand.u32 4294901760, %v6290_v32  ;;  %v8300_v32 = vand.u32 4294901760, %v6301_v54 }
 0x1a4   :  { %2660 = vmatpush.msra.mxu2 %v6533_v22  ;;  %2703 = vmatpush.msra.mxu3 %v2702_v53  ;;  %v2352_v53 = vand.u32 4294901760, %v2351_v13  ;;  %v6685_v13 = vand.u32 4294901760, %v191_v4  ;;  %v6698_v46 = vsub.f32 %v192_v8, %v6670_v40 }
 0x1a5   :  { %2345 = vmatpush.msrb.mxu0 %v6471_v56  ;;  %2627 = vmatpush.msra.mxu1 %v6292_v25  ;;  %8295 = vst [vmem:[#allocation7_spill] sm:$0xff] %v6668_v17  ;;  %v190_v25 = vld [vmem:[%s8056_s1 + $0x398] sm:$0xff] }
 0x1a6   :  { %2662 = vmatpush.msra.mxu2 %v6552_v39  ;;  %2709 = vmatpush.msra.mxu3 %v2708_v63  ;;  %v2726_v63 = vand.u32 4294901760, %v2725_v34  ;;  %v2732_v34 = vand.u32 4294901760, %v2731_v62  ;;  %v6711_v8 = vsub.f32 %v191_v4, %v6685_v13  ;;  %v4395_v62 = vpop.eup %4394 }
 0x1a7   :  { %2347 = vmatpush.msrb.mxu0 %v6483_v51  ;;  %2629 = vmatpush.msra.mxu1 %v6303_v0  ;;  %v8297_v0 = vand.u32 4294901760, %v6638_v11 }
 0x1a8   :  { %2353 = vmatmul.f32.vlgmr.msrb.gmra.mxu0 %v2352_v53  ;;  %2664 = vmatpush.msra.mxu2 %v6565_v9  ;;  %v6700_v53 = vand.u32 4294901760, %v190_v25 }
 0x1a9   :  { %2554 = vmatpush.msra.mxu0 %v8296_v1  ;;  %2715 = vmatpush.msra.mxu3 %v2714_v12  ;;  %v2737_v44 = vsub.f32 %v6638_v11, %v8297_v0  ;;  %v8299_v1 = vand.u32 4294901760, %v6653_v52 }
 0x1aa   :  { %2631 = vmatpush.msra.mxu1 %v6323_v31  ;;  %2666 = vmatpush.msra.mxu2 %v6572_v33  ;;  %v188_v31 = vld [vmem:[%s8056_s1 + $0x388] sm:$0xff]  ;;  %v6727_v0 = vsub.f32 %v190_v25, %v6700_v53 }
 0x1ab   :  { %2558 = vmatpush.msra.mxu0 %v8298_v20  ;;  %2721 = vmatpush.msra.mxu3 %v2720_v30  ;;  %v2743_v12 = vsub.f32 %v6653_v52, %v8299_v1  ;;  %v2738_v30 = vand.u32 4294901760, %v2737_v44  ;;  %v8301_v20 = vand.u32 4294901760, %v6668_v17  ;;  %v6734_v54 = vand.u32 4294901760, %v188_v31 }
 0x1ac   :  { %2633 = vmatpush.msra.mxu1 %v6337_v16  ;;  %2668 = vmatpush.msra.mxu2 %v6582_v55  ;;  %v187_v16 = vld [vmem:[%s8056_s1 + $0x380] sm:$0xff]  ;;  %v6743_v1 = vsub.f32 %v189_v2, %v6713_v5  ;;  %v2772_v2 = vand.u32 4294901760, %v6727_v0 }
 0x1ad   :  { %2562 = vmatpush.msra.mxu0 %v8300_v32  ;;  %2727 = vmatpush.msra.mxu3 %v2726_v63  ;;  %v2749_v4 = vsub.f32 %v6668_v17, %v8301_v20  ;;  %v8302_v63 = vand.u32 4294901760, %v6318_v59  ;;  %v2744_v44 = vand.u32 4294901760, %v2743_v12  ;;  %v8303_v32 = vand.u32 4294901760, %v6683_v45 }
 0x1ae   :  { %2635 = vmatpush.msra.mxu1 %v6348_v10  ;;  %2670 = vmatpush.msra.mxu2 %v6605_v61  ;;  %v2766_v20 = vand.u32 4294901760, %v6711_v8  ;;  %v6747_v10 = vand.u32 4294901760, %v187_v16  ;;  %v6749_v17 = vand.u32 4294901760, %v4395_v62  ;;  %v8304_v59 = vand.u32 4294901760, %v6335_v6 }
 0x1af   :  { %2566 = vmatpush.msra.mxu0 %v8302_v63  ;;  %2733 = vmatpush.msra.mxu3 %v2732_v34  ;;  %v2755_v25 = vsub.f32 %v6683_v45, %v8303_v32  ;;  %v2750_v34 = vand.u32 4294901760, %v2749_v4  ;;  %v8305_v12 = vand.u32 4294901760, %v6698_v46  ;;  %v8306_v32 = vand.u32 4294901760, %v6357_v35 }
 0x1b0   :  { %2637 = vmatpush.msra.mxu1 %v6374_v21  ;;  %2672 = vmatpush.msra.mxu2 %v6625_v27  ;;  %v6760_v21 = vsub.f32 %v188_v31, %v6734_v54  ;;  %v2778_v4 = vand.u32 4294901760, %v6743_v1  ;;  %v6774_v31 = vsub.f32 %v187_v16, %v6747_v10  ;;  %v8307_v35 = vand.u32 4294901760, %v6366_v24 }
 0x1b1   :  { %2570 = vmatpush.msra.mxu0 %v8304_v59  ;;  %2739 = vmatpush.msra.mxu3 %v2738_v30  ;;  %v2761_v63 = vsub.f32 %v6698_v46, %v8305_v12  ;;  %v2756_v6 = vand.u32 4294901760, %v2755_v25  ;;  %v2767_v30 = vsub.f32 %v6711_v8, %v2766_v20  ;;  %v2773_v25 = vsub.f32 %v6727_v0, %v2772_v2 }
 0x1b2   :  { %2639 = vmatpush.msra.mxu1 %v6392_v49  ;;  %2674 = vmatpush.msra.mxu2 %v6640_v7  ;;  %v6771_v49 = vsub.f32 %v4395_v62, %v6749_v17  ;;  %v8308_v62 = vand.u32 4294901760, %v6382_v15  ;;  %v2779_v24 = vsub.f32 %v6743_v1, %v2778_v4 }
 0x1b3   :  { %2574 = vmatpush.msra.mxu0 %v8306_v32  ;;  %2745 = vmatpush.msra.mxu3 %v2744_v44  ;;  %v2762_v44 = vand.u32 4294901760, %v2761_v63  ;;  %v2768_v16 = vand.u32 4294901760, %v2767_v30  ;;  %v2774_v15 = vand.u32 4294901760, %v2773_v25  ;;  %v8311_v32 = vand.u32 4294901760, %v6435_v3 }
 0x1b4   :  { %2641 = vmatpush.msra.mxu1 %v6407_v23  ;;  %2676 = vmatpush.msra.mxu2 %v6655_v37  ;;  %v2784_v23 = vand.u32 4294901760, %v6760_v21  ;;  %v2691_v59 = vand.u32 4294901760, %v6771_v49  ;;  %v2780_v63 = vand.u32 4294901760, %v2779_v24  ;;  %v8313_v3 = vand.u32 4294901760, %v6469_v18 }
 0x1b5   :  { %2578 = vmatpush.msra.mxu0 %v8307_v35  ;;  %2751 = vmatpush.msra.mxu3 %v2750_v34  ;;  %v8309_v34 = vand.u32 4294901760, %v6405_v41  ;;  %v8316_v35 = vand.u32 4294901760, %v6561_v26  ;;  %v8317_v18 = vand.u32 4294901760, %v6493_v38  ;;  %v8322_v38 = vand.u32 4294901760, %v6597_v42 }
 0x1b6   :  { %2643 = vmatpush.msra.mxu1 %v6422_v19  ;;  %2678 = vmatpush.msra.mxu2 %v6670_v40  ;;  %v2790_v19 = vand.u32 4294901760, %v6774_v31  ;;  %v2785_v12 = vsub.f32 %v6760_v21, %v2784_v23  ;;  %v2692_v41 = vsub.f32 %v6771_v49, %v2691_v59 }
 0x1b7   :  { %2582 = vmatpush.msra.mxu0 %v8308_v62  ;;  %2757 = vmatpush.msra.mxu3 %v2756_v6  ;;  %v8321_v62 = vand.u32 4294901760, %v6590_v48 }
 0x1b8   :  { %2645 = vmatpush.msra.mxu1 %v6437_v47  ;;  %2680 = vmatpush.msra.mxu2 %v6685_v13  ;;  %v8310_v47 = vand.u32 4294901760, %v6420_v28  ;;  %v2786_v28 = vand.u32 4294901760, %v2785_v12  ;;  %v2693_v6 = vand.u32 4294901760, %v2692_v41 }
 0x1b9   :  { %2586 = vmatpush.msra.mxu0 %v8309_v34  ;;  %2763 = vmatpush.msra.mxu3 %v2762_v44  ;;  %v8318_v44 = vand.u32 4294901760, %v6577_v58  ;;  %v214_v34 = vld [vmem:[%s8056_s1 + $0x458] sm:$0xff] }
 0x1ba   :  { %2647 = vmatpush.msra.mxu1 %v6452_v29  ;;  %2682 = vmatpush.msra.mxu2 %v6700_v53  ;;  %v2791_v29 = vsub.f32 %v6774_v31, %v2790_v19 }
 0x1bb   :  { %2590 = vmatpush.msra.mxu0 %v8310_v47  ;;  %2769 = vmatpush.msra.mxu3 %v2768_v16  ;;  %v213_v47 = vld [vmem:[%s8056_s1 + $0x450] sm:$0xff] }
 0x1bc   :  { %2649 = vmatpush.msra.mxu1 %v6471_v56  ;;  %2684 = vmatpush.msra.mxu2 %v6713_v5  ;;  %v8312_v56 = vand.u32 4294901760, %v6450_v60  ;;  %v2792_v30 = vand.u32 4294901760, %v2791_v29  ;;  %v8315_v60 = vand.u32 4294901760, %v6481_v36  ;;  %v8319_v36 = vld [vmem:[#allocation6_spill] sm:$0xff]  ;;  %v6928_v29 = vand.u32 4294901760, %v213_v47 }
 0x1bd   :  { %2594 = vmatpush.msra.mxu0 %v8311_v32  ;;  %2775 = vmatpush.msra.mxu3 %v2774_v15  ;;  %v8320_v25 = vand.u32 4294901760, %v8319_v36  ;;  %v8328_v15 = vand.u32 4294901760, %v6683_v45  ;;  %v211_v32 = vld [vmem:[%s8056_s1 + $0x440] sm:$0xff] }
 0x1be   :  { %2651 = vmatpush.msra.mxu1 %v6483_v51  ;;  %2686 = vmatpush.msra.mxu2 %v6734_v54  ;;  %v8314_v51 = vand.u32 4294901760, %v6545_v50 }
 0x1bf   :  { %2598 = vmatpush.msra.mxu0 %v8312_v56  ;;  %2781 = vmatpush.msra.mxu3 %v2780_v63  ;;  %v8329_v63 = vand.u32 4294901760, %v6698_v46 }
 0x1c0   :  { %2653 = vmatmul.f32.vlgmr.msra.gmra.mxu1 %v6558_v57  ;;  %2688 = vmatpush.msra.mxu2 %v6747_v10 }
 0x1c1   :  { %2854 = vmatpush.msrb.mxu1 %v6525_v43  ;;  %2602 = vmatpush.msra.mxu0 %v8313_v3 }
 0x1c2   :  { %2787 = vmatpush.msra.mxu3 %v2786_v28  ;;  %2694 = vmatmul.f32.vlgmr.msra.gmra.mxu2 %v2693_v6  ;;  %v6953_v6 = vand.u32 4294901760, %v211_v32 }
 0x1c3   :  { %2856 = vmatpush.msrb.mxu1 %v6533_v22  ;;  %2895 = vmatpush.msrb.mxu2 %v8314_v51 }
 0x1c4   :  { %2606 = vmatpush.msra.mxu0 %v8315_v60  ;;  %2793 = vmatpush.msra.mxu3 %v2792_v30  ;;  %v210_v30 = vld [vmem:[%s8056_s1 + $0x438] sm:$0xff] }
 0x1c5   :  { %2795 = vmatmul.f32.vlgmr.msra.gmra.mxu3 %v6749_v17  ;;  %2858 = vmatpush.msrb.mxu1 %v6552_v39 }
 0x1c6   :  { %2899 = vmatpush.msrb.mxu2 %v8316_v35  ;;  %2962 = vmatpush.msrb.mxu3 %v6525_v43  ;;  %v218_v43 = vld [vmem:[%s8056_s1 + $0x478] sm:$0xff]  ;;  %v6987_v35 = vsub.f32 %v211_v32, %v6953_v6 }
 0x1c7   :  { %2610 = vmatpush.msra.mxu0 %v8317_v18  ;;  %2860 = vmatpush.msrb.mxu1 %v6565_v9  ;;  %v208_v18 = vld [vmem:[%s8056_s1 + $0x428] sm:$0xff] }
 0x1c8   :  { %2903 = vmatpush.msrb.mxu2 %v8318_v44  ;;  %2964 = vmatpush.msrb.mxu3 %v6533_v22  ;;  %v8323_v22 = vand.u32 4294901760, %v6613_v14 }
 0x1c9   :  { %2614 = vmatpush.msra.mxu0 %v8320_v25  ;;  %2862 = vmatpush.msrb.mxu1 %v6572_v33  ;;  %v7012_v25 = vand.u32 4294901760, %v208_v18 }
 0x1ca   :  { %2616 = vmatmul.f32.vlgmr.msra.gmra.mxu0 %v6558_v57  ;;  %2907 = vmatpush.msrb.mxu2 %v8321_v62  ;;  %v8158_v62 = vand.u32 4294901760, %v6987_v35 }
 0x1cb   :  { %2801 = vmatpush.msrb.mxu0 %v6545_v50  ;;  %2966 = vmatpush.msrb.mxu3 %v6552_v39  ;;  %v217_v50 = vld [vmem:[%s8056_s1 + $0x470] sm:$0xff]  ;;  %v6861_v39 = vand.u32 4294901760, %v218_v43 }
 0x1cc   :  { %2864 = vmatpush.msrb.mxu1 %v6582_v55  ;;  %2911 = vmatpush.msrb.mxu2 %v8322_v38  ;;  %v6871_v57 = vand.u32 4294901760, %v217_v50  ;;  %v206_v38 = vld [vmem:[%s8056_s1 + $0x418] sm:$0xff] }
 0x1cd   :  { %2804 = vmatpush.msrb.mxu0 %v6561_v26  ;;  %2968 = vmatpush.msrb.mxu3 %v6565_v9  ;;  %v8324_v26 = vand.u32 4294901760, %v6638_v11  ;;  %v216_v9 = vld [vmem:[%s8056_s1 + $0x468] sm:$0xff]  ;;  %v6882_v16 = vsub.f32 %v218_v43, %v6861_v39 }
 0x1ce   :  { %2866 = vmatpush.msrb.mxu1 %v6605_v61  ;;  %2915 = vmatpush.msrb.mxu2 %v8323_v22 }
 0x1cf   :  { %2807 = vmatpush.msrb.mxu0 %v6577_v58  ;;  %2970 = vmatpush.msrb.mxu3 %v6572_v33  ;;  %v8325_v33 = vand.u32 4294901760, %v6653_v52  ;;  %v215_v58 = vld [vmem:[%s8056_s1 + $0x460] sm:$0xff]  ;;  %v8166_v12 = vand.u32 4294901760, %v6882_v16 }
 0x1d0   :  { %2868 = vmatpush.msrb.mxu1 %v6625_v27  ;;  %2919 = vmatpush.msrb.mxu2 %v8324_v26 }
 0x1d1   :  { %2810 = vmatpush.msrb.mxu0 %v6590_v48  ;;  %2972 = vmatpush.msrb.mxu3 %v6582_v55  ;;  %v6884_v48 = vand.u32 4294901760, %v216_v9  ;;  %v8326_v55 = vld [vmem:[#allocation7_spill] sm:$0xff] }
 0x1d2   :  { %2870 = vmatpush.msrb.mxu1 %v6640_v7  ;;  %2923 = vmatpush.msrb.mxu2 %v8325_v33  ;;  %v8327_v24 = vand.u32 4294901760, %v8326_v55  ;;  %v3084_v33 = vsub.f32 %v6987_v35, %v8158_v62  ;;  %v226_v62 = vld [vmem:[%s8056_s1 + $0x4b8] sm:$0xff] }
 0x1d3   :  { %2813 = vmatpush.msrb.mxu0 %v6597_v42  ;;  %2974 = vmatpush.msrb.mxu3 %v6605_v61  ;;  %v6895_v42 = vsub.f32 %v217_v50, %v6871_v57  ;;  %v6897_v61 = vand.u32 4294901760, %v215_v58 }
 0x1d4   :  { %2872 = vmatpush.msrb.mxu1 %v6655_v37  ;;  %2927 = vmatpush.msrb.mxu2 %v8327_v24 }
 0x1d5   :  { %2816 = vmatpush.msrb.mxu0 %v6613_v14  ;;  %2976 = vmatpush.msrb.mxu3 %v6625_v27  ;;  %v6906_v14 = vsub.f32 %v216_v9, %v6884_v48  ;;  %v6908_v27 = vand.u32 4294901760, %v214_v34  ;;  %v6923_v41 = vsub.f32 %v215_v58, %v6897_v61  ;;  %v7040_v9 = vsub.f32 %v208_v18, %v7012_v25  ;;  %v204_v58 = vld [vmem:[%s8056_s1 + $0x408] sm:$0xff] }
 0x1d6   :  { %2874 = vmatpush.msrb.mxu1 %v6670_v40  ;;  %2931 = vmatpush.msrb.mxu2 %v8328_v15 }
 0x1d7   :  { %2819 = vmatpush.msrb.mxu0 %v6638_v11  ;;  %2978 = vmatpush.msrb.mxu3 %v6640_v7  ;;  %v212_v7 = vld [vmem:[%s8056_s1 + $0x448] sm:$0xff]  ;;  %v8165_v11 = vand.u32 4294901760, %v6895_v42  ;;  %v6940_v28 = vsub.f32 %v214_v34, %v6908_v27  ;;  %v8163_v56 = vand.u32 4294901760, %v6923_v41 }
 0x1d8   :  { %2876 = vmatpush.msrb.mxu1 %v6685_v13  ;;  %2935 = vmatpush.msrb.mxu2 %v8329_v63  ;;  %v4412_v63 = vld [vmem:[%s8055_s0 + $0x40] sm:$0xff] }
 0x1d9   :  { %2822 = vmatpush.msrb.mxu0 %v6653_v52  ;;  %2980 = vmatpush.msrb.mxu3 %v6655_v37  ;;  %v3042_v52 = vsub.f32 %v6882_v16, %v8166_v12  ;;  %v8164_v37 = vand.u32 4294901760, %v6906_v14  ;;  %v8161_v3 = vand.u32 4294901760, %v6940_v28  ;;  %v3060_v60 = vsub.f32 %v6923_v41, %v8163_v56 }
 0x1da   :  { %2878 = vmatpush.msrb.mxu1 %v6700_v53  ;;  %2939 = vmatpush.msrb.mxu2 %v2766_v20  ;;  %v6942_v20 = vand.u32 4294901760, %v212_v7 }
 0x1db   :  { %2825 = vmatpush.msrb.mxu0 %v8326_v55  ;;  %2982 = vmatpush.msrb.mxu3 %v6670_v40  ;;  %v3048_v40 = vsub.f32 %v6895_v42, %v8165_v11  ;;  %v3066_v44 = vsub.f32 %v6940_v28, %v8161_v3  ;;  %v7245_v11 = vand.u32 4294901760, %v226_v62 }
 0x1dc   :  { %2880 = vmatpush.msrb.mxu1 %v6713_v5  ;;  %2943 = vmatpush.msrb.mxu2 %v2772_v2  ;;  %v3054_v2 = vsub.f32 %v6906_v14, %v8164_v37  ;;  %v6971_v51 = vsub.f32 %v212_v7, %v6942_v20  ;;  %v8330_v7 = vld [vmem:[#allocation5_spill] sm:$0xff]  ;;  %v225_v37 = vld [vmem:[%s8056_s1 + $0x4b0] sm:$0xff] }
 0x1dd   :  { %2828 = vmatpush.msrb.mxu0 %v6683_v45  ;;  %2984 = vmatpush.msrb.mxu3 %v6685_v13  ;;  %v6962_v45 = vsub.f32 %v213_v47, %v6928_v29  ;;  %v3043_v13 = vand.u32 4294901760, %v3042_v52  ;;  %v3067_v50 = vand.u32 4294901760, %v3066_v44  ;;  %v203_v47 = vld [vmem:[%s8056_s1 + $0x400] sm:$0xff]  ;;  %v47_v32 = vsub.f32 %v4412_v63, %v8330_v7 }
 0x1de   :  { %2882 = vmatpush.msrb.mxu1 %v6734_v54  ;;  %2947 = vmatpush.msrb.mxu2 %v2778_v4  ;;  %v209_v4 = vld [vmem:[%s8056_s1 + $0x430] sm:$0xff]  ;;  %v8159_v36 = vand.u32 4294901760, %v6971_v51  ;;  %v8154_v52 = vand.u32 4294901760, %v7040_v9 }
 0x1df   :  { %2831 = vmatpush.msrb.mxu0 %v6698_v46  ;;  %2986 = vmatpush.msrb.mxu3 %v6700_v53  ;;  %v6979_v46 = vand.u32 4294901760, %v210_v30  ;;  %v3049_v53 = vand.u32 4294901760, %v3048_v40 }
 0x1e0   :  { %2884 = vmatpush.msrb.mxu1 %v6747_v10  ;;  %2951 = vmatpush.msrb.mxu2 %v2784_v23  ;;  %v3055_v23 = vand.u32 4294901760, %v3054_v2  ;;  %v3078_v26 = vsub.f32 %v6971_v51, %v8159_v36  ;;  %v4413_v36 = vld [vmem:[%s8055_s0 + $0x48] sm:$0xff] }
 0x1e1   :  { %2834 = vmatpush.msrb.mxu0 %v6711_v8  ;;  %2988 = vmatpush.msrb.mxu3 %v6713_v5  ;;  %v8160_v5 = vand.u32 4294901760, %v6962_v45  ;;  %v6997_v8 = vand.u32 4294901760, %v209_v4 }
 0x1e2   :  { %2888 = vmatmul.f32.vlgmr.msrb.gmra.mxu1 %v2691_v59  ;;  %2955 = vmatpush.msrb.mxu2 %v2790_v19  ;;  %v207_v59 = vld [vmem:[%s8056_s1 + $0x420] sm:$0xff]  ;;  %v7010_v19 = vsub.f32 %v210_v30, %v6979_v46  ;;  %v3079_v15 = vand.u32 4294901760, %v3078_v26  ;;  %v7076_v30 = vand.u32 4294901760, %v204_v58  ;;  %v234_v26 = vld [vmem:[%s8056_s1 + $0x4f8] sm:$0xff] }
 0x1e3   :  { %3044 = vmatpush.msra.mxu1 %v3043_v13  ;;  %2837 = vmatpush.msrb.mxu0 %v6727_v0  ;;  %v3061_v0 = vand.u32 4294901760, %v3060_v60  ;;  %v7025_v43 = vsub.f32 %v209_v4, %v6997_v8  ;;  %v7027_v22 = vand.u32 4294901760, %v207_v59  ;;  %v3085_v13 = vand.u32 4294901760, %v3084_v33 }
 0x1e4   :  { %2990 = vmatpush.msrb.mxu3 %v6734_v54  ;;  %2957 = vmatmul.f32.vlgmr.msrb.gmra.mxu2 %v6749_v17  ;;  %v3072_v54 = vsub.f32 %v6962_v45, %v8160_v5  ;;  %v67_v60 = vmul.f32 1.442695, %v47_v32  ;;  %v7130_v32 = vand.u32 4294901760, %v234_v26  ;;  %v48_v5 = vsub.f32 %v4413_v36, %v8330_v7 }
 0x1e5   :  { %3050 = vmatpush.msra.mxu1 %v3049_v53  ;;  %3142 = vmatpush.msra.mxu2 %v6882_v16  ;;  %v8155_v24 = vand.u32 4294901760, %v7025_v43  ;;  %v7055_v34 = vsub.f32 %v207_v59, %v7027_v22  ;;  %v7088_v53 = vand.u32 4294901760, %v203_v47  ;;  %v7098_v59 = vsub.f32 %v204_v58, %v7076_v30 }
 0x1e6   :  { %2840 = vmatpush.msrb.mxu0 %v6743_v1  ;;  %2992 = vmatpush.msrb.mxu3 %v6747_v10  ;;  %v205_v1 = vld [vmem:[%s8056_s1 + $0x410] sm:$0xff]  ;;  %v8157_v10 = vand.u32 4294901760, %v7010_v19  ;;  %v3073_v55 = vand.u32 4294901760, %v3072_v54  ;;  %4396 = vpow2.f32 %v67_v60  ;;  %v232_v60 = vld [vmem:[%s8056_s1 + $0x4e8] sm:$0xff]  ;;  %v69_v3 = vmul.f32 1.442695, %v48_v5 }
 0x1e7   :  { %2994 = vmatmul.f32.vlgmr.msrb.gmra.mxu3 %v6749_v17  ;;  %3056 = vmatpush.msra.mxu1 %v3055_v23  ;;  %v7042_v17 = vand.u32 4294901760, %v206_v38  ;;  %v8153_v2 = vand.u32 4294901760, %v7055_v34  ;;  %v3102_v23 = vsub.f32 %v7040_v9, %v8154_v52  ;;  %v8150_v58 = vand.u32 4294901760, %v7098_v59 }
 0x1e8   :  { %3145 = vmatpush.msra.mxu2 %v6895_v42  ;;  %3195 = vmatpush.msra.mxu3 %v6861_v39  ;;  %4398 = vpow2.f32 %v69_v3  ;;  %v221_v3 = vld [vmem:[%s8056_s1 + $0x490] sm:$0xff] }
 0x1e9   :  { %2843 = vmatpush.msrb.mxu0 %v6760_v21  ;;  %3062 = vmatpush.msra.mxu1 %v3061_v0  ;;  %v7057_v21 = vand.u32 4294901760, %v205_v1  ;;  %v7074_v40 = vsub.f32 %v206_v38, %v7042_v17  ;;  %v3108_v38 = vsub.f32 %v7055_v34, %v8153_v2 }
 0x1ea   :  { %3148 = vmatpush.msra.mxu2 %v6906_v14  ;;  %3197 = vmatpush.msra.mxu3 %v6871_v57 }
 0x1eb   :  { %2846 = vmatpush.msrb.mxu0 %v6774_v31  ;;  %3068 = vmatpush.msra.mxu1 %v3067_v50  ;;  %v3090_v31 = vsub.f32 %v7010_v19, %v8157_v10  ;;  %v7086_v4 = vsub.f32 %v205_v1, %v7057_v21  ;;  %v8152_v44 = vand.u32 4294901760, %v7074_v40  ;;  %v7108_v50 = vsub.f32 %v203_v47, %v7088_v53 }
 0x1ec   :  { %2849 = vmatmul.f32.vlgmr.msrb.gmra.mxu0 %v6771_v49  ;;  %3151 = vmatpush.msra.mxu2 %v6923_v41  ;;  %v3096_v49 = vsub.f32 %v7025_v43, %v8155_v24  ;;  %v3103_v1 = vand.u32 4294901760, %v3102_v23  ;;  %v227_v24 = vld [vmem:[%s8056_s1 + $0x4c0] sm:$0xff] }
 0x1ed   :  { %2999 = vmatpush.msra.mxu0 %v6861_v39  ;;  %3199 = vmatpush.msra.mxu3 %v6884_v48  ;;  %v3091_v18 = vand.u32 4294901760, %v3090_v31  ;;  %v8151_v54 = vand.u32 4294901760, %v7086_v4  ;;  %8331 = vst [vmem:[#allocation6_spill] sm:$0xff] %v7108_v50  ;;  %v3114_v33 = vsub.f32 %v7074_v40, %v8152_v44  ;;  %v8149_v63 = vand.u32 4294901760, %v7108_v50 }
 0x1ee   :  { %3074 = vmatpush.msra.mxu1 %v3073_v55  ;;  %3154 = vmatpush.msra.mxu2 %v6940_v28  ;;  %v3097_v0 = vand.u32 4294901760, %v3096_v49  ;;  %v233_v55 = vld [vmem:[%s8056_s1 + $0x4f0] sm:$0xff] }
 0x1ef   :  { %3001 = vmatpush.msra.mxu0 %v6871_v57  ;;  %3201 = vmatpush.msra.mxu3 %v6897_v61  ;;  %v3120_v47 = vsub.f32 %v7086_v4, %v8151_v54  ;;  %v3115_v31 = vand.u32 4294901760, %v3114_v33  ;;  %v7138_v49 = vand.u32 4294901760, %v233_v55  ;;  %v7157_v33 = vand.u32 4294901760, %v232_v60  ;;  %v229_v54 = vld [vmem:[%s8056_s1 + $0x4d0] sm:$0xff] }
 0x1f0   :  { %3080 = vmatpush.msra.mxu1 %v3079_v15  ;;  %3157 = vmatpush.msra.mxu2 %v6962_v45  ;;  %v3109_v15 = vand.u32 4294901760, %v3108_v38  ;;  %v7150_v38 = vsub.f32 %v234_v26, %v7130_v32  ;;  %v7187_v52 = vand.u32 4294901760, %v229_v54 }
 0x1f1   :  { %3003 = vmatpush.msra.mxu0 %v6884_v48  ;;  %3203 = vmatpush.msra.mxu3 %v6908_v27  ;;  %v3121_v23 = vand.u32 4294901760, %v3120_v47 }
 0x1f2   :  { %3086 = vmatpush.msra.mxu1 %v3085_v13  ;;  %3160 = vmatpush.msra.mxu2 %v6971_v51  ;;  %v3126_v13 = vsub.f32 %v7098_v59, %v8150_v58  ;;  %v7218_v10 = vsub.f32 %v229_v54, %v7187_v52 }
 0x1f3   :  { %3005 = vmatpush.msra.mxu0 %v6897_v61  ;;  %3205 = vmatpush.msra.mxu3 %v6928_v29 }
 0x1f4   :  { %3092 = vmatpush.msra.mxu1 %v3091_v18  ;;  %3163 = vmatpush.msra.mxu2 %v6987_v35  ;;  %v4397_v18 = vpop.eup %4396  ;;  %v3127_v47 = vand.u32 4294901760, %v3126_v13  ;;  %v8156_v13 = vand.u32 4294901760, %v7150_v38  ;;  %v8170_v56 = vand.u32 4294901760, %v7218_v10 }
 0x1f5   :  { %3007 = vmatpush.msra.mxu0 %v6908_v27  ;;  %3207 = vmatpush.msra.mxu3 %v6942_v20  ;;  %v7163_v26 = vand.u32 4294901760, %v4397_v18 }
 0x1f6   :  { %3098 = vmatpush.msra.mxu1 %v3097_v0  ;;  %3166 = vmatpush.msra.mxu2 %v7010_v19  ;;  %v3132_v0 = vsub.f32 %v7108_v50, %v8149_v63  ;;  %v7166_v63 = vsub.f32 %v233_v55, %v7138_v49  ;;  %v7182_v55 = vsub.f32 %v232_v60, %v7157_v33 }
 0x1f7   :  { %3009 = vmatpush.msra.mxu0 %v6928_v29  ;;  %3209 = vmatpush.msra.mxu3 %v6953_v6  ;;  %v3031_v2 = vsub.f32 %v4397_v18, %v7163_v26  ;;  %v3383_v18 = vsub.f32 %v7150_v38, %v8156_v13 }
 0x1f8   :  { %3104 = vmatpush.msra.mxu1 %v3103_v1  ;;  %3169 = vmatpush.msra.mxu2 %v7025_v43  ;;  %v231_v1 = vld [vmem:[%s8056_s1 + $0x4e0] sm:$0xff] }
 0x1f9   :  { %3011 = vmatpush.msra.mxu0 %v6942_v20  ;;  %3211 = vmatpush.msra.mxu3 %v6979_v46  ;;  %v7170_v58 = vand.u32 4294901760, %v231_v1  ;;  %v3032_v13 = vand.u32 4294901760, %v3031_v2  ;;  %v3384_v54 = vand.u32 4294901760, %v3383_v18 }
 0x1fa   :  { %3110 = vmatpush.msra.mxu1 %v3109_v15  ;;  %3172 = vmatpush.msra.mxu2 %v7040_v9  ;;  %v230_v15 = vld [vmem:[%s8056_s1 + $0x4d8] sm:$0xff] }
 0x1fb   :  { %3013 = vmatpush.msra.mxu0 %v6953_v6  ;;  %3213 = vmatpush.msra.mxu3 %v6997_v8  ;;  %v7177_v44 = vand.u32 4294901760, %v230_v15  ;;  %v7195_v60 = vsub.f32 %v231_v1, %v7170_v58  ;;  %v8167_v1 = vand.u32 4294901760, %v7182_v55  ;;  %v3033_v12 = vsub.f32 %v3031_v2, %v3032_v13 }
 0x1fc   :  { %3116 = vmatpush.msra.mxu1 %v3115_v31  ;;  %3175 = vmatpush.msra.mxu2 %v7055_v34  ;;  %v3133_v31 = vand.u32 4294901760, %v3132_v0  ;;  %v228_v0 = vld [vmem:[%s8056_s1 + $0x4c8] sm:$0xff] }
 0x1fd   :  { %3015 = vmatpush.msra.mxu0 %v6979_v46  ;;  %3215 = vmatpush.msra.mxu3 %v7012_v25 }
 0x1fe   :  { %3122 = vmatpush.msra.mxu1 %v3121_v23  ;;  %3178 = vmatpush.msra.mxu2 %v7074_v40  ;;  %v8162_v23 = vand.u32 4294901760, %v7166_v63 }
 0x1ff   :  { %3017 = vmatpush.msra.mxu0 %v6997_v8  ;;  %3217 = vmatpush.msra.mxu3 %v7027_v22 }
 0x200   :  { %3128 = vmatpush.msra.mxu1 %v3127_v47  ;;  %3181 = vmatpush.msra.mxu2 %v7086_v4  ;;  %v7202_v47 = vsub.f32 %v230_v15, %v7177_v44  ;;  %v3389_v15 = vsub.f32 %v7166_v63, %v8162_v23  ;;  %v7230_v23 = vand.u32 4294901760, %v227_v24 }
 0x201   :  { %3019 = vmatpush.msra.mxu0 %v7012_v25  ;;  %3219 = vmatpush.msra.mxu3 %v7042_v17 }
 0x202   :  { %3134 = vmatpush.msra.mxu1 %v3133_v31  ;;  %3184 = vmatpush.msra.mxu2 %v7098_v59  ;;  %v7210_v31 = vand.u32 4294901760, %v228_v0  ;;  %v3390_v18 = vand.u32 4294901760, %v3389_v15  ;;  %v7258_v7 = vsub.f32 %v227_v24, %v7230_v23 }
 0x203   :  { %3021 = vmatpush.msra.mxu0 %v7027_v22  ;;  %3221 = vmatpush.msra.mxu3 %v7057_v21 }
 0x204   :  { %3136 = vmatmul.f32.vlgmr.msra.gmra.mxu1 %v7163_v26  ;;  %3187 = vmatpush.msra.mxu2 %v7108_v50  ;;  %v7243_v36 = vsub.f32 %v228_v0, %v7210_v31  ;;  %v8332_v0 = vand.u32 4294901760, %v7195_v60  ;;  %v7260_v50 = vand.u32 4294901760, %v225_v37 }
 0x205   :  { %3303 = vmatpush.msrb.mxu1 %v6861_v39  ;;  %3023 = vmatpush.msra.mxu0 %v7042_v17  ;;  %v3395_v39 = vsub.f32 %v7182_v55, %v8167_v1 }
 0x206   :  { %3223 = vmatpush.msra.mxu3 %v7076_v30  ;;  %3190 = vmatmul.f32.vlgmr.msra.gmra.mxu2 %v3031_v2  ;;  %v3401_v1 = vsub.f32 %v7195_v60, %v8332_v0  ;;  %v8333_v2 = vand.u32 4294901760, %v7202_v47  ;;  %v7288_v24 = vsub.f32 %v225_v37, %v7260_v50  ;;  %v7318_v37 = vand.u32 4294901760, %v221_v3 }
 0x207   :  { %3305 = vmatpush.msrb.mxu1 %v6871_v57  ;;  %3340 = vmatpush.msrb.mxu2 %v7130_v32  ;;  %v224_v57 = vld [vmem:[%s8056_s1 + $0x4a8] sm:$0xff]  ;;  %v3396_v5 = vand.u32 4294901760, %v3395_v39 }
 0x208   :  { %3025 = vmatpush.msra.mxu0 %v7057_v21  ;;  %3225 = vmatpush.msra.mxu3 %v7088_v53  ;;  %v3407_v15 = vsub.f32 %v7202_v47, %v8333_v2  ;;  %v7275_v0 = vand.u32 4294901760, %v224_v57  ;;  %v3413_v2 = vsub.f32 %v7218_v10, %v8170_v56  ;;  %v8335_v56 = vand.u32 4294901760, %v6882_v16 }
 0x209   :  { %3229 = vmatmul.f32.vlgmr.msra.gmra.mxu3 %v3032_v13  ;;  %3307 = vmatpush.msrb.mxu1 %v6884_v48  ;;  %v223_v48 = vld [vmem:[%s8056_s1 + $0x4a0] sm:$0xff]  ;;  %v7273_v13 = vsub.f32 %v226_v62, %v7245_v11  ;;  %v3402_v62 = vand.u32 4294901760, %v3401_v1  ;;  %v8337_v16 = vand.u32 4294901760, %v6895_v42  ;;  %v8339_v42 = vand.u32 4294901760, %v6906_v14 }
 0x20a   :  { %3342 = vmatpush.msrb.mxu2 %v7138_v49  ;;  %3385 = vmatpush.msrb.mxu3 %v3384_v54  ;;  %v3034_v54 = vand.u32 4294901760, %v3033_v12  ;;  %v7290_v12 = vand.u32 4294901760, %v223_v48  ;;  %v7303_v39 = vsub.f32 %v224_v57, %v7275_v0 }
 0x20b   :  { %3027 = vmatpush.msra.mxu0 %v7076_v30  ;;  %3309 = vmatpush.msrb.mxu1 %v6897_v61  ;;  %8334 = vst [vmem:[#allocation7_spill] sm:$0xff] %v7273_v13  ;;  %v222_v61 = vld [vmem:[%s8056_s1 + $0x498] sm:$0xff] }
 0x20c   :  { %3344 = vmatpush.msrb.mxu2 %v7157_v33  ;;  %3391 = vmatpush.msrb.mxu3 %v3390_v18  ;;  %v3408_v18 = vand.u32 4294901760, %v3407_v15  ;;  %v3414_v15 = vand.u32 4294901760, %v3413_v2  ;;  %v7316_v57 = vsub.f32 %v223_v48, %v7290_v12  ;;  %v4399_v2 = vpop.eup %4398 }
 0x20d   :  { %3029 = vmatpush.msra.mxu0 %v7088_v53  ;;  %3311 = vmatpush.msrb.mxu1 %v6908_v27  ;;  %v8336_v27 = vand.u32 4294901760, %v7243_v36 }
 0x20e   :  { %3035 = vmatmul.f32.vlgmr.msra.gmra.mxu0 %v3034_v54  ;;  %3346 = vmatpush.msrb.mxu2 %v7170_v58  ;;  %v7305_v54 = vand.u32 4294901760, %v222_v61 }
 0x20f   :  { %3236 = vmatpush.msrb.mxu0 %v8335_v56  ;;  %3397 = vmatpush.msrb.mxu3 %v3396_v5  ;;  %v3419_v1 = vsub.f32 %v7243_v36, %v8336_v27  ;;  %v8338_v56 = vand.u32 4294901760, %v7258_v7 }
 0x210   :  { %3313 = vmatpush.msrb.mxu1 %v6928_v29  ;;  %3348 = vmatpush.msrb.mxu2 %v7177_v44  ;;  %v220_v29 = vld [vmem:[%s8056_s1 + $0x488] sm:$0xff]  ;;  %v7332_v27 = vsub.f32 %v222_v61, %v7305_v54 }
 0x211   :  { %3240 = vmatpush.msrb.mxu0 %v8337_v16  ;;  %3403 = vmatpush.msrb.mxu3 %v3402_v62  ;;  %v3425_v5 = vsub.f32 %v7258_v7, %v8338_v56  ;;  %v3420_v62 = vand.u32 4294901760, %v3419_v1  ;;  %v8340_v16 = vand.u32 4294901760, %v7273_v13  ;;  %v7339_v14 = vand.u32 4294901760, %v220_v29 }
 0x212   :  { %3315 = vmatpush.msrb.mxu1 %v6942_v20  ;;  %3350 = vmatpush.msrb.mxu2 %v7187_v52  ;;  %v219_v20 = vld [vmem:[%s8056_s1 + $0x480] sm:$0xff]  ;;  %v7348_v56 = vsub.f32 %v221_v3, %v7318_v37  ;;  %v3454_v3 = vand.u32 4294901760, %v7332_v27 }
 0x213   :  { %3244 = vmatpush.msrb.mxu0 %v8339_v42  ;;  %3409 = vmatpush.msrb.mxu3 %v3408_v18  ;;  %v3431_v48 = vsub.f32 %v7273_v13, %v8340_v16  ;;  %v8341_v18 = vand.u32 4294901760, %v6923_v41  ;;  %v3426_v1 = vand.u32 4294901760, %v3425_v5  ;;  %v8342_v42 = vand.u32 4294901760, %v7288_v24 }
 0x214   :  { %3317 = vmatpush.msrb.mxu1 %v6953_v6  ;;  %3352 = vmatpush.msrb.mxu2 %v7210_v31  ;;  %v3448_v16 = vand.u32 4294901760, %v7316_v57  ;;  %v7352_v6 = vand.u32 4294901760, %v219_v20  ;;  %v7354_v13 = vand.u32 4294901760, %v4399_v2  ;;  %v8343_v41 = vand.u32 4294901760, %v6940_v28 }
 0x215   :  { %3248 = vmatpush.msrb.mxu0 %v8341_v18  ;;  %3415 = vmatpush.msrb.mxu3 %v3414_v15  ;;  %v3437_v61 = vsub.f32 %v7288_v24, %v8342_v42  ;;  %v3432_v15 = vand.u32 4294901760, %v3431_v48  ;;  %v8344_v5 = vand.u32 4294901760, %v7303_v39  ;;  %v8345_v42 = vand.u32 4294901760, %v6962_v45 }
 0x216   :  { %3319 = vmatpush.msrb.mxu1 %v6979_v46  ;;  %3354 = vmatpush.msrb.mxu2 %v7230_v23  ;;  %v7365_v46 = vsub.f32 %v220_v29, %v7339_v14  ;;  %v3460_v48 = vand.u32 4294901760, %v7348_v56  ;;  %v7379_v29 = vsub.f32 %v219_v20, %v7352_v6  ;;  %v8346_v45 = vand.u32 4294901760, %v6971_v51 }
 0x217   :  { %3252 = vmatpush.msrb.mxu0 %v8343_v41  ;;  %3421 = vmatpush.msrb.mxu3 %v3420_v62  ;;  %v3443_v18 = vsub.f32 %v7303_v39, %v8344_v5  ;;  %v3438_v28 = vand.u32 4294901760, %v3437_v61  ;;  %v3449_v62 = vsub.f32 %v7316_v57, %v3448_v16  ;;  %v3455_v61 = vsub.f32 %v7332_v27, %v3454_v3 }
 0x218   :  { %3321 = vmatpush.msrb.mxu1 %v6997_v8  ;;  %3356 = vmatpush.msrb.mxu2 %v7245_v11  ;;  %v7376_v8 = vsub.f32 %v4399_v2, %v7354_v13  ;;  %v8347_v2 = vand.u32 4294901760, %v6987_v35  ;;  %v3461_v51 = vsub.f32 %v7348_v56, %v3460_v48 }
 0x219   :  { %3256 = vmatpush.msrb.mxu0 %v8345_v42  ;;  %3427 = vmatpush.msrb.mxu3 %v3426_v1  ;;  %v3444_v1 = vand.u32 4294901760, %v3443_v18  ;;  %v3450_v20 = vand.u32 4294901760, %v3449_v62  ;;  %v3456_v35 = vand.u32 4294901760, %v3455_v61  ;;  %v8350_v42 = vand.u32 4294901760, %v7040_v9 }
 0x21a   :  { %3323 = vmatpush.msrb.mxu1 %v7012_v25  ;;  %3358 = vmatpush.msrb.mxu2 %v7260_v50  ;;  %v3466_v25 = vand.u32 4294901760, %v7365_v46  ;;  %v3373_v41 = vand.u32 4294901760, %v7376_v8  ;;  %v3462_v18 = vand.u32 4294901760, %v3461_v51  ;;  %v8352_v9 = vand.u32 4294901760, %v7074_v40  ;;  %v409_v51 = vpop.f32.mrf.mxu1 }
 0x21b   :  { %3260 = vmatpush.msrb.mxu0 %v8346_v45  ;;  %3433 = vmatpush.msrb.mxu3 %v3432_v15  ;;  %v8348_v15 = vand.u32 4294901760, %v7010_v19  ;;  %v8355_v45 = vand.u32 4294901760, %v7166_v63  ;;  %v8356_v40 = vand.u32 4294901760, %v7098_v59  ;;  %v8361_v59 = vand.u32 4294901760, %v7202_v47 }
 0x21c   :  { %3325 = vmatpush.msrb.mxu1 %v7027_v22  ;;  %3360 = vmatpush.msrb.mxu2 %v7275_v0  ;;  %v3472_v22 = vand.u32 4294901760, %v7379_v29  ;;  %v3467_v5 = vsub.f32 %v7365_v46, %v3466_v25  ;;  %v3374_v19 = vsub.f32 %v7376_v8, %v3373_v41 }
 0x21d   :  { %3264 = vmatpush.msrb.mxu0 %v8347_v2  ;;  %3439 = vmatpush.msrb.mxu3 %v3438_v28  ;;  %v8360_v2 = vand.u32 4294901760, %v7195_v60 }
 0x21e   :  { %3327 = vmatpush.msrb.mxu1 %v7042_v17  ;;  %3362 = vmatpush.msrb.mxu2 %v7290_v12  ;;  %v8349_v17 = vand.u32 4294901760, %v7025_v43  ;;  %v3468_v43 = vand.u32 4294901760, %v3467_v5  ;;  %v3375_v28 = vand.u32 4294901760, %v3374_v19  ;;  %v463_v19 = vpop.f32.mrf.mxu2 }
 0x21f   :  { %3268 = vmatpush.msrb.mxu0 %v8348_v15  ;;  %3445 = vmatpush.msrb.mxu3 %v3444_v1  ;;  %v8357_v1 = vand.u32 4294901760, %v7182_v55 }
 0x220   :  { %3329 = vmatpush.msrb.mxu1 %v7057_v21  ;;  %3364 = vmatpush.msrb.mxu2 %v7305_v54  ;;  %v3473_v21 = vsub.f32 %v7379_v29, %v3472_v22 }
 0x221   :  { %3272 = vmatpush.msrb.mxu0 %v8349_v17  ;;  %3451 = vmatpush.msrb.mxu3 %v3450_v20  ;;  %v246_v17 = vld [vmem:[%s8056_s1 + $0x558] sm:$0xff] }
 0x222   :  { %3331 = vmatpush.msrb.mxu1 %v7076_v30  ;;  %3366 = vmatpush.msrb.mxu2 %v7318_v37  ;;  %v8351_v30 = vand.u32 4294901760, %v7055_v34  ;;  %v3474_v62 = vand.u32 4294901760, %v3473_v21  ;;  %v8354_v34 = vand.u32 4294901760, %v7086_v4  ;;  %v8358_v4 = vld [vmem:[#allocation6_spill] sm:$0xff] }
 0x223   :  { %3276 = vmatpush.msrb.mxu0 %v8350_v42  ;;  %3457 = vmatpush.msrb.mxu3 %v3456_v35  ;;  %v8359_v61 = vand.u32 4294901760, %v8358_v4  ;;  %v8365_v35 = vld [vmem:[#allocation7_spill] sm:$0xff] }
 0x224   :  { %3333 = vmatpush.msrb.mxu1 %v7088_v53  ;;  %3368 = vmatpush.msrb.mxu2 %v7339_v14  ;;  %v8353_v53 = vand.u32 4294901760, %v7150_v38  ;;  %v8366_v5 = vand.u32 4294901760, %v8365_v35  ;;  %v245_v42 = vld [vmem:[%s8056_s1 + $0x550] sm:$0xff] }
 0x225   :  { %3280 = vmatpush.msrb.mxu0 %v8351_v30  ;;  %3463 = vmatpush.msrb.mxu3 %v3462_v18  ;;  %v8367_v18 = vand.u32 4294901760, %v7288_v24  ;;  %v8368_v30 = vand.u32 4294901760, %v7303_v39 }
 0x226   :  { %3335 = vmatmul.f32.vlgmr.msrb.gmra.mxu1 %v7163_v26  ;;  %3370 = vmatpush.msrb.mxu2 %v7352_v6 }
 0x227   :  { %3536 = vmatpush.msra.mxu1 %v7130_v32  ;;  %3284 = vmatpush.msrb.mxu0 %v8352_v9 }
 0x228   :  { %3469 = vmatpush.msrb.mxu3 %v3468_v43  ;;  %3376 = vmatmul.f32.vlgmr.msrb.gmra.mxu2 %v3375_v28  ;;  %v244_v28 = vld [vmem:[%s8056_s1 + $0x548] sm:$0xff] }
 0x229   :  { %3538 = vmatpush.msra.mxu1 %v7138_v49  ;;  %3577 = vmatpush.msra.mxu2 %v8353_v53 }
 0x22a   :  { %3288 = vmatpush.msrb.mxu0 %v8354_v34  ;;  %3475 = vmatpush.msrb.mxu3 %v3474_v62  ;;  %v7533_v62 = vand.u32 4294901760, %v245_v42 }
 0x22b   :  { %3477 = vmatmul.f32.vlgmr.msrb.gmra.mxu3 %v7354_v13  ;;  %3540 = vmatpush.msra.mxu1 %v7157_v33 }
 0x22c   :  { %3581 = vmatpush.msra.mxu2 %v8355_v45  ;;  %3644 = vmatpush.msra.mxu3 %v7130_v32  ;;  %v250_v32 = vld [vmem:[%s8056_s1 + $0x578] sm:$0xff] }
 0x22d   :  { %3292 = vmatpush.msrb.mxu0 %v8356_v40  ;;  %3542 = vmatpush.msra.mxu1 %v7170_v58  ;;  %v7550_v40 = vand.u32 4294901760, %v244_v28 }
 0x22e   :  { %3585 = vmatpush.msra.mxu2 %v8357_v1  ;;  %3646 = vmatpush.msra.mxu3 %v7138_v49  ;;  %v8362_v49 = vand.u32 4294901760, %v7218_v10 }
 0x22f   :  { %3296 = vmatpush.msrb.mxu0 %v8359_v61  ;;  %3544 = vmatpush.msra.mxu1 %v7177_v44 }
 0x230   :  { %3298 = vmatmul.f32.vlgmr.msrb.gmra.mxu0 %v7163_v26  ;;  %3589 = vmatpush.msra.mxu2 %v8360_v2  ;;  %v308_v26 = vpop.f32.mrf.mxu0 }
 0x231   :  { %3483 = vmatpush.msra.mxu0 %v7150_v38  ;;  %3648 = vmatpush.msra.mxu3 %v7157_v33  ;;  %v249_v38 = vld [vmem:[%s8056_s1 + $0x570] sm:$0xff]  ;;  %v7466_v33 = vand.u32 4294901760, %v250_v32  ;;  %v410_v15 = vadd.f32 %v409_v51, %v308_v26 }
 0x232   :  { %3546 = vmatpush.msra.mxu1 %v7187_v52  ;;  %3593 = vmatpush.msra.mxu2 %v8361_v59  ;;  %v7476_v20 = vand.u32 4294901760, %v249_v38 }
 0x233   :  { %3486 = vmatpush.msra.mxu0 %v7166_v63  ;;  %3650 = vmatpush.msra.mxu3 %v7170_v58  ;;  %v8363_v63 = vand.u32 4294901760, %v7243_v36  ;;  %v248_v58 = vld [vmem:[%s8056_s1 + $0x568] sm:$0xff]  ;;  %v464_v43 = vadd.f32 %v463_v19, %v410_v15 }
 0x234   :  { %3548 = vmatpush.msra.mxu1 %v7210_v31  ;;  %3597 = vmatpush.msra.mxu2 %v8362_v49 }
 0x235   :  { %3489 = vmatpush.msra.mxu0 %v7182_v55  ;;  %3652 = vmatpush.msra.mxu3 %v7177_v44  ;;  %v8364_v44 = vand.u32 4294901760, %v7258_v7  ;;  %v247_v55 = vld [vmem:[%s8056_s1 + $0x560] sm:$0xff] }
 0x236   :  { %3550 = vmatpush.msra.mxu1 %v7230_v23  ;;  %3601 = vmatpush.msra.mxu2 %v8363_v63  ;;  %v240_v63 = vld [vmem:[%s8056_s1 + $0x528] sm:$0xff] }
 0x237   :  { %3492 = vmatpush.msra.mxu0 %v7195_v60  ;;  %3654 = vmatpush.msra.mxu3 %v7187_v52  ;;  %v7487_v60 = vsub.f32 %v250_v32, %v7466_v33  ;;  %v7489_v52 = vand.u32 4294901760, %v248_v58  ;;  %v7617_v51 = vand.u32 4294901760, %v240_v63 }
 0x238   :  { %3552 = vmatpush.msra.mxu1 %v7245_v11  ;;  %3605 = vmatpush.msra.mxu2 %v8364_v44  ;;  %v571_v9 = vpop.f32.mrf.mxu0 }
 0x239   :  { %3495 = vmatpush.msra.mxu0 %v7202_v47  ;;  %3656 = vmatpush.msra.mxu3 %v7210_v31  ;;  %v7500_v47 = vsub.f32 %v249_v38, %v7476_v20  ;;  %v7502_v31 = vand.u32 4294901760, %v247_v55  ;;  %v8190_v21 = vand.u32 4294901760, %v7487_v60 }
 0x23a   :  { %3554 = vmatpush.msra.mxu1 %v7260_v50  ;;  %3609 = vmatpush.msra.mxu2 %v8366_v5  ;;  %v649_v5 = vpop.f32.mrf.mxu2 }
 0x23b   :  { %3498 = vmatpush.msra.mxu0 %v7218_v10  ;;  %3658 = vmatpush.msra.mxu3 %v7230_v23  ;;  %v7511_v10 = vsub.f32 %v248_v58, %v7489_v52  ;;  %v7513_v23 = vand.u32 4294901760, %v246_v17  ;;  %v3724_v53 = vsub.f32 %v7487_v60, %v8190_v21 }
 0x23c   :  { %3556 = vmatpush.msra.mxu1 %v7275_v0  ;;  %3613 = vmatpush.msra.mxu2 %v8367_v18 }
 0x23d   :  { %3501 = vmatpush.msra.mxu0 %v7243_v36  ;;  %3660 = vmatpush.msra.mxu3 %v7245_v11  ;;  %v8189_v11 = vand.u32 4294901760, %v7500_v47  ;;  %v7525_v36 = vsub.f32 %v247_v55, %v7502_v31  ;;  %v8188_v34 = vand.u32 4294901760, %v7511_v10 }
 0x23e   :  { %3558 = vmatpush.msra.mxu1 %v7290_v12  ;;  %3617 = vmatpush.msra.mxu2 %v8368_v30  ;;  %v7645_v30 = vsub.f32 %v240_v63, %v7617_v51 }
 0x23f   :  { %3504 = vmatpush.msra.mxu0 %v7258_v7  ;;  %3662 = vmatpush.msra.mxu3 %v7260_v50  ;;  %v243_v7 = vld [vmem:[%s8056_s1 + $0x540] sm:$0xff]  ;;  %v502_v50 = vpop.f32.mrf.mxu3  ;;  %v3730_v1 = vsub.f32 %v7500_v47, %v8189_v11  ;;  %v8187_v4 = vand.u32 4294901760, %v7525_v36 }
 0x240   :  { %3560 = vmatpush.msra.mxu1 %v7305_v54  ;;  %3621 = vmatpush.msra.mxu2 %v3448_v16  ;;  %v7545_v16 = vsub.f32 %v246_v17, %v7513_v23  ;;  %v503_v45 = vadd.f32 %v502_v50, %v464_v43  ;;  %v7561_v61 = vand.u32 4294901760, %v243_v7 }
 0x241   :  { %3507 = vmatpush.msra.mxu0 %v8365_v35  ;;  %3664 = vmatpush.msra.mxu3 %v7275_v0  ;;  %v242_v0 = vld [vmem:[%s8056_s1 + $0x538] sm:$0xff]  ;;  %v3742_v49 = vsub.f32 %v7525_v36, %v8187_v4 }
 0x242   :  { %3562 = vmatpush.msra.mxu1 %v7318_v37  ;;  %3625 = vmatpush.msra.mxu2 %v3454_v3  ;;  %v572_v2 = vadd.f32 %v571_v9, %v503_v45  ;;  %v7567_v3 = vsub.f32 %v245_v42, %v7533_v62  ;;  %v8185_v59 = vand.u32 4294901760, %v7545_v16  ;;  %v7575_v32 = vand.u32 4294901760, %v242_v0  ;;  %v238_v35 = vld [vmem:[%s8056_s1 + $0x518] sm:$0xff]  ;;  %v804_v9 = vpop.f32.mrf.mxu0 }
 0x243   :  { %3510 = vmatpush.msra.mxu0 %v7288_v24  ;;  %3666 = vmatpush.msra.mxu3 %v7290_v12  ;;  %v3725_v24 = vand.u32 4294901760, %v3724_v53  ;;  %v3736_v12 = vsub.f32 %v7511_v10, %v8188_v34  ;;  %v7592_v38 = vsub.f32 %v243_v7, %v7561_v61  ;;  %v236_v7 = vld [vmem:[%s8056_s1 + $0x508] sm:$0xff] }
 0x244   :  { %3564 = vmatpush.msra.mxu1 %v7339_v14  ;;  %3629 = vmatpush.msra.mxu2 %v3460_v48  ;;  %v241_v48 = vld [vmem:[%s8056_s1 + $0x530] sm:$0xff]  ;;  %v3748_v44 = vsub.f32 %v7545_v16, %v8185_v59  ;;  %v7609_v55 = vsub.f32 %v242_v0, %v7575_v32 }
 0x245   :  { %3513 = vmatpush.msra.mxu0 %v7303_v39  ;;  %3668 = vmatpush.msra.mxu3 %v7305_v54  ;;  %v7584_v39 = vsub.f32 %v244_v28, %v7550_v40  ;;  %v3731_v54 = vand.u32 4294901760, %v3730_v1  ;;  %v3737_v26 = vand.u32 4294901760, %v3736_v12  ;;  %v8181_v15 = vand.u32 4294901760, %v7592_v38  ;;  %v4414_v12 = vld [vmem:[%s8055_s0 + $0x50] sm:$0xff] }
 0x246   :  { %3566 = vmatpush.msra.mxu1 %v7352_v6  ;;  %3633 = vmatpush.msra.mxu2 %v3466_v25  ;;  %v608_v25 = vpop.f32.mrf.mxu1  ;;  %v3749_v42 = vand.u32 4294901760, %v3748_v44  ;;  %v8180_v43 = vand.u32 4294901760, %v7609_v55 }
 0x247   :  { %3516 = vmatpush.msra.mxu0 %v7316_v57  ;;  %3670 = vmatpush.msra.mxu3 %v7318_v37  ;;  %v8184_v37 = vand.u32 4294901760, %v7567_v3  ;;  %v7602_v57 = vand.u32 4294901760, %v241_v48  ;;  %v609_v58 = vadd.f32 %v608_v25, %v572_v2  ;;  %v3766_v28 = vsub.f32 %v7592_v38, %v8181_v15  ;;  %v750_v50 = vpop.f32.mrf.mxu3 }
 0x248   :  { %3570 = vmatmul.f32.vlgmr.msra.gmra.mxu1 %v3373_v41  ;;  %3637 = vmatpush.msra.mxu2 %v3472_v22  ;;  %v239_v41 = vld [vmem:[%s8056_s1 + $0x520] sm:$0xff]  ;;  %v8183_v22 = vand.u32 4294901760, %v7584_v39  ;;  %v3772_v2 = vsub.f32 %v7609_v55, %v8180_v43  ;;  %v7681_v25 = vand.u32 4294901760, %v236_v7 }
 0x249   :  { %3726 = vmatpush.msrb.mxu1 %v3725_v24  ;;  %3519 = vmatpush.msra.mxu0 %v7332_v27  ;;  %v3743_v27 = vand.u32 4294901760, %v3742_v49  ;;  %v7630_v17 = vsub.f32 %v241_v48, %v7602_v57  ;;  %v7632_v18 = vand.u32 4294901760, %v239_v41  ;;  %v650_v19 = vadd.f32 %v649_v5, %v609_v58  ;;  %v235_v24 = vld [vmem:[%s8056_s1 + $0x500] sm:$0xff] }
 0x24a   :  { %3672 = vmatpush.msra.mxu3 %v7339_v14  ;;  %3639 = vmatmul.f32.vlgmr.msra.gmra.mxu2 %v7354_v13  ;;  %v3754_v14 = vsub.f32 %v7567_v3, %v8184_v37  ;;  %v8369_v48 = vld [vmem:[#allocation5_spill] sm:$0xff]  ;;  %v8178_v49 = vand.u32 4294901760, %v7645_v30  ;;  %v254_v37 = vld [vmem:[%s8056_s1 + $0x598] sm:$0xff] }
 0x24b   :  { %3732 = vmatpush.msrb.mxu1 %v3731_v54  ;;  %3824 = vmatpush.msrb.mxu2 %v7487_v60  ;;  %v8179_v45 = vand.u32 4294901760, %v7630_v17  ;;  %v751_v1 = vadd.f32 %v750_v50, %v650_v19  ;;  %v49_v54 = vsub.f32 %v4414_v12, %v8369_v48 }
 0x24c   :  { %3522 = vmatpush.msra.mxu0 %v7348_v56  ;;  %3674 = vmatpush.msra.mxu3 %v7352_v6  ;;  %v237_v56 = vld [vmem:[%s8056_s1 + $0x510] sm:$0xff]  ;;  %v3760_v6 = vsub.f32 %v7584_v39, %v8183_v22  ;;  %v3755_v53 = vand.u32 4294901760, %v3754_v14  ;;  %v3784_v19 = vsub.f32 %v7645_v30, %v8178_v49 }
 0x24d   :  { %3676 = vmatmul.f32.vlgmr.msra.gmra.mxu3 %v7354_v13  ;;  %3738 = vmatpush.msrb.mxu1 %v3737_v26  ;;  %v7647_v13 = vand.u32 4294901760, %v238_v35  ;;  %v7662_v0 = vand.u32 4294901760, %v237_v56  ;;  %v805_v58 = vadd.f32 %v804_v9, %v751_v1  ;;  %v3767_v26 = vand.u32 4294901760, %v3766_v28 }
 0x24e   :  { %3827 = vmatpush.msrb.mxu2 %v7500_v47  ;;  %3877 = vmatpush.msrb.mxu3 %v7466_v33  ;;  %v71_v5 = vmul.f32 1.442695, %v49_v54  ;;  %v843_v14 = vpop.f32.mrf.mxu1  ;;  %v3785_v12 = vand.u32 4294901760, %v3784_v19 }
 0x24f   :  { %3525 = vmatpush.msra.mxu0 %v7365_v46  ;;  %3744 = vmatpush.msrb.mxu1 %v3743_v27  ;;  %v7660_v46 = vsub.f32 %v239_v41, %v7632_v18  ;;  %v7679_v63 = vsub.f32 %v238_v35, %v7647_v13  ;;  %v7691_v41 = vsub.f32 %v237_v56, %v7662_v0  ;;  %v7693_v27 = vand.u32 4294901760, %v235_v24  ;;  %v949_v19 = vpop.f32.mrf.mxu3 }
 0x250   :  { %3830 = vmatpush.msrb.mxu2 %v7511_v10  ;;  %3879 = vmatpush.msrb.mxu3 %v7476_v20  ;;  %v3773_v35 = vand.u32 4294901760, %v3772_v2  ;;  %v7703_v56 = vsub.f32 %v236_v7, %v7681_v25  ;;  %v844_v28 = vadd.f32 %v843_v14, %v805_v58  ;;  %4400 = vpow2.f32 %v71_v5  ;;  %v912_v2 = vpop.f32.mrf.mxu2  ;;  %v260_v14 = vld [vmem:[%s8056_s1 + $0x5c8] sm:$0xff] }
 0x251   :  { %3528 = vmatpush.msra.mxu0 %v7379_v29  ;;  %3750 = vmatpush.msrb.mxu1 %v3749_v42  ;;  %v3761_v29 = vand.u32 4294901760, %v3760_v6  ;;  %v8176_v44 = vand.u32 4294901760, %v7660_v46  ;;  %8370 = vst [vmem:[#allocation6_spill] sm:$0xff] %v7691_v41  ;;  %v8174_v42 = vand.u32 4294901760, %v7679_v63  ;;  %v262_v6 = vld [vmem:[%s8056_s1 + $0x5d8] sm:$0xf] }
 0x252   :  { %3531 = vmatmul.f32.vlgmr.msra.gmra.mxu0 %v7376_v8  ;;  %3833 = vmatpush.msrb.mxu2 %v7525_v36  ;;  %v3778_v8 = vsub.f32 %v7630_v17, %v8179_v45  ;;  %8371 = vst [vmem:[#allocation7_spill] sm:$0xff] %v7703_v56  ;;  %v8173_v7 = vand.u32 4294901760, %v7691_v41  ;;  %v268_v1 = vsel %vm266_vm1, %v262_v6, 0  ;;  %v913_v58 = vadd.f32 %v912_v2, %v844_v28 }
 0x253   :  { %3681 = vmatpush.msrb.mxu0 %v7466_v33  ;;  %3881 = vmatpush.msrb.mxu3 %v7489_v52  ;;  %v3790_v9 = vsub.f32 %v7660_v46, %v8176_v44  ;;  %v3796_v54 = vsub.f32 %v7679_v63, %v8174_v42  ;;  %v7735_v5 = vand.u32 4294901760, %v268_v1  ;;  %v259_v44 = vld [vmem:[%s8056_s1 + $0x5c0] sm:$0xff] }
 0x254   :  { %3756 = vmatpush.msrb.mxu1 %v3755_v53  ;;  %3836 = vmatpush.msrb.mxu2 %v7545_v16  ;;  %v3779_v50 = vand.u32 4294901760, %v3778_v8  ;;  %v7716_v53 = vsub.f32 %v235_v24, %v7693_v27  ;;  %v261_v24 = vld [vmem:[%s8056_s1 + $0x5d0] sm:$0xff]  ;;  %v3802_v8 = vsub.f32 %v7691_v41, %v8173_v7  ;;  %v950_v2 = vadd.f32 %v949_v19, %v913_v58  ;;  %v990_v7 = vpop.f32.mrf.mxu0 }
 0x255   :  { %3683 = vmatpush.msrb.mxu0 %v7476_v20  ;;  %3883 = vmatpush.msrb.mxu3 %v7502_v31  ;;  %v3797_v6 = vand.u32 4294901760, %v3796_v54  ;;  %v7759_v58 = vsub.f32 %v268_v1, %v7735_v5  ;;  %v7761_v19 = vand.u32 4294901760, %v260_v14 }
 0x256   :  { %3762 = vmatpush.msrb.mxu1 %v3761_v29  ;;  %3839 = vmatpush.msrb.mxu2 %v7567_v3  ;;  %8372 = vst [vmem:[#allocation5_spill] sm:$0xff] %v7716_v53  ;;  %v8175_v29 = vand.u32 4294901760, %v7703_v56  ;;  %v3803_v54 = vand.u32 4294901760, %v3802_v8  ;;  %v1091_v49 = vpop.f32.mrf.mxu1 }
 0x257   :  { %3685 = vmatpush.msrb.mxu0 %v7489_v52  ;;  %3885 = vmatpush.msrb.mxu3 %v7513_v23  ;;  %v1184_v34 = vpop.f32.mrf.mxu3 }
 0x258   :  { %3768 = vmatpush.msrb.mxu1 %v3767_v26  ;;  %3842 = vmatpush.msrb.mxu2 %v7584_v39  ;;  %v3791_v26 = vand.u32 4294901760, %v3790_v9  ;;  %v3808_v28 = vsub.f32 %v7703_v56, %v8175_v29  ;;  %v4401_v9 = vpop.eup %4400 }
 0x259   :  { %3687 = vmatpush.msrb.mxu0 %v7502_v31  ;;  %3887 = vmatpush.msrb.mxu3 %v7533_v62  ;;  %v7769_v8 = vand.u32 4294901760, %v4401_v9 }
 0x25a   :  { %3774 = vmatpush.msrb.mxu1 %v3773_v35  ;;  %3845 = vmatpush.msrb.mxu2 %v7592_v38  ;;  %v8177_v35 = vand.u32 4294901760, %v7716_v53 }
 0x25b   :  { %3689 = vmatpush.msrb.mxu0 %v7513_v23  ;;  %3889 = vmatpush.msrb.mxu3 %v7550_v40 }
 0x25c   :  { %3780 = vmatpush.msrb.mxu1 %v3779_v50  ;;  %3848 = vmatpush.msrb.mxu2 %v7609_v55  ;;  %v7746_v50 = vand.u32 4294901760, %v261_v24  ;;  %v3814_v29 = vsub.f32 %v7716_v53, %v8177_v35  ;;  %v7779_v35 = vand.u32 4294901760, %v259_v44  ;;  %v1253_v11 = vpop.f32.mrf.mxu0 }
 0x25d   :  { %3691 = vmatpush.msrb.mxu0 %v7533_v62  ;;  %3891 = vmatpush.msrb.mxu3 %v7561_v61 }
 0x25e   :  { %3786 = vmatpush.msrb.mxu1 %v3785_v12  ;;  %3851 = vmatpush.msrb.mxu2 %v7630_v17  ;;  %v4415_v12 = vld [vmem:[%s8055_s0 + $0x58] sm:$0xff]  ;;  %v7772_v1 = vsub.f32 %v261_v24, %v7746_v50  ;;  %v7784_v24 = vsub.f32 %v260_v14, %v7761_v19  ;;  %v7802_v43 = vsub.f32 %v259_v44, %v7779_v35 }
 0x25f   :  { %3693 = vmatpush.msrb.mxu0 %v7550_v40  ;;  %3893 = vmatpush.msrb.mxu3 %v7575_v32  ;;  %v50_v42 = vsub.f32 %v4415_v12, %v8369_v48  ;;  %v991_v48 = vadd.f32 %v990_v7, %v950_v2  ;;  %v258_v12 = vld [vmem:[%s8056_s1 + $0x5b8] sm:$0xff]  ;;  %v257_v2 = vld [vmem:[%s8056_s1 + $0x5b0] sm:$0xff] }
 0x260   :  { %3792 = vmatpush.msrb.mxu1 %v3791_v26  ;;  %3854 = vmatpush.msrb.mxu2 %v7645_v30  ;;  %v3809_v26 = vand.u32 4294901760, %v3808_v28  ;;  %v8182_v28 = vand.u32 4294901760, %v7759_v58  ;;  %v7791_v45 = vand.u32 4294901760, %v258_v12  ;;  %v8186_v14 = vand.u32 4294901760, %v7772_v1 }
 0x261   :  { %3695 = vmatpush.msrb.mxu0 %v7561_v61  ;;  %3895 = vmatpush.msrb.mxu3 %v7602_v57  ;;  %v73_v7 = vmul.f32 1.442695, %v50_v42  ;;  %v1092_v42 = vadd.f32 %v1091_v49, %v991_v48  ;;  %v7804_v15 = vand.u32 4294901760, %v257_v2  ;;  %v255_v48 = vld [vmem:[%s8056_s1 + $0x5a0] sm:$0xff] }
 0x262   :  { %3798 = vmatpush.msrb.mxu1 %v3797_v6  ;;  %3857 = vmatpush.msrb.mxu2 %v7660_v46  ;;  %v3815_v6 = vand.u32 4294901760, %v3814_v29  ;;  %v3713_v29 = vsub.f32 %v4401_v9, %v7769_v8  ;;  %v4065_v49 = vsub.f32 %v7759_v58, %v8182_v28  ;;  %v8191_v9 = vand.u32 4294901760, %v7784_v24 }
 0x263   :  { %3697 = vmatpush.msrb.mxu0 %v7575_v32  ;;  %3897 = vmatpush.msrb.mxu3 %v7617_v51  ;;  %4402 = vpow2.f32 %v73_v7  ;;  %v7817_v44 = vsub.f32 %v258_v12, %v7791_v45  ;;  %v4071_v22 = vsub.f32 %v7772_v1, %v8186_v14 }
 0x264   :  { %3804 = vmatpush.msrb.mxu1 %v3803_v54  ;;  %3860 = vmatpush.msrb.mxu2 %v7679_v63  ;;  %v256_v54 = vld [vmem:[%s8056_s1 + $0x5a8] sm:$0xff]  ;;  %v3714_v28 = vand.u32 4294901760, %v3713_v29  ;;  %v4066_v59 = vand.u32 4294901760, %v4065_v49  ;;  %v4077_v14 = vsub.f32 %v7784_v24, %v8191_v9  ;;  %v7850_v49 = vand.u32 4294901760, %v254_v37 }
 0x265   :  { %3699 = vmatpush.msrb.mxu0 %v7602_v57  ;;  %3899 = vmatpush.msrb.mxu3 %v7632_v18  ;;  %v7819_v7 = vand.u32 4294901760, %v256_v54  ;;  %v4072_v9 = vand.u32 4294901760, %v4071_v22 }
 0x266   :  { %3810 = vmatpush.msrb.mxu1 %v3809_v26  ;;  %3863 = vmatpush.msrb.mxu2 %v7691_v41  ;;  %v1145_v26 = vpop.f32.mrf.mxu2 }
 0x267   :  { %3701 = vmatpush.msrb.mxu0 %v7617_v51  ;;  %3901 = vmatpush.msrb.mxu3 %v7647_v13  ;;  %v7848_v21 = vsub.f32 %v256_v54, %v7819_v7 }
 0x268   :  { %3816 = vmatpush.msrb.mxu1 %v3815_v6  ;;  %3866 = vmatpush.msrb.mxu2 %v7703_v56  ;;  %v1146_v6 = vadd.f32 %v1145_v26, %v1092_v42  ;;  %v7833_v42 = vsub.f32 %v257_v2, %v7804_v15  ;;  %v7835_v26 = vand.u32 4294901760, %v255_v48  ;;  %v8373_v2 = vand.u32 4294901760, %v7802_v43 }
 0x269   :  { %3703 = vmatpush.msrb.mxu0 %v7632_v18  ;;  %3903 = vmatpush.msrb.mxu3 %v7662_v0  ;;  %v4403_v4 = vpop.eup %4402  ;;  %v7876_v56 = vsub.f32 %v254_v37, %v7850_v49 }
 0x26a   :  { %3818 = vmatmul.f32.vlgmr.msrb.gmra.mxu1 %v7769_v8  ;;  %3869 = vmatpush.msrb.mxu2 %v7716_v53  ;;  %v1185_v12 = vadd.f32 %v1184_v34, %v1146_v6  ;;  %v3715_v53 = vsub.f32 %v3713_v29, %v3714_v28  ;;  %v4083_v54 = vsub.f32 %v7802_v43, %v8373_v2 }
 0x26b   :  { %3985 = vmatpush.msra.mxu1 %v7466_v33  ;;  %3705 = vmatpush.msrb.mxu0 %v7647_v13  ;;  %v253_v33 = vld [vmem:[%s8056_s1 + $0x590] sm:$0xff]  ;;  %v7863_v34 = vsub.f32 %v255_v48, %v7835_v26 }
 0x26c   :  { %3905 = vmatpush.msrb.mxu3 %v7681_v25  ;;  %3872 = vmatmul.f32.vlgmr.msrb.gmra.mxu2 %v3713_v29  ;;  %v7865_v6 = vand.u32 4294901760, %v253_v33  ;;  %v1254_v22 = vadd.f32 %v1253_v11, %v1185_v12  ;;  %v4078_v29 = vand.u32 4294901760, %v4077_v14  ;;  %v4084_v14 = vand.u32 4294901760, %v4083_v54 }
 0x26d   :  { %3987 = vmatpush.msra.mxu1 %v7476_v20  ;;  %4026 = vmatpush.msra.mxu2 %v7735_v5  ;;  %v252_v20 = vld [vmem:[%s8056_s1 + $0x588] sm:$0xff]  ;;  %v8375_v12 = vand.u32 4294901760, %v7833_v42 }
 0x26e   :  { %3707 = vmatpush.msrb.mxu0 %v7662_v0  ;;  %3907 = vmatpush.msrb.mxu3 %v7693_v27  ;;  %v7878_v11 = vand.u32 4294901760, %v252_v20  ;;  %v7891_v48 = vsub.f32 %v253_v33, %v7865_v6  ;;  %v4112_v33 = vand.u32 4294901760, %v7876_v56 }
 0x26f   :  { %3911 = vmatmul.f32.vlgmr.msrb.gmra.mxu3 %v3714_v28  ;;  %3989 = vmatpush.msra.mxu1 %v7489_v52  ;;  %v264_v28 = vsel %vm31_vm0, %v4403_v4, 0  ;;  %v8374_v52 = vand.u32 4294901760, %v7817_v44  ;;  %v3716_v4 = vand.u32 4294901760, %v3715_v53  ;;  %v4095_v37 = vsub.f32 %v7833_v42, %v8375_v12 }
 0x270   :  { %4028 = vmatpush.msra.mxu2 %v7746_v50  ;;  %4067 = vmatpush.msra.mxu3 %v4066_v59  ;;  %v251_v59 = vld [vmem:[%s8056_s1 + $0x580] sm:$0xff]  ;;  %v8377_v12 = vand.u32 4294901760, %v7848_v21  ;;  %s4442_s1 = smov [#allocation2]  }
 0x271   :  { %3709 = vmatpush.msrb.mxu0 %v7681_v25  ;;  %3991 = vmatpush.msra.mxu1 %v7502_v31  ;;  %v4089_v2 = vsub.f32 %v7817_v44, %v8374_v52  ;;  %v1290_v31 = vpop.f32.mrf.mxu1  ;;  %v7894_v53 = vand.u32 4294901760, %v251_v59  ;;  %s4367_s8 = sshll.u32 %s4442_s1, 4  ;;  %s4368_s8 = int_to_ptr.vmem [resolvable:$true] %s4367_s8 }
 0x272   :  { %4030 = vmatpush.msra.mxu2 %v7761_v19  ;;  %4073 = vmatpush.msra.mxu3 %v4072_v9  ;;  %v1291_v41 = vadd.f32 %v1290_v31, %v1254_v22  ;;  %v7896_v9 = vand.u32 4294901760, %v264_v28  ;;  %v4101_v52 = vsub.f32 %v7848_v21, %v8377_v12  ;;  %v7905_v22 = vsub.f32 %v252_v20, %v7878_v11 }
 0x273   :  { %3711 = vmatpush.msrb.mxu0 %v7693_v27  ;;  %3993 = vmatpush.msra.mxu1 %v7513_v23  ;;  %v8376_v23 = vand.u32 4294901760, %v7487_v60  ;;  %v4090_v54 = vand.u32 4294901760, %v4089_v2  ;;  %v8378_v31 = vand.u32 4294901760, %v7500_v47  ;;  %v4096_v60 = vand.u32 4294901760, %v4095_v37 }
 0x274   :  { %3717 = vmatmul.f32.vlgmr.msrb.gmra.mxu0 %v3716_v4  ;;  %4032 = vmatpush.msra.mxu2 %v7779_v35  ;;  %v1331_v4 = vpop.f32.mrf.mxu2  ;;  %v7921_v20 = vsub.f32 %v251_v59, %v7894_v53  ;;  %v8380_v47 = vand.u32 4294901760, %v7511_v10  ;;  %v4113_v37 = vsub.f32 %v7876_v56, %v4112_v33  ;;  %v8381_v59 = vand.u32 4294901760, %v7525_v36 }
 0x275   :  { %3918 = vmatpush.msra.mxu0 %v8376_v23  ;;  %4079 = vmatpush.msra.mxu3 %v4078_v29  ;;  %v8379_v29 = vand.u32 4294901760, %v7863_v34  ;;  %v4118_v23 = vand.u32 4294901760, %v7891_v48  ;;  %v1332_v12 = vadd.f32 %v1331_v4, %v1291_v41  ;;  %v4124_v41 = vand.u32 4294901760, %v7905_v22 }
 0x276   :  { %3995 = vmatpush.msra.mxu1 %v7533_v62  ;;  %4034 = vmatpush.msra.mxu2 %v7791_v45  ;;  %v7918_v62 = vsub.f32 %v264_v28, %v7896_v9  ;;  %v1486_v28 = vpop.f32.mrf.mxu0  ;;  %v4130_v4 = vand.u32 4294901760, %v7921_v20  ;;  %v4114_v36 = vand.u32 4294901760, %v4113_v37 }
 0x277   :  { %3922 = vmatpush.msra.mxu0 %v8378_v31  ;;  %4085 = vmatpush.msra.mxu3 %v4084_v14  ;;  %v4107_v2 = vsub.f32 %v7863_v34, %v8379_v29  ;;  %v4102_v14 = vand.u32 4294901760, %v4101_v52  ;;  %v4119_v52 = vsub.f32 %v7891_v48, %v4118_v23  ;;  %v8382_v31 = vand.u32 4294901760, %v7545_v16 }
 0x278   :  { %3997 = vmatpush.msra.mxu1 %v7550_v40  ;;  %4036 = vmatpush.msra.mxu2 %v7804_v15  ;;  %v1432_v40 = vpop.f32.mrf.mxu3 }
 0x279   :  { %3926 = vmatpush.msra.mxu0 %v8380_v47  ;;  %4091 = vmatpush.msra.mxu3 %v4090_v54  ;;  %v4108_v10 = vand.u32 4294901760, %v4107_v2  ;;  %v1433_v54 = vadd.f32 %v1432_v40, %v1332_v12  ;;  %v4120_v2 = vand.u32 4294901760, %v4119_v52  ;;  %v4131_v12 = vsub.f32 %v7921_v20, %v4130_v4 }
 0x27a   :  { %3999 = vmatpush.msra.mxu1 %v7561_v61  ;;  %4038 = vmatpush.msra.mxu2 %v7819_v7  ;;  %v4051_v61 = vand.u32 4294901760, %v7918_v62  ;;  %v8384_v47 = vand.u32 4294901760, %v7584_v39  ;;  %v8386_v39 = vand.u32 4294901760, %v7609_v55 }
 0x27b   :  { %3930 = vmatpush.msra.mxu0 %v8381_v59  ;;  %4097 = vmatpush.msra.mxu3 %v4096_v60  ;;  %v4125_v60 = vsub.f32 %v7905_v22, %v4124_v41  ;;  %v1487_v29 = vadd.f32 %v1486_v28, %v1433_v54  ;;  %v4132_v40 = vand.u32 4294901760, %v4131_v12  ;;  %v8393_v54 = vld [vmem:[#allocation7_spill] sm:$0xff] }
 0x27c   :  { %4001 = vmatpush.msra.mxu1 %v7575_v32  ;;  %4040 = vmatpush.msra.mxu2 %v7835_v26  ;;  %v8383_v32 = vand.u32 4294901760, %v7567_v3  ;;  %v4052_v16 = vsub.f32 %v7918_v62, %v4051_v61  ;;  %v1594_v28 = vpop.f32.mrf.mxu2 }
 0x27d   :  { %3934 = vmatpush.msra.mxu0 %v8382_v31  ;;  %4103 = vmatpush.msra.mxu3 %v4102_v14  ;;  %v4126_v3 = vand.u32 4294901760, %v4125_v60 }
 0x27e   :  { %4003 = vmatpush.msra.mxu1 %v7602_v57  ;;  %4042 = vmatpush.msra.mxu2 %v7850_v49  ;;  %v1525_v57 = vpop.f32.mrf.mxu1  ;;  %v4053_v37 = vand.u32 4294901760, %v4052_v16  ;;  %v8404_v16 = vand.u32 4294901760, %v7863_v34 }
 0x27f   :  { %3938 = vmatpush.msra.mxu0 %v8383_v32  ;;  %4109 = vmatpush.msra.mxu3 %v4108_v10  ;;  %v1526_v14 = vadd.f32 %v1525_v57, %v1487_v29  ;;  %v8388_v10 = vand.u32 4294901760, %v7645_v30  ;;  %v8397_v29 = vand.u32 4294901760, %v7759_v58 }
 0x280   :  { %4005 = vmatpush.msra.mxu1 %v7617_v51  ;;  %4044 = vmatpush.msra.mxu2 %v7865_v6  ;;  %v8385_v51 = vand.u32 4294901760, %v7592_v38  ;;  %v8387_v38 = vand.u32 4294901760, %v7630_v17 }
 0x281   :  { %3942 = vmatpush.msra.mxu0 %v8384_v47  ;;  %4115 = vmatpush.msra.mxu3 %v4114_v36  ;;  %v1595_v59 = vadd.f32 %v1594_v28, %v1526_v14 }
 0x282   :  { %4007 = vmatpush.msra.mxu1 %v7632_v18  ;;  %4046 = vmatpush.msra.mxu2 %v7878_v11  ;;  %v1631_v18 = vpop.f32.mrf.mxu3 }
 0x283   :  { %3946 = vmatpush.msra.mxu0 %v8385_v51  ;;  %4121 = vmatpush.msra.mxu3 %v4120_v2  ;;  %v1632_v55 = vadd.f32 %v1631_v18, %v1595_v59  ;;  %v8403_v2 = vand.u32 4294901760, %v7848_v21 }
 0x284   :  { %4009 = vmatpush.msra.mxu1 %v7647_v13  ;;  %4048 = vmatpush.msra.mxu2 %v7894_v53  ;;  %v1672_v13 = vpop.f32.mrf.mxu0 }
 0x285   :  { %3950 = vmatpush.msra.mxu0 %v8386_v39  ;;  %4127 = vmatpush.msra.mxu3 %v4126_v3  ;;  %v1673_v17 = vadd.f32 %v1672_v13, %v1632_v55 }
 0x286   :  { %4054 = vmatmul.f32.vlgmr.msra.gmra.mxu2 %v4053_v37  ;;  %4011 = vmatpush.msra.mxu1 %v7662_v0  ;;  %v8389_v0 = vand.u32 4294901760, %v7660_v46  ;;  %v1773_v30 = vpop.f32.mrf.mxu1  ;;  %v8391_v46 = vld [vmem:[#allocation6_spill] sm:$0xff] }
 0x287   :  { %4145 = vmatpush.msrb.mxu2 %v7759_v58  ;;  %3954 = vmatpush.msra.mxu0 %v8387_v38  ;;  %v8392_v52 = vand.u32 4294901760, %v8391_v46  ;;  %v8399_v58 = vand.u32 4294901760, %v7784_v24 }
 0x288   :  { %4133 = vmatpush.msra.mxu3 %v4132_v40  ;;  %4013 = vmatpush.msra.mxu1 %v7681_v25  ;;  %v8390_v25 = vand.u32 4294901760, %v7679_v63  ;;  %v8394_v63 = vand.u32 4294901760, %v8393_v54 }
 0x289   :  { %4135 = vmatmul.f32.vlgmr.msra.gmra.mxu3 %v7896_v9  ;;  %4148 = vmatpush.msrb.mxu2 %v7772_v1 }
 0x28a   :  { %4190 = vmatpush.msrb.mxu3 %v7735_v5  ;;  %3958 = vmatpush.msra.mxu0 %v8388_v10 }
 0x28b   :  { %4151 = vmatpush.msrb.mxu2 %v7784_v24  ;;  %4015 = vmatpush.msra.mxu1 %v7693_v27  ;;  %v1774_v27 = vadd.f32 %v1773_v30, %v1673_v17  ;;  %v8401_v24 = vand.u32 4294901760, %v7817_v44 }
 0x28c   :  { %4192 = vmatpush.msrb.mxu3 %v7746_v50  ;;  %3962 = vmatpush.msra.mxu0 %v8389_v0  ;;  %v1935_v60 = vpop.f32.mrf.mxu0 }
 0x28d   :  { %4017 = vmatmul.f32.vlgmr.msra.gmra.mxu1 %v7769_v8  ;;  %4154 = vmatpush.msrb.mxu2 %v7802_v43 }
 0x28e   :  { %4194 = vmatpush.msrb.mxu3 %v7761_v19  ;;  %4282 = vmatpush.msrb.mxu1 %v7735_v5  ;;  %v1827_v5 = vpop.f32.mrf.mxu2 }
 0x28f   :  { %3966 = vmatpush.msra.mxu0 %v8390_v25  ;;  %4157 = vmatpush.msrb.mxu2 %v7817_v44  ;;  %v1828_v31 = vadd.f32 %v1827_v5, %v1774_v27 }
 0x290   :  { %4196 = vmatpush.msrb.mxu3 %v7779_v35  ;;  %4284 = vmatpush.msrb.mxu1 %v7746_v50  ;;  %v8395_v50 = vld [vmem:[#allocation5_spill] sm:$0xff] }
 0x291   :  { %3970 = vmatpush.msra.mxu0 %v8392_v52  ;;  %4160 = vmatpush.msrb.mxu2 %v7833_v42  ;;  %v8396_v36 = vand.u32 4294901760, %v8395_v50 }
 0x292   :  { %4198 = vmatpush.msrb.mxu3 %v7791_v45  ;;  %4286 = vmatpush.msrb.mxu1 %v7761_v19  ;;  %v1866_v19 = vpop.f32.mrf.mxu3 }
 0x293   :  { %3974 = vmatpush.msra.mxu0 %v8394_v63  ;;  %4163 = vmatpush.msrb.mxu2 %v7848_v21  ;;  %v1867_v32 = vadd.f32 %v1866_v19, %v1828_v31 }
 0x294   :  { %4200 = vmatpush.msrb.mxu3 %v7804_v15  ;;  %4288 = vmatpush.msrb.mxu1 %v7779_v35  ;;  %v8398_v35 = vand.u32 4294901760, %v7772_v1  ;;  %v8400_v1 = vand.u32 4294901760, %v7802_v43  ;;  %v8402_v43 = vand.u32 4294901760, %v7833_v42 }
 0x295   :  { %3978 = vmatpush.msra.mxu0 %v8396_v36  ;;  %4166 = vmatpush.msrb.mxu2 %v7863_v34 }
 0x296   :  { %3980 = vmatmul.f32.vlgmr.msra.gmra.mxu0 %v7769_v8  ;;  %4202 = vmatpush.msrb.mxu3 %v7819_v7  ;;  %v1936_v8 = vadd.f32 %v1935_v60, %v1867_v32 }
 0x297   :  { %4227 = vmatpush.msrb.mxu0 %v8397_v29  ;;  %4290 = vmatpush.msrb.mxu1 %v7791_v45  ;;  %v1972_v45 = vpop.f32.mrf.mxu1 }
 0x298   :  { %4169 = vmatpush.msrb.mxu2 %v7876_v56  ;;  %4204 = vmatpush.msrb.mxu3 %v7835_v26 }
 0x299   :  { %4231 = vmatpush.msrb.mxu0 %v8398_v35  ;;  %4292 = vmatpush.msrb.mxu1 %v7804_v15  ;;  %v1973_v15 = vadd.f32 %v1972_v45, %v1936_v8 }
 0x29a   :  { %4172 = vmatpush.msrb.mxu2 %v7891_v48  ;;  %4206 = vmatpush.msrb.mxu3 %v7850_v49  ;;  %v2114_v44 = vpop.f32.mrf.mxu3 }
 0x29b   :  { %4235 = vmatpush.msrb.mxu0 %v8399_v58  ;;  %4294 = vmatpush.msrb.mxu1 %v7819_v7  ;;  %v2013_v7 = vpop.f32.mrf.mxu2 }
 0x29c   :  { %4175 = vmatpush.msrb.mxu2 %v7905_v22  ;;  %4208 = vmatpush.msrb.mxu3 %v7865_v6 }
 0x29d   :  { %4239 = vmatpush.msrb.mxu0 %v8400_v1  ;;  %4296 = vmatpush.msrb.mxu1 %v7835_v26  ;;  %v2014_v26 = vadd.f32 %v2013_v7, %v1973_v15 }
 0x29e   :  { %4178 = vmatpush.msrb.mxu2 %v7921_v20  ;;  %4210 = vmatpush.msrb.mxu3 %v7878_v11 }
 0x29f   :  { %4243 = vmatpush.msrb.mxu0 %v8401_v24  ;;  %4298 = vmatpush.msrb.mxu1 %v7850_v49  ;;  %v2168_v49 = vpop.f32.mrf.mxu0  ;;  %v2115_v42 = vadd.f32 %v2114_v44, %v2014_v26  ;;  %v2207_v21 = vpop.f32.mrf.mxu1 }
 0x2a0   :  { %4181 = vmatmul.f32.vlgmr.msrb.gmra.mxu2 %v7918_v62  ;;  %4212 = vmatpush.msrb.mxu3 %v7894_v53 }
 0x2a1   :  { %4247 = vmatpush.msrb.mxu0 %v8402_v43  ;;  %4300 = vmatpush.msrb.mxu1 %v7865_v6  ;;  %v2169_v6 = vadd.f32 %v2168_v49, %v2115_v42 }
 0x2a2   :  { %4216 = vmatmul.f32.vlgmr.msrb.gmra.mxu3 %v4051_v61  ;;  %v2313_v62 = vpop.f32.mrf.mxu3 }
 0x2a3   :  { %4251 = vmatpush.msrb.mxu0 %v8403_v2  ;;  %4302 = vmatpush.msrb.mxu1 %v7878_v11  ;;  %v2208_v11 = vadd.f32 %v2207_v21, %v2169_v6  ;;  %v2276_v34 = vpop.f32.mrf.mxu2 }
 0x2a5   :  { %4255 = vmatpush.msrb.mxu0 %v8404_v16  ;;  %4304 = vmatpush.msrb.mxu1 %v7894_v53  ;;  %v2277_v53 = vadd.f32 %v2276_v34, %v2208_v11 }
 0x2a6   :  { %4306 = vmatmul.f32.vlgmr.msrb.gmra.mxu1 %v7896_v9 }
 0x2a7   :  { %4259 = vmatpush.msrb.mxu0 %v4112_v33  ;;  %v2354_v61 = vpop.f32.mrf.mxu0  ;;  %v2314_v56 = vadd.f32 %v2313_v62, %v2277_v53  ;;  %v2455_v12 = vpop.f32.mrf.mxu1 }
 0x2a9   :  { %4263 = vmatpush.msrb.mxu0 %v4118_v23  ;;  %v2355_v33 = vadd.f32 %v2354_v61, %v2314_v56 }
 0x2aa   :  { %v2548_v47 = vpop.f32.mrf.mxu3 }
 0x2ab   :  { %4267 = vmatpush.msrb.mxu0 %v4124_v41  ;;  %v2456_v57 = vadd.f32 %v2455_v12, %v2355_v33  ;;  %v2509_v48 = vpop.f32.mrf.mxu2 }
 0x2ad   :  { %4271 = vmatpush.msrb.mxu0 %v4130_v4  ;;  %v2510_v23 = vadd.f32 %v2509_v48, %v2456_v57 }
 0x2ae   :  { %4273 = vmatmul.f32.vlgmr.msrb.gmra.mxu0 %v7896_v9 }
 0x2af   :  { %v2617_v3 = vpop.f32.mrf.mxu0  ;;  %v2549_v22 = vadd.f32 %v2548_v47, %v2510_v23  ;;  %v2654_v14 = vpop.f32.mrf.mxu1 }
 0x2b1   :  { %v2618_v41 = vadd.f32 %v2617_v3, %v2549_v22 }
 0x2b2   :  { %v2796_v37 = vpop.f32.mrf.mxu3 }
 0x2b3   :  { %v2655_v51 = vadd.f32 %v2654_v14, %v2618_v41  ;;  %v2695_v20 = vpop.f32.mrf.mxu2 }
 0x2b5   :  { %v2696_v4 = vadd.f32 %v2695_v20, %v2655_v51 }
 0x2b7   :  { %v2850_v9 = vpop.f32.mrf.mxu0  ;;  %v2797_v40 = vadd.f32 %v2796_v37, %v2696_v4  ;;  %v2889_v39 = vpop.f32.mrf.mxu1 }
 0x2b9   :  { %v2851_v28 = vadd.f32 %v2850_v9, %v2797_v40 }
 0x2ba   :  { %v2995_v13 = vpop.f32.mrf.mxu3 }
 0x2bb   :  { %v2890_v59 = vadd.f32 %v2889_v39, %v2851_v28  ;;  %v2958_v38 = vpop.f32.mrf.mxu2 }
 0x2bd   :  { %v2959_v18 = vadd.f32 %v2958_v38, %v2890_v59 }
 0x2bf   :  { %v3036_v55 = vpop.f32.mrf.mxu0  ;;  %v2996_v10 = vadd.f32 %v2995_v13, %v2959_v18  ;;  %v3137_v0 = vpop.f32.mrf.mxu1 }
 0x2c1   :  { %v3037_v17 = vadd.f32 %v3036_v55, %v2996_v10 }
 0x2c2   :  { %v3230_v46 = vpop.f32.mrf.mxu3 }
 0x2c3   :  { %v3138_v30 = vadd.f32 %v3137_v0, %v3037_v17  ;;  %v3191_v25 = vpop.f32.mrf.mxu2 }
 0x2c5   :  { %v3192_v27 = vadd.f32 %v3191_v25, %v3138_v30 }
 0x2c7   :  { %v3299_v52 = vpop.f32.mrf.mxu0  ;;  %v3231_v5 = vadd.f32 %v3230_v46, %v3192_v27  ;;  %v3336_v63 = vpop.f32.mrf.mxu1 }
 0x2c9   :  { %v3300_v54 = vadd.f32 %v3299_v52, %v3231_v5 }
 0x2ca   :  { %v3478_v19 = vpop.f32.mrf.mxu3 }
 0x2cb   :  { %v3337_v31 = vadd.f32 %v3336_v63, %v3300_v54  ;;  %v3377_v50 = vpop.f32.mrf.mxu2 }
 0x2cd   :  { %v3378_v36 = vadd.f32 %v3377_v50, %v3337_v31 }
 0x2cf   :  { %v3532_v60 = vpop.f32.mrf.mxu0  ;;  %v3479_v29 = vadd.f32 %v3478_v19, %v3378_v36  ;;  %v3571_v35 = vpop.f32.mrf.mxu1 }
 0x2d1   :  { %v3533_v32 = vadd.f32 %v3532_v60, %v3479_v29 }
 0x2d2   :  { %v3677_v1 = vpop.f32.mrf.mxu3 }
 0x2d3   :  { %v3572_v8 = vadd.f32 %v3571_v35, %v3533_v32  ;;  %v3640_v58 = vpop.f32.mrf.mxu2 }
 0x2d5   :  { %v3641_v45 = vadd.f32 %v3640_v58, %v3572_v8 }
 0x2d7   :  { %v3678_v24 = vadd.f32 %v3677_v1, %v3641_v45 }
 0x2e7   :  { %v3819_v43 = vpop.f32.mrf.mxu1 }
 0x2ef   :  { %v3873_v2 = vpop.f32.mrf.mxu2 }
 0x2f1   :  { %v3718_v15 = vpop.f32.mrf.mxu0 }
 0x2f2   :  { %v3719_v7 = vadd.f32 %v3718_v15, %v3678_v24  ;;  %v3912_v49 = vpop.f32.mrf.mxu3 }
 0x2f4   :  { %v3820_v26 = vadd.f32 %v3819_v43, %v3719_v7 }
 0x2f6   :  { %v3874_v44 = vadd.f32 %v3873_v2, %v3820_v26 }
 0x2f8   :  { %v3913_v42 = vadd.f32 %v3912_v49, %v3874_v44 }
 0x309   :  { %v4055_v11 = vpop.f32.mrf.mxu2 }
 0x30a   :  { %v4018_v21 = vpop.f32.mrf.mxu1 }
 0x30c   :  { %v4136_v53 = vpop.f32.mrf.mxu3 }
 0x313   :  { %v3981_v16 = vpop.f32.mrf.mxu0 }
 0x314   :  { %v3982_v6 = vadd.f32 %v3981_v16, %v3913_v42 }
 0x316   :  { %v4019_v34 = vadd.f32 %v4018_v21, %v3982_v6 }
 0x318   :  { %v4056_v62 = vadd.f32 %v4055_v11, %v4019_v34 }
 0x31a   :  { %v4137_v56 = vadd.f32 %v4136_v53, %v4056_v62 }
 0x323   :  { %v4182_v61 = vpop.f32.mrf.mxu2  ;;  %v4307_v47 = vpop.f32.mrf.mxu1 }
 0x324   :  { %v4183_v33 = vadd.f32 %v4182_v61, %v4137_v56 }
 0x325   :  { %v4217_v12 = vpop.f32.mrf.mxu3 }
 0x326   :  { %v4218_v57 = vadd.f32 %v4217_v12, %v4183_v33 }
 0x32b   :  { %v4274_v48 = vpop.f32.mrf.mxu0 }
 0x32c   :  { %v4275_v23 = vadd.f32 %v4274_v48, %v4218_v57 }
 0x32e   :  { %v4308_v3 = vadd.f32 %v4307_v47, %v4275_v23 }
 0x330   :  { %4310 = vxpose.xlu0.b32.start.end [1/1] (short) (narrow) %v4308_v3, 8 }
 0x3d4   :  { %v4326_v22 = vpop.trf.xlu0 }
 0x3d5   :  { %v4343_v41 = vrot.slane %v4326_v22, 1 }
 0x3d7   :  { %4404 = vrcp.f32 %v4343_v41  ;;  %v4356_v4 = vand.u32 2147483648, %v4343_v41  ;;  %v4354_v9 = vand.u32 2147483647, %v4343_v41  ;;  %vm4350_vm3 = vweird.f32 %v4343_v41 }
 0x3d9   :  { %v4357_v28 = vor.u32 1.1754944e-38, %v4356_v4  ;;  %vm4355_vm5 = vcmp.eq.f32.partialorder %v4354_v9, 8.507059e+37 }
 0x3dd   :  { %v4405_v14 = vpop.eup %4404 }
 0x3de   :  { %v4346_v51 = vmul.f32 %v4405_v14, %v4343_v41  ;;  %vm4351_vm2 = vweird.f32 %v4405_v14 }
 0x3df   :  { %vm4352_vm4 = vmor %vm4350_vm3, %vm4351_vm2 }
 0x3e0   :  { %v4347_v20 = vsub.f32 1.0, %v4346_v51 }
 0x3e2   :  { %v4348_v37 = vmul.f32 %v4405_v14, %v4347_v20 }
 0x3e4   :  { %v4349_v40 = vadd.f32 %v4405_v14, %v4348_v37 }
 0x3e6   :  { %v4353_v39 = vsel %vm4352_vm4, %v4405_v14, %v4349_v40 }
 0x3e7   :  { %v4358_v59 = vsel %vm4355_vm5, %v4357_v28, %v4353_v39 }
 0x3e8   :  { %v4359_v38 = vmul.f32 %v4358_v59, %v4326_v22 }
 0x3ea   :  { %4361 = vst.msk [vmem:[#allocation2] sm:$0x1] %vm4360_vm6, %v4359_v38 }
 0x3eb   :  { %4372 = dma.vmem_to_hbm [thread:$0]  %s4368_s8, 16, %s4370_s11, [#allocation3]  }
 0x3ec   :  { %4440 = dma.done.wait [#allocation3], 16  }
 0x3ed   :  { %4441 = vsyncadd [#allocation3], 4294967280 }
 0x3ee   :  { %4377 = vsyncpa [#allocation3], 1 }

</bundles_post_ra>
